<compile_context>
chip_gen: v6e
topology: v6e:2x2x1
jax: 0.10.0
libtpu: 0.0.40
codegen_flags: <defaults>
</compile_context>

<pallas_src>
import math

import jax
import jax.numpy as jnp
from jax import lax
from jax.experimental import pallas as pl
from jax.experimental.pallas import tpu as pltpu


def _ln(x, w, b, eps=1e-5):
    mu = jnp.mean(x, axis=-1, keepdims=True)
    xc = x - mu
    var = jnp.mean(xc * xc, axis=-1, keepdims=True)
    return xc * lax.rsqrt(var + eps) * w + b


def _make_kernel(n_head, BB, Sv, Sa, D, compute_dtype):
    H = n_head
    hd = D // H
    S = 2 + Sv + 1 + Sa
    scale = 1.0 / math.sqrt(hd)
    cdt = compute_dtype

    def kernel(vis_ref, aud_ref, tok_ref,
               vis_lnw, vis_lnb, aud_lnw, aud_lnb,
               ln1w, ln1b, wqkv, bqkv, wproj, bproj,
               ln2w, ln2b, w1, b1, w2, b2,
               lnfw, lnfb,
               out_ref, xbuf):
        l = pl.program_id(1)

        # ---- token-sequence assembly: [OFF, PASS, vis, MOD, aud] ----------
        # Runs once per batch block (first layer step); xbuf then carries the
        # residual stream across the layer grid axis.
        @pl.when(l == 0)
        def _assemble():
            vln = _ln(vis_ref[...], vis_lnw[...], vis_lnb[...])   # (BB, Sv, D)
            aln = _ln(aud_ref[...], aud_lnw[...], aud_lnb[...])   # (BB, Sa, D)
            for b in range(BB):
                base = b * S
                xbuf[base:base + 1, :] = tok_ref[0:1, :]                 # OFF
                xbuf[base + 1:base + 2, :] = tok_ref[1:2, :]             # PASS
                xbuf[base + 2:base + 2 + Sv, :] = vln[b]
                xbuf[base + 2 + Sv:base + 3 + Sv, :] = tok_ref[2:3, :]   # MOD
                xbuf[base + 3 + Sv:base + S, :] = aln[b]

        x = xbuf[...]                                           # (BB*S, D) f32

        # ---- self-attention (one streamed layer per grid step) ------------
        h = _ln(x, ln1w[...], ln1b[...])
        qkv = jnp.dot(h.astype(cdt), wqkv[...],
                      preferred_element_type=jnp.float32) + bqkv[...]  # (BB*S, 3D)

        wp = wproj[...]                                          # (D, D)
        for b in range(BB):
            r0 = b * S
            acc = jnp.zeros((S, D), jnp.float32)
            for hh in range(H):
                q = qkv[r0:r0 + S, hh * hd:(hh + 1) * hd]
                k = qkv[r0:r0 + S, D + hh * hd:D + (hh + 1) * hd]
                v = qkv[r0:r0 + S, 2 * D + hh * hd:2 * D + (hh + 1) * hd]
                # q @ k^T without materializing a transpose (NT matmul).
                att = lax.dot_general(q, k, (((1,), (1,)), ((), ())),
                                      preferred_element_type=jnp.float32) * scale
                att = att - jnp.max(att, axis=-1, keepdims=True)
                e = jnp.exp(att)
                p = e / jnp.sum(e, axis=-1, keepdims=True)
                o = jnp.dot(p.astype(cdt), v.astype(cdt),
                            preferred_element_type=jnp.float32)  # (S, hd)
                # Head output is contracted straight against the matching
                # row-slice of wproj -> no per-head masked VMEM stores and no
                # scratch round trip for the attention output.
                acc = acc + jnp.dot(o.astype(cdt), wp[hh * hd:(hh + 1) * hd, :],
                                    preferred_element_type=jnp.float32)
            xbuf[r0:r0 + S, :] = x[r0:r0 + S, :] + acc + bproj[...]
        x = xbuf[...]                                            # x + attn-out

        # ---- MLP (fat-M matmuls over the whole batch block) ---------------
        h2 = _ln(x, ln2w[...], ln2b[...])
        m = jnp.dot(h2.astype(cdt), w1[...],
                    preferred_element_type=jnp.float32) + b1[...]
        m = jax.nn.gelu(m, approximate=True)
        m = jnp.dot(m.astype(cdt), w2[...],
                    preferred_element_type=jnp.float32) + b2[...]
        x = x + m

        xbuf[...] = x                                  # carry to next layer step

        # ---- final layernorm + output store (last layer only) -------------
        @pl.when(l == pl.num_programs(1) - 1)
        def _finalize():
            xf = _ln(x, lnfw[...], lnfb[...])
            for b in range(BB):
                out_ref[b, :, :] = xf[b * S:(b + 1) * S, :].astype(out_ref.dtype)

    return kernel


def _pick_block_b(B, max_bb=8):
    bb = 1
    for c in range(1, min(B, max_bb) + 1):
        if B % c == 0:
            bb = c
    return bb


def streaming_global_transformer(vis, aud, params, n_head, *,
                                 block_b=None, compute_dtype=jnp.float32):
    """vis: (B, Sv, D), aud: (B, Sa, D) -> (B, 2+Sv+1+Sa, D) float32."""
    B, Sv, D = vis.shape
    _, Sa, _ = aud.shape
    L = params["wqkv"].shape[0]
    S = 2 + Sv + 1 + Sa
    BB = block_b if block_b is not None else _pick_block_b(B)
    assert B % BB == 0, (B, BB)
    assert D % n_head == 0, (D, n_head)

    kernel = _make_kernel(n_head, BB, Sv, Sa, D, compute_dtype)

    const_names = ["toks", "vis_lnw", "vis_lnb", "aud_lnw", "aud_lnb"]
    layer_names = ["ln1w", "ln1b", "wqkv", "bqkv", "wproj", "bproj",
                   "ln2w", "ln2b", "w1", "b1", "w2", "b2"]
    final_names = ["lnfw", "lnfb"]
    # Cast the big matmul weights to the compute dtype on the host: for bf16
    # this halves the HBM->VMEM weight DMA and feeds native MXU inputs.
    big_matmul = {"wqkv", "wproj", "w1", "w2"}

    def prep(name):
        w = params[name]
        return w.astype(compute_dtype) if name in big_matmul else w

    wlist = [prep(n) for n in const_names + layer_names + final_names]

    def const_spec(arr):                     # small 2-D params, resident
        return pl.BlockSpec(arr.shape, lambda b, l: (0, 0))

    def layer_spec(arr):                     # (L, r, c) -> stream layer l
        return pl.BlockSpec((None, arr.shape[1], arr.shape[2]),
                            lambda b, l: (l, 0, 0))

    in_specs = (
        [pl.BlockSpec((BB, Sv, D), lambda b, l: (b, 0, 0)),
         pl.BlockSpec((BB, Sa, D), lambda b, l: (b, 0, 0))]
        + [const_spec(params[n]) for n in const_names]
        + [layer_spec(params[n]) for n in layer_names]
        + [const_spec(params[n]) for n in final_names]
    )

    param_bytes = sum(int(w.size) * w.dtype.itemsize for w in wlist)
    io_bytes = 4 * (int(vis.size) + int(aud.size) + B * S * D)
    cost = pl.CostEstimate(
        flops=int(L * B * S * (24 * D * D + 4 * S * D)),
        transcendentals=int(L * B * S * (n_head * S + 4 * D)),
        bytes_accessed=int(param_bytes + io_bytes))

    out = pl.pallas_call(
        kernel,
        out_shape=jax.ShapeDtypeStruct((B, S, D), jnp.float32),
        grid_spec=pltpu.PrefetchScalarGridSpec(
            num_scalar_prefetch=0,
            grid=(B // BB, L),                 # (batch blocks, layers)
            in_specs=in_specs,
            out_specs=pl.BlockSpec((BB, S, D), lambda b, l: (b, 0, 0)),
            scratch_shapes=[pltpu.VMEM((BB * S, D), jnp.float32)],
        ),
        compiler_params=pltpu.CompilerParams(
            # batch blocks are independent -> megacore-parallel on v7x;
            # the layer axis carries the residual stream -> arbitrary.
            dimension_semantics=("parallel", "arbitrary"),
            # explicit VMEM budget so the same kernel shape works on
            # v5e (16 MiB default scoped) through v7x (64 MiB physical).
            vmem_limit_bytes=32 * 1024 * 1024),
        cost_estimate=cost,
    )(vis, aud, *wlist)
    return out


def init_params(key, n_layer, n_embd):
    """Deterministic synthetic parameters following init_weights():
       Linear weights ~ N(0, 0.02), biases 0, LayerNorm weight=1/bias=0,
       OFF/PASS/MOD tokens ~ N(0, 1)."""
    D = n_embd
    L = n_layer
    ks = jax.random.split(key, 8)

    def lin(k, shape):
        return jax.random.normal(k, shape, jnp.float32) * 0.02

    return dict(
        toks=jax.random.normal(ks[0], (3, D), jnp.float32),   # OFF, PASS, MOD
        vis_lnw=jnp.ones((1, D), jnp.float32), vis_lnb=jnp.zeros((1, D), jnp.float32),
        aud_lnw=jnp.ones((1, D), jnp.float32), aud_lnb=jnp.zeros((1, D), jnp.float32),
        ln1w=jnp.ones((L, 1, D), jnp.float32), ln1b=jnp.zeros((L, 1, D), jnp.float32),
        wqkv=lin(ks[1], (L, D, 3 * D)), bqkv=jnp.zeros((L, 1, 3 * D), jnp.float32),
        wproj=lin(ks[2], (L, D, D)), bproj=jnp.zeros((L, 1, D), jnp.float32),
        ln2w=jnp.ones((L, 1, D), jnp.float32), ln2b=jnp.zeros((L, 1, D), jnp.float32),
        w1=lin(ks[3], (L, D, 4 * D)), b1=jnp.zeros((L, 1, 4 * D), jnp.float32),
        w2=lin(ks[4], (L, 4 * D, D)), b2=jnp.zeros((L, 1, D), jnp.float32),
        lnfw=jnp.ones((1, D), jnp.float32), lnfb=jnp.zeros((1, D), jnp.float32),
    )


def reference(vis, aud, params, n_head):
    """Pure-JAX reference of the same forward pass (for validation)."""
    def ln(x, w, b):
        mu = jnp.mean(x, -1, keepdims=True)
        xc = x - mu
        var = jnp.mean(xc * xc, -1, keepdims=True)
        return xc * lax.rsqrt(var + 1e-5) * w + b

    B, Sv, D = vis.shape
    H = n_head
    hd = D // H
    toks = params["toks"]
    off = jnp.broadcast_to(toks[0][None, None, :], (B, 1, D))
    pas = jnp.broadcast_to(toks[1][None, None, :], (B, 1, D))
    mod = jnp.broadcast_to(toks[2][None, None, :], (B, 1, D))
    x = jnp.concatenate(
        [off, pas, ln(vis, params["vis_lnw"], params["vis_lnb"]),
         mod, ln(aud, params["aud_lnw"], params["aud_lnb"])], axis=1)
    S = x.shape[1]
    L = params["wqkv"].shape[0]
    for l in range(L):
        h = ln(x, params["ln1w"][l], params["ln1b"][l])
        qkv = h @ params["wqkv"][l] + params["bqkv"][l]
        q, k, v = jnp.split(qkv, 3, axis=-1)
        q = q.reshape(B, S, H, hd).transpose(0, 2, 1, 3)
        k = k.reshape(B, S, H, hd).transpose(0, 2, 1, 3)
        v = v.reshape(B, S, H, hd).transpose(0, 2, 1, 3)
        att = (q @ k.transpose(0, 1, 3, 2)) / math.sqrt(hd)
        att = jax.nn.softmax(att, axis=-1)
        y = (att @ v).transpose(0, 2, 1, 3).reshape(B, S, D)
        x = x + y @ params["wproj"][l] + params["bproj"][l]
        h2 = ln(x, params["ln2w"][l], params["ln2b"][l])
        m = jax.nn.gelu(h2 @ params["w1"][l] + params["b1"][l], approximate=True)
        x = x + m @ params["w2"][l] + params["b2"][l]
    return ln(x, params["lnfw"], params["lnfb"])


if __name__ == "__main__":
    # small config: n_layer=2, n_head=4, n_embd=32; all dropouts -> identity.
    B, Sv, Sa, D = 2, 8, 8, 32
    n_layer, n_head = 2, 4

    key = jax.random.PRNGKey(0)
    kp, kv, ka = jax.random.split(key, 3)
    params = init_params(kp, n_layer, D)
    vis_selectors = jax.random.normal(kv, (B, Sv, D), jnp.float32)
    aud_selectors = jax.random.normal(ka, (B, Sa, D), jnp.float32)

    ref = reference(vis_selectors, aud_selectors, params, n_head)

    # f32 compute path (bit-for-bit comparable to the reference).
    out = streaming_global_transformer(vis_selectors, aud_selectors, params, n_head)
    out = jax.block_until_ready(out)
    assert out.shape == (B, 2 + Sv + 1 + Sa, D), out.shape
    assert jnp.allclose(out, ref, atol=1e-4, rtol=1e-4), \
        float(jnp.max(jnp.abs(out - ref)))

    # bf16 MXU-input path (weights cast host-side, f32 accumulation) -- the
    # perf-review item; checked with a looser tolerance.
    out_bf16 = streaming_global_transformer(
        vis_selectors, aud_selectors, params, n_head,
        compute_dtype=jnp.bfloat16)
    out_bf16 = jax.block_until_ready(out_bf16)
    assert jnp.allclose(out_bf16, ref, atol=5e-2, rtol=5e-2), \
        float(jnp.max(jnp.abs(out_bf16 - ref)))

    print("KERNEL_OK")
</pallas_src>

<mosaic_0001>
module attributes {stable_mosaic.version = 11 : i64} {
  func.func @kernel(%arg0: i32, %arg1: i32, %arg2: memref<2x8x32xf32, #tpu.memory_space<vmem>>, %arg3: memref<2x8x32xf32, #tpu.memory_space<vmem>>, %arg4: memref<3x32xf32, #tpu.memory_space<vmem>>, %arg5: memref<1x32xf32, #tpu.memory_space<vmem>>, %arg6: memref<1x32xf32, #tpu.memory_space<vmem>>, %arg7: memref<1x32xf32, #tpu.memory_space<vmem>>, %arg8: memref<1x32xf32, #tpu.memory_space<vmem>>, %arg9: memref<1x1x32xf32, #tpu.memory_space<vmem>>, %arg10: memref<1x1x32xf32, #tpu.memory_space<vmem>>, %arg11: memref<1x32x96xf32, #tpu.memory_space<vmem>>, %arg12: memref<1x1x96xf32, #tpu.memory_space<vmem>>, %arg13: memref<1x32x32xf32, #tpu.memory_space<vmem>>, %arg14: memref<1x1x32xf32, #tpu.memory_space<vmem>>, %arg15: memref<1x1x32xf32, #tpu.memory_space<vmem>>, %arg16: memref<1x1x32xf32, #tpu.memory_space<vmem>>, %arg17: memref<1x32x128xf32, #tpu.memory_space<vmem>>, %arg18: memref<1x1x128xf32, #tpu.memory_space<vmem>>, %arg19: memref<1x128x32xf32, #tpu.memory_space<vmem>>, %arg20: memref<1x1x32xf32, #tpu.memory_space<vmem>>, %arg21: memref<1x32xf32, #tpu.memory_space<vmem>>, %arg22: memref<1x32xf32, #tpu.memory_space<vmem>>, %arg23: memref<2x19x32xf32, #tpu.memory_space<vmem>>, %arg24: memref<38x32xf32, #tpu.memory_space<vmem>>) attributes {dimension_semantics = [#tpu.dimension_semantics<parallel>, #tpu.dimension_semantics<arbitrary>], iteration_bounds = array<i64: 1, 2>, scalar_prefetch = 0 : i64, scratch_operands = 1 : i64, tpu.core_type = #tpu.core_type<tc>, window_params = [{transform_indices = @transform_0, window_bounds = array<i64: 2, 8, 32>}, {transform_indices = @transform_1, window_bounds = array<i64: 2, 8, 32>}, {pipeline_mode = #tpu.pipeline_mode<synchronous>, transform_indices = @transform_2, window_bounds = array<i64: 3, 32>}, {pipeline_mode = #tpu.pipeline_mode<synchronous>, transform_indices = @transform_3, window_bounds = array<i64: 1, 32>}, {pipeline_mode = #tpu.pipeline_mode<synchronous>, transform_indices = @transform_4, window_bounds = array<i64: 1, 32>}, {pipeline_mode = #tpu.pipeline_mode<synchronous>, transform_indices = @transform_5, window_bounds = array<i64: 1, 32>}, {pipeline_mode = #tpu.pipeline_mode<synchronous>, transform_indices = @transform_6, window_bounds = array<i64: 1, 32>}, {transform_indices = @transform_7, window_bounds = array<i64: 1, 1, 32>}, {transform_indices = @transform_8, window_bounds = array<i64: 1, 1, 32>}, {transform_indices = @transform_9, window_bounds = array<i64: 1, 32, 96>}, {transform_indices = @transform_10, window_bounds = array<i64: 1, 1, 96>}, {transform_indices = @transform_11, window_bounds = array<i64: 1, 32, 32>}, {transform_indices = @transform_12, window_bounds = array<i64: 1, 1, 32>}, {transform_indices = @transform_13, window_bounds = array<i64: 1, 1, 32>}, {transform_indices = @transform_14, window_bounds = array<i64: 1, 1, 32>}, {transform_indices = @transform_15, window_bounds = array<i64: 1, 32, 128>}, {transform_indices = @transform_16, window_bounds = array<i64: 1, 1, 128>}, {transform_indices = @transform_17, window_bounds = array<i64: 1, 128, 32>}, {transform_indices = @transform_18, window_bounds = array<i64: 1, 1, 32>}, {pipeline_mode = #tpu.pipeline_mode<synchronous>, transform_indices = @transform_19, window_bounds = array<i64: 1, 32>}, {pipeline_mode = #tpu.pipeline_mode<synchronous>, transform_indices = @transform_20, window_bounds = array<i64: 1, 32>}, {transform_indices = @transform_21, window_bounds = array<i64: 2, 19, 32>}]} {
    %c0_i32 = arith.constant 0 : i32
    %0 = arith.cmpi eq, %arg1, %c0_i32 : i32
    %1 = arith.extui %0 : i1 to i32
    %c0_i32_0 = arith.constant 0 : i32
    %2 = arith.cmpi ne, %1, %c0_i32_0 : i32
    scf.if %2 {
      %c0_115 = arith.constant 0 : index
      %c0_116 = arith.constant 0 : index
      %c0_117 = arith.constant 0 : index
      %262 = vector.load %arg2[%c0_115, %c0_116, %c0_117] : memref<2x8x32xf32, #tpu.memory_space<vmem>>, vector<2x8x32xf32>
      %c0_118 = arith.constant 0 : index
      %c0_119 = arith.constant 0 : index
      %263 = vector.load %arg5[%c0_118, %c0_119] : memref<1x32xf32, #tpu.memory_space<vmem>>, vector<1x32xf32>
      %c0_120 = arith.constant 0 : index
      %c0_121 = arith.constant 0 : index
      %264 = vector.load %arg6[%c0_120, %c0_121] : memref<1x32xf32, #tpu.memory_space<vmem>>, vector<1x32xf32>
      %cst_122 = arith.constant dense<0.000000e+00> : vector<2x8xf32>
      %265 = vector.multi_reduction <add>, %262, %cst_122 [2] : vector<2x8x32xf32> to vector<2x8xf32>
      %266 = vector.shape_cast %265 : vector<2x8xf32> to vector<2x8x1xf32>
      %cst_123 = arith.constant 3.200000e+01 : f32
      %267 = vector.broadcast %cst_123 : f32 to vector<2x8x1xf32>
      %268 = arith.divf %266, %267 : vector<2x8x1xf32>
      %269 = vector.broadcast %268 : vector<2x8x1xf32> to vector<2x8x32xf32>
      %270 = arith.subf %262, %269 : vector<2x8x32xf32>
      %271 = arith.mulf %270, %270 : vector<2x8x32xf32>
      %cst_124 = arith.constant dense<0.000000e+00> : vector<2x8xf32>
      %272 = vector.multi_reduction <add>, %271, %cst_124 [2] : vector<2x8x32xf32> to vector<2x8xf32>
      %273 = vector.shape_cast %272 : vector<2x8xf32> to vector<2x8x1xf32>
      %cst_125 = arith.constant 3.200000e+01 : f32
      %274 = vector.broadcast %cst_125 : f32 to vector<2x8x1xf32>
      %275 = arith.divf %273, %274 : vector<2x8x1xf32>
      %cst_126 = arith.constant 9.99999974E-6 : f32
      %276 = vector.broadcast %cst_126 : f32 to vector<2x8x1xf32>
      %277 = arith.addf %275, %276 : vector<2x8x1xf32>
      %278 = math.rsqrt %277 : vector<2x8x1xf32>
      %279 = vector.broadcast %278 : vector<2x8x1xf32> to vector<2x8x32xf32>
      %280 = arith.mulf %270, %279 : vector<2x8x32xf32>
      %281 = vector.shape_cast %263 : vector<1x32xf32> to vector<1x1x32xf32>
      %282 = vector.broadcast %281 : vector<1x1x32xf32> to vector<2x8x32xf32>
      %283 = arith.mulf %280, %282 : vector<2x8x32xf32>
      %284 = vector.shape_cast %264 : vector<1x32xf32> to vector<1x1x32xf32>
      %285 = vector.broadcast %284 : vector<1x1x32xf32> to vector<2x8x32xf32>
      %286 = arith.addf %283, %285 : vector<2x8x32xf32>
      %c0_127 = arith.constant 0 : index
      %c0_128 = arith.constant 0 : index
      %c0_129 = arith.constant 0 : index
      %287 = vector.load %arg3[%c0_127, %c0_128, %c0_129] : memref<2x8x32xf32, #tpu.memory_space<vmem>>, vector<2x8x32xf32>
      %c0_130 = arith.constant 0 : index
      %c0_131 = arith.constant 0 : index
      %288 = vector.load %arg7[%c0_130, %c0_131] : memref<1x32xf32, #tpu.memory_space<vmem>>, vector<1x32xf32>
      %c0_132 = arith.constant 0 : index
      %c0_133 = arith.constant 0 : index
      %289 = vector.load %arg8[%c0_132, %c0_133] : memref<1x32xf32, #tpu.memory_space<vmem>>, vector<1x32xf32>
      %cst_134 = arith.constant dense<0.000000e+00> : vector<2x8xf32>
      %290 = vector.multi_reduction <add>, %287, %cst_134 [2] : vector<2x8x32xf32> to vector<2x8xf32>
      %291 = vector.shape_cast %290 : vector<2x8xf32> to vector<2x8x1xf32>
      %cst_135 = arith.constant 3.200000e+01 : f32
      %292 = vector.broadcast %cst_135 : f32 to vector<2x8x1xf32>
      %293 = arith.divf %291, %292 : vector<2x8x1xf32>
      %294 = vector.broadcast %293 : vector<2x8x1xf32> to vector<2x8x32xf32>
      %295 = arith.subf %287, %294 : vector<2x8x32xf32>
      %296 = arith.mulf %295, %295 : vector<2x8x32xf32>
      %cst_136 = arith.constant dense<0.000000e+00> : vector<2x8xf32>
      %297 = vector.multi_reduction <add>, %296, %cst_136 [2] : vector<2x8x32xf32> to vector<2x8xf32>
      %298 = vector.shape_cast %297 : vector<2x8xf32> to vector<2x8x1xf32>
      %cst_137 = arith.constant 3.200000e+01 : f32
      %299 = vector.broadcast %cst_137 : f32 to vector<2x8x1xf32>
      %300 = arith.divf %298, %299 : vector<2x8x1xf32>
      %cst_138 = arith.constant 9.99999974E-6 : f32
      %301 = vector.broadcast %cst_138 : f32 to vector<2x8x1xf32>
      %302 = arith.addf %300, %301 : vector<2x8x1xf32>
      %303 = math.rsqrt %302 : vector<2x8x1xf32>
      %304 = vector.broadcast %303 : vector<2x8x1xf32> to vector<2x8x32xf32>
      %305 = arith.mulf %295, %304 : vector<2x8x32xf32>
      %306 = vector.shape_cast %288 : vector<1x32xf32> to vector<1x1x32xf32>
      %307 = vector.broadcast %306 : vector<1x1x32xf32> to vector<2x8x32xf32>
      %308 = arith.mulf %305, %307 : vector<2x8x32xf32>
      %309 = vector.shape_cast %289 : vector<1x32xf32> to vector<1x1x32xf32>
      %310 = vector.broadcast %309 : vector<1x1x32xf32> to vector<2x8x32xf32>
      %311 = arith.addf %308, %310 : vector<2x8x32xf32>
      %c0_139 = arith.constant 0 : index
      %c0_140 = arith.constant 0 : index
      %312 = vector.load %arg4[%c0_139, %c0_140] : memref<3x32xf32, #tpu.memory_space<vmem>>, vector<1x32xf32>
      %c0_141 = arith.constant 0 : index
      %c0_142 = arith.constant 0 : index
      %313 = vector.load %arg24[%c0_141, %c0_142] : memref<38x32xf32, #tpu.memory_space<vmem>>, vector<1x32xf32>
      tpu.vector_store %arg24[%c0_141, %c0_142], %312 {strides = array<i32>} : memref<38x32xf32, #tpu.memory_space<vmem>>, vector<1x32xf32>,
      %c1 = arith.constant 1 : index
      %c0_143 = arith.constant 0 : index
      %314 = vector.load %arg4[%c1, %c0_143] : memref<3x32xf32, #tpu.memory_space<vmem>>, vector<1x32xf32>
      %c1_144 = arith.constant 1 : index
      %c0_145 = arith.constant 0 : index
      %315 = vector.load %arg24[%c1_144, %c0_145] : memref<38x32xf32, #tpu.memory_space<vmem>>, vector<1x32xf32>
      tpu.vector_store %arg24[%c1_144, %c0_145], %314 {strides = array<i32>} : memref<38x32xf32, #tpu.memory_space<vmem>>, vector<1x32xf32>,
      %316 = vector.extract_strided_slice %286 {offsets = [0, 0, 0], sizes = [1, 8, 32], strides = [1, 1, 1]} : vector<2x8x32xf32> to vector<1x8x32xf32>
      %317 = vector.shape_cast %316 : vector<1x8x32xf32> to vector<8x32xf32>
      %c2 = arith.constant 2 : index
      %c0_146 = arith.constant 0 : index
      %318 = vector.load %arg24[%c2, %c0_146] : memref<38x32xf32, #tpu.memory_space<vmem>>, vector<8x32xf32>
      tpu.vector_store %arg24[%c2, %c0_146], %317 {strides = array<i32>} : memref<38x32xf32, #tpu.memory_space<vmem>>, vector<8x32xf32>,
      %c2_147 = arith.constant 2 : index
      %c0_148 = arith.constant 0 : index
      %319 = vector.load %arg4[%c2_147, %c0_148] : memref<3x32xf32, #tpu.memory_space<vmem>>, vector<1x32xf32>
      %c10 = arith.constant 10 : index
      %c0_149 = arith.constant 0 : index
      %320 = vector.load %arg24[%c10, %c0_149] : memref<38x32xf32, #tpu.memory_space<vmem>>, vector<1x32xf32>
      tpu.vector_store %arg24[%c10, %c0_149], %319 {strides = array<i32>} : memref<38x32xf32, #tpu.memory_space<vmem>>, vector<1x32xf32>,
      %321 = vector.extract_strided_slice %311 {offsets = [0, 0, 0], sizes = [1, 8, 32], strides = [1, 1, 1]} : vector<2x8x32xf32> to vector<1x8x32xf32>
      %322 = vector.shape_cast %321 : vector<1x8x32xf32> to vector<8x32xf32>
      %c11 = arith.constant 11 : index
      %c0_150 = arith.constant 0 : index
      %323 = vector.load %arg24[%c11, %c0_150] : memref<38x32xf32, #tpu.memory_space<vmem>>, vector<8x32xf32>
      tpu.vector_store %arg24[%c11, %c0_150], %322 {strides = array<i32>} : memref<38x32xf32, #tpu.memory_space<vmem>>, vector<8x32xf32>,
      %c0_151 = arith.constant 0 : index
      %c0_152 = arith.constant 0 : index
      %324 = vector.load %arg4[%c0_151, %c0_152] : memref<3x32xf32, #tpu.memory_space<vmem>>, vector<1x32xf32>
      %c19_153 = arith.constant 19 : index
      %c0_154 = arith.constant 0 : index
      %325 = vector.load %arg24[%c19_153, %c0_154] : memref<38x32xf32, #tpu.memory_space<vmem>>, vector<1x32xf32>
      tpu.vector_store %arg24[%c19_153, %c0_154], %324 {strides = array<i32>} : memref<38x32xf32, #tpu.memory_space<vmem>>, vector<1x32xf32>,
      %c1_155 = arith.constant 1 : index
      %c0_156 = arith.constant 0 : index
      %326 = vector.load %arg4[%c1_155, %c0_156] : memref<3x32xf32, #tpu.memory_space<vmem>>, vector<1x32xf32>
      %c20 = arith.constant 20 : index
      %c0_157 = arith.constant 0 : index
      %327 = vector.load %arg24[%c20, %c0_157] : memref<38x32xf32, #tpu.memory_space<vmem>>, vector<1x32xf32>
      tpu.vector_store %arg24[%c20, %c0_157], %326 {strides = array<i32>} : memref<38x32xf32, #tpu.memory_space<vmem>>, vector<1x32xf32>,
      %328 = vector.extract_strided_slice %286 {offsets = [1, 0, 0], sizes = [1, 8, 32], strides = [1, 1, 1]} : vector<2x8x32xf32> to vector<1x8x32xf32>
      %329 = vector.shape_cast %328 : vector<1x8x32xf32> to vector<8x32xf32>
      %c21 = arith.constant 21 : index
      %c0_158 = arith.constant 0 : index
      %330 = vector.load %arg24[%c21, %c0_158] : memref<38x32xf32, #tpu.memory_space<vmem>>, vector<8x32xf32>
      tpu.vector_store %arg24[%c21, %c0_158], %329 {strides = array<i32>} : memref<38x32xf32, #tpu.memory_space<vmem>>, vector<8x32xf32>,
      %c2_159 = arith.constant 2 : index
      %c0_160 = arith.constant 0 : index
      %331 = vector.load %arg4[%c2_159, %c0_160] : memref<3x32xf32, #tpu.memory_space<vmem>>, vector<1x32xf32>
      %c29 = arith.constant 29 : index
      %c0_161 = arith.constant 0 : index
      %332 = vector.load %arg24[%c29, %c0_161] : memref<38x32xf32, #tpu.memory_space<vmem>>, vector<1x32xf32>
      tpu.vector_store %arg24[%c29, %c0_161], %331 {strides = array<i32>} : memref<38x32xf32, #tpu.memory_space<vmem>>, vector<1x32xf32>,
      %333 = vector.extract_strided_slice %311 {offsets = [1, 0, 0], sizes = [1, 8, 32], strides = [1, 1, 1]} : vector<2x8x32xf32> to vector<1x8x32xf32>
      %334 = vector.shape_cast %333 : vector<1x8x32xf32> to vector<8x32xf32>
      %c30 = arith.constant 30 : index
      %c0_162 = arith.constant 0 : index
      %335 = vector.load %arg24[%c30, %c0_162] : memref<38x32xf32, #tpu.memory_space<vmem>>, vector<8x32xf32>
      tpu.vector_store %arg24[%c30, %c0_162], %334 {strides = array<i32>} : memref<38x32xf32, #tpu.memory_space<vmem>>, vector<8x32xf32>,
    } else {
    }
    %c0 = arith.constant 0 : index
    %c0_1 = arith.constant 0 : index
    %3 = vector.load %arg24[%c0, %c0_1] : memref<38x32xf32, #tpu.memory_space<vmem>>, vector<38x32xf32>
    %c0_2 = arith.constant 0 : index
    %c0_3 = arith.constant 0 : index
    %c0_4 = arith.constant 0 : index
    %4 = vector.load %arg9[%c0_2, %c0_3, %c0_4] : memref<1x1x32xf32, #tpu.memory_space<vmem>>, vector<1x1x32xf32>
    %5 = vector.shape_cast %4 : vector<1x1x32xf32> to vector<1x32xf32>
    %c0_5 = arith.constant 0 : index
    %c0_6 = arith.constant 0 : index
    %c0_7 = arith.constant 0 : index
    %6 = vector.load %arg10[%c0_5, %c0_6, %c0_7] : memref<1x1x32xf32, #tpu.memory_space<vmem>>, vector<1x1x32xf32>
    %7 = vector.shape_cast %6 : vector<1x1x32xf32> to vector<1x32xf32>
    %cst = arith.constant dense<0.000000e+00> : vector<38xf32>
    %8 = vector.multi_reduction <add>, %3, %cst [1] : vector<38x32xf32> to vector<38xf32>
    %9 = vector.shape_cast %8 : vector<38xf32> to vector<38x1xf32>
    %cst_8 = arith.constant 3.200000e+01 : f32
    %10 = vector.broadcast %cst_8 : f32 to vector<38x1xf32>
    %11 = arith.divf %9, %10 : vector<38x1xf32>
    %12 = vector.broadcast %11 : vector<38x1xf32> to vector<38x32xf32>
    %13 = arith.subf %3, %12 : vector<38x32xf32>
    %14 = arith.mulf %13, %13 : vector<38x32xf32>
    %cst_9 = arith.constant dense<0.000000e+00> : vector<38xf32>
    %15 = vector.multi_reduction <add>, %14, %cst_9 [1] : vector<38x32xf32> to vector<38xf32>
    %16 = vector.shape_cast %15 : vector<38xf32> to vector<38x1xf32>
    %cst_10 = arith.constant 3.200000e+01 : f32
    %17 = vector.broadcast %cst_10 : f32 to vector<38x1xf32>
    %18 = arith.divf %16, %17 : vector<38x1xf32>
    %cst_11 = arith.constant 9.99999974E-6 : f32
    %19 = vector.broadcast %cst_11 : f32 to vector<38x1xf32>
    %20 = arith.addf %18, %19 : vector<38x1xf32>
    %21 = math.rsqrt %20 : vector<38x1xf32>
    %22 = vector.broadcast %21 : vector<38x1xf32> to vector<38x32xf32>
    %23 = arith.mulf %13, %22 : vector<38x32xf32>
    %24 = vector.broadcast %5 : vector<1x32xf32> to vector<38x32xf32>
    %25 = arith.mulf %23, %24 : vector<38x32xf32>
    %26 = vector.broadcast %7 : vector<1x32xf32> to vector<38x32xf32>
    %27 = arith.addf %25, %26 : vector<38x32xf32>
    %c0_12 = arith.constant 0 : index
    %c0_13 = arith.constant 0 : index
    %c0_14 = arith.constant 0 : index
    %28 = vector.load %arg11[%c0_12, %c0_13, %c0_14] : memref<1x32x96xf32, #tpu.memory_space<vmem>>, vector<1x32x96xf32>
    %29 = vector.shape_cast %28 : vector<1x32x96xf32> to vector<32x96xf32>
    %cst_15 = arith.constant dense<0.000000e+00> : vector<38x96xf32>
    %30 = tpu.matmul %27, %29, %cst_15 {dimension_numbers = #tpu.dot_dimension_numbers<[1], [0], [0], [1], [0, 0, 1, 1], [], []>} : vector<38x32xf32>, vector<32x96xf32>, vector<38x96xf32> -> vector<38x96xf32>
    %c0_16 = arith.constant 0 : index
    %c0_17 = arith.constant 0 : index
    %c0_18 = arith.constant 0 : index
    %31 = vector.load %arg12[%c0_16, %c0_17, %c0_18] : memref<1x1x96xf32, #tpu.memory_space<vmem>>, vector<1x1x96xf32>
    %32 = vector.shape_cast %31 : vector<1x1x96xf32> to vector<1x96xf32>
    %33 = vector.broadcast %32 : vector<1x96xf32> to vector<38x96xf32>
    %34 = arith.addf %30, %33 : vector<38x96xf32>
    %c0_19 = arith.constant 0 : index
    %c0_20 = arith.constant 0 : index
    %c0_21 = arith.constant 0 : index
    %35 = vector.load %arg13[%c0_19, %c0_20, %c0_21] : memref<1x32x32xf32, #tpu.memory_space<vmem>>, vector<1x32x32xf32>
    %36 = vector.shape_cast %35 : vector<1x32x32xf32> to vector<32x32xf32>
    %cst_22 = arith.constant 0.000000e+00 : f32
    %37 = vector.broadcast %cst_22 : f32 to vector<19x32xf32>
    %38 = vector.extract_strided_slice %34 {offsets = [0, 0], sizes = [19, 8], strides = [1, 1]} : vector<38x96xf32> to vector<19x8xf32>
    %39 = vector.extract_strided_slice %34 {offsets = [0, 32], sizes = [19, 8], strides = [1, 1]} : vector<38x96xf32> to vector<19x8xf32>
    %40 = vector.extract_strided_slice %34 {offsets = [0, 64], sizes = [19, 8], strides = [1, 1]} : vector<38x96xf32> to vector<19x8xf32>
    %cst_23 = arith.constant dense<0.000000e+00> : vector<19x19xf32>
    %41 = tpu.matmul %38, %39, %cst_23 {dimension_numbers = #tpu.dot_dimension_numbers<[1], [1], [0], [0], [0, 0, 1, 0], [], []>} : vector<19x8xf32>, vector<19x8xf32>, vector<19x19xf32> -> vector<19x19xf32>
    %cst_24 = arith.constant 0.353553385 : f32
    %42 = vector.broadcast %cst_24 : f32 to vector<19x19xf32>
    %43 = arith.mulf %41, %42 : vector<19x19xf32>
    %cst_25 = arith.constant dense<0xFF800000> : vector<19xf32>
    %44 = vector.multi_reduction <maximumf>, %43, %cst_25 [1] : vector<19x19xf32> to vector<19xf32>
    %45 = vector.shape_cast %44 : vector<19xf32> to vector<19x1xf32>
    %46 = vector.broadcast %45 : vector<19x1xf32> to vector<19x19xf32>
    %47 = arith.subf %43, %46 : vector<19x19xf32>
    %48 = math.exp %47 : vector<19x19xf32>
    %cst_26 = arith.constant dense<0.000000e+00> : vector<19xf32>
    %49 = vector.multi_reduction <add>, %48, %cst_26 [1] : vector<19x19xf32> to vector<19xf32>
    %50 = vector.shape_cast %49 : vector<19xf32> to vector<19x1xf32>
    %51 = vector.broadcast %50 : vector<19x1xf32> to vector<19x19xf32>
    %52 = arith.divf %48, %51 : vector<19x19xf32>
    %cst_27 = arith.constant dense<0.000000e+00> : vector<19x8xf32>
    %53 = tpu.matmul %52, %40, %cst_27 {dimension_numbers = #tpu.dot_dimension_numbers<[1], [0], [0], [1], [0, 0, 1, 1], [], []>} : vector<19x19xf32>, vector<19x8xf32>, vector<19x8xf32> -> vector<19x8xf32>
    %54 = vector.extract_strided_slice %36 {offsets = [0, 0], sizes = [8, 32], strides = [1, 1]} : vector<32x32xf32> to vector<8x32xf32>
    %cst_28 = arith.constant dense<0.000000e+00> : vector<19x32xf32>
    %55 = tpu.matmul %53, %54, %cst_28 {dimension_numbers = #tpu.dot_dimension_numbers<[1], [0], [0], [1], [0, 0, 1, 1], [], []>} : vector<19x8xf32>, vector<8x32xf32>, vector<19x32xf32> -> vector<19x32xf32>
    %56 = arith.addf %37, %55 : vector<19x32xf32>
    %57 = vector.extract_strided_slice %34 {offsets = [0, 8], sizes = [19, 8], strides = [1, 1]} : vector<38x96xf32> to vector<19x8xf32>
    %58 = vector.extract_strided_slice %34 {offsets = [0, 40], sizes = [19, 8], strides = [1, 1]} : vector<38x96xf32> to vector<19x8xf32>
    %59 = vector.extract_strided_slice %34 {offsets = [0, 72], sizes = [19, 8], strides = [1, 1]} : vector<38x96xf32> to vector<19x8xf32>
    %cst_29 = arith.constant dense<0.000000e+00> : vector<19x19xf32>
    %60 = tpu.matmul %57, %58, %cst_29 {dimension_numbers = #tpu.dot_dimension_numbers<[1], [1], [0], [0], [0, 0, 1, 0], [], []>} : vector<19x8xf32>, vector<19x8xf32>, vector<19x19xf32> -> vector<19x19xf32>
    %cst_30 = arith.constant 0.353553385 : f32
    %61 = vector.broadcast %cst_30 : f32 to vector<19x19xf32>
    %62 = arith.mulf %60, %61 : vector<19x19xf32>
    %cst_31 = arith.constant dense<0xFF800000> : vector<19xf32>
    %63 = vector.multi_reduction <maximumf>, %62, %cst_31 [1] : vector<19x19xf32> to vector<19xf32>
    %64 = vector.shape_cast %63 : vector<19xf32> to vector<19x1xf32>
    %65 = vector.broadcast %64 : vector<19x1xf32> to vector<19x19xf32>
    %66 = arith.subf %62, %65 : vector<19x19xf32>
    %67 = math.exp %66 : vector<19x19xf32>
    %cst_32 = arith.constant dense<0.000000e+00> : vector<19xf32>
    %68 = vector.multi_reduction <add>, %67, %cst_32 [1] : vector<19x19xf32> to vector<19xf32>
    %69 = vector.shape_cast %68 : vector<19xf32> to vector<19x1xf32>
    %70 = vector.broadcast %69 : vector<19x1xf32> to vector<19x19xf32>
    %71 = arith.divf %67, %70 : vector<19x19xf32>
    %cst_33 = arith.constant dense<0.000000e+00> : vector<19x8xf32>
    %72 = tpu.matmul %71, %59, %cst_33 {dimension_numbers = #tpu.dot_dimension_numbers<[1], [0], [0], [1], [0, 0, 1, 1], [], []>} : vector<19x19xf32>, vector<19x8xf32>, vector<19x8xf32> -> vector<19x8xf32>
    %73 = vector.extract_strided_slice %36 {offsets = [8, 0], sizes = [8, 32], strides = [1, 1]} : vector<32x32xf32> to vector<8x32xf32>
    %cst_34 = arith.constant dense<0.000000e+00> : vector<19x32xf32>
    %74 = tpu.matmul %72, %73, %cst_34 {dimension_numbers = #tpu.dot_dimension_numbers<[1], [0], [0], [1], [0, 0, 1, 1], [], []>} : vector<19x8xf32>, vector<8x32xf32>, vector<19x32xf32> -> vector<19x32xf32>
    %75 = arith.addf %56, %74 : vector<19x32xf32>
    %76 = vector.extract_strided_slice %34 {offsets = [0, 16], sizes = [19, 8], strides = [1, 1]} : vector<38x96xf32> to vector<19x8xf32>
    %77 = vector.extract_strided_slice %34 {offsets = [0, 48], sizes = [19, 8], strides = [1, 1]} : vector<38x96xf32> to vector<19x8xf32>
    %78 = vector.extract_strided_slice %34 {offsets = [0, 80], sizes = [19, 8], strides = [1, 1]} : vector<38x96xf32> to vector<19x8xf32>
    %cst_35 = arith.constant dense<0.000000e+00> : vector<19x19xf32>
    %79 = tpu.matmul %76, %77, %cst_35 {dimension_numbers = #tpu.dot_dimension_numbers<[1], [1], [0], [0], [0, 0, 1, 0], [], []>} : vector<19x8xf32>, vector<19x8xf32>, vector<19x19xf32> -> vector<19x19xf32>
    %cst_36 = arith.constant 0.353553385 : f32
    %80 = vector.broadcast %cst_36 : f32 to vector<19x19xf32>
    %81 = arith.mulf %79, %80 : vector<19x19xf32>
    %cst_37 = arith.constant dense<0xFF800000> : vector<19xf32>
    %82 = vector.multi_reduction <maximumf>, %81, %cst_37 [1] : vector<19x19xf32> to vector<19xf32>
    %83 = vector.shape_cast %82 : vector<19xf32> to vector<19x1xf32>
    %84 = vector.broadcast %83 : vector<19x1xf32> to vector<19x19xf32>
    %85 = arith.subf %81, %84 : vector<19x19xf32>
    %86 = math.exp %85 : vector<19x19xf32>
    %cst_38 = arith.constant dense<0.000000e+00> : vector<19xf32>
    %87 = vector.multi_reduction <add>, %86, %cst_38 [1] : vector<19x19xf32> to vector<19xf32>
    %88 = vector.shape_cast %87 : vector<19xf32> to vector<19x1xf32>
    %89 = vector.broadcast %88 : vector<19x1xf32> to vector<19x19xf32>
    %90 = arith.divf %86, %89 : vector<19x19xf32>
    %cst_39 = arith.constant dense<0.000000e+00> : vector<19x8xf32>
    %91 = tpu.matmul %90, %78, %cst_39 {dimension_numbers = #tpu.dot_dimension_numbers<[1], [0], [0], [1], [0, 0, 1, 1], [], []>} : vector<19x19xf32>, vector<19x8xf32>, vector<19x8xf32> -> vector<19x8xf32>
    %92 = vector.extract_strided_slice %36 {offsets = [16, 0], sizes = [8, 32], strides = [1, 1]} : vector<32x32xf32> to vector<8x32xf32>
    %cst_40 = arith.constant dense<0.000000e+00> : vector<19x32xf32>
    %93 = tpu.matmul %91, %92, %cst_40 {dimension_numbers = #tpu.dot_dimension_numbers<[1], [0], [0], [1], [0, 0, 1, 1], [], []>} : vector<19x8xf32>, vector<8x32xf32>, vector<19x32xf32> -> vector<19x32xf32>
    %94 = arith.addf %75, %93 : vector<19x32xf32>
    %95 = vector.extract_strided_slice %34 {offsets = [0, 24], sizes = [19, 8], strides = [1, 1]} : vector<38x96xf32> to vector<19x8xf32>
    %96 = vector.extract_strided_slice %34 {offsets = [0, 56], sizes = [19, 8], strides = [1, 1]} : vector<38x96xf32> to vector<19x8xf32>
    %97 = vector.extract_strided_slice %34 {offsets = [0, 88], sizes = [19, 8], strides = [1, 1]} : vector<38x96xf32> to vector<19x8xf32>
    %cst_41 = arith.constant dense<0.000000e+00> : vector<19x19xf32>
    %98 = tpu.matmul %95, %96, %cst_41 {dimension_numbers = #tpu.dot_dimension_numbers<[1], [1], [0], [0], [0, 0, 1, 0], [], []>} : vector<19x8xf32>, vector<19x8xf32>, vector<19x19xf32> -> vector<19x19xf32>
    %cst_42 = arith.constant 0.353553385 : f32
    %99 = vector.broadcast %cst_42 : f32 to vector<19x19xf32>
    %100 = arith.mulf %98, %99 : vector<19x19xf32>
    %cst_43 = arith.constant dense<0xFF800000> : vector<19xf32>
    %101 = vector.multi_reduction <maximumf>, %100, %cst_43 [1] : vector<19x19xf32> to vector<19xf32>
    %102 = vector.shape_cast %101 : vector<19xf32> to vector<19x1xf32>
    %103 = vector.broadcast %102 : vector<19x1xf32> to vector<19x19xf32>
    %104 = arith.subf %100, %103 : vector<19x19xf32>
    %105 = math.exp %104 : vector<19x19xf32>
    %cst_44 = arith.constant dense<0.000000e+00> : vector<19xf32>
    %106 = vector.multi_reduction <add>, %105, %cst_44 [1] : vector<19x19xf32> to vector<19xf32>
    %107 = vector.shape_cast %106 : vector<19xf32> to vector<19x1xf32>
    %108 = vector.broadcast %107 : vector<19x1xf32> to vector<19x19xf32>
    %109 = arith.divf %105, %108 : vector<19x19xf32>
    %cst_45 = arith.constant dense<0.000000e+00> : vector<19x8xf32>
    %110 = tpu.matmul %109, %97, %cst_45 {dimension_numbers = #tpu.dot_dimension_numbers<[1], [0], [0], [1], [0, 0, 1, 1], [], []>} : vector<19x19xf32>, vector<19x8xf32>, vector<19x8xf32> -> vector<19x8xf32>
    %111 = vector.extract_strided_slice %36 {offsets = [24, 0], sizes = [8, 32], strides = [1, 1]} : vector<32x32xf32> to vector<8x32xf32>
    %cst_46 = arith.constant dense<0.000000e+00> : vector<19x32xf32>
    %112 = tpu.matmul %110, %111, %cst_46 {dimension_numbers = #tpu.dot_dimension_numbers<[1], [0], [0], [1], [0, 0, 1, 1], [], []>} : vector<19x8xf32>, vector<8x32xf32>, vector<19x32xf32> -> vector<19x32xf32>
    %113 = arith.addf %94, %112 : vector<19x32xf32>
    %114 = vector.extract_strided_slice %3 {offsets = [0, 0], sizes = [19, 32], strides = [1, 1]} : vector<38x32xf32> to vector<19x32xf32>
    %115 = arith.addf %114, %113 : vector<19x32xf32>
    %c0_47 = arith.constant 0 : index
    %c0_48 = arith.constant 0 : index
    %c0_49 = arith.constant 0 : index
    %116 = vector.load %arg14[%c0_47, %c0_48, %c0_49] : memref<1x1x32xf32, #tpu.memory_space<vmem>>, vector<1x1x32xf32>
    %117 = vector.shape_cast %116 : vector<1x1x32xf32> to vector<1x32xf32>
    %118 = vector.broadcast %117 : vector<1x32xf32> to vector<19x32xf32>
    %119 = arith.addf %115, %118 : vector<19x32xf32>
    %c0_50 = arith.constant 0 : index
    %c0_51 = arith.constant 0 : index
    %120 = vector.load %arg24[%c0_50, %c0_51] : memref<38x32xf32, #tpu.memory_space<vmem>>, vector<19x32xf32>
    tpu.vector_store %arg24[%c0_50, %c0_51], %119 {strides = array<i32>} : memref<38x32xf32, #tpu.memory_space<vmem>>, vector<19x32xf32>,
    %cst_52 = arith.constant 0.000000e+00 : f32
    %121 = vector.broadcast %cst_52 : f32 to vector<19x32xf32>
    %122 = vector.extract_strided_slice %34 {offsets = [19, 0], sizes = [19, 8], strides = [1, 1]} : vector<38x96xf32> to vector<19x8xf32>
    %123 = vector.extract_strided_slice %34 {offsets = [19, 32], sizes = [19, 8], strides = [1, 1]} : vector<38x96xf32> to vector<19x8xf32>
    %124 = vector.extract_strided_slice %34 {offsets = [19, 64], sizes = [19, 8], strides = [1, 1]} : vector<38x96xf32> to vector<19x8xf32>
    %cst_53 = arith.constant dense<0.000000e+00> : vector<19x19xf32>
    %125 = tpu.matmul %122, %123, %cst_53 {dimension_numbers = #tpu.dot_dimension_numbers<[1], [1], [0], [0], [0, 0, 1, 0], [], []>} : vector<19x8xf32>, vector<19x8xf32>, vector<19x19xf32> -> vector<19x19xf32>
    %cst_54 = arith.constant 0.353553385 : f32
    %126 = vector.broadcast %cst_54 : f32 to vector<19x19xf32>
    %127 = arith.mulf %125, %126 : vector<19x19xf32>
    %cst_55 = arith.constant dense<0xFF800000> : vector<19xf32>
    %128 = vector.multi_reduction <maximumf>, %127, %cst_55 [1] : vector<19x19xf32> to vector<19xf32>
    %129 = vector.shape_cast %128 : vector<19xf32> to vector<19x1xf32>
    %130 = vector.broadcast %129 : vector<19x1xf32> to vector<19x19xf32>
    %131 = arith.subf %127, %130 : vector<19x19xf32>
    %132 = math.exp %131 : vector<19x19xf32>
    %cst_56 = arith.constant dense<0.000000e+00> : vector<19xf32>
    %133 = vector.multi_reduction <add>, %132, %cst_56 [1] : vector<19x19xf32> to vector<19xf32>
    %134 = vector.shape_cast %133 : vector<19xf32> to vector<19x1xf32>
    %135 = vector.broadcast %134 : vector<19x1xf32> to vector<19x19xf32>
    %136 = arith.divf %132, %135 : vector<19x19xf32>
    %cst_57 = arith.constant dense<0.000000e+00> : vector<19x8xf32>
    %137 = tpu.matmul %136, %124, %cst_57 {dimension_numbers = #tpu.dot_dimension_numbers<[1], [0], [0], [1], [0, 0, 1, 1], [], []>} : vector<19x19xf32>, vector<19x8xf32>, vector<19x8xf32> -> vector<19x8xf32>
    %138 = vector.extract_strided_slice %36 {offsets = [0, 0], sizes = [8, 32], strides = [1, 1]} : vector<32x32xf32> to vector<8x32xf32>
    %cst_58 = arith.constant dense<0.000000e+00> : vector<19x32xf32>
    %139 = tpu.matmul %137, %138, %cst_58 {dimension_numbers = #tpu.dot_dimension_numbers<[1], [0], [0], [1], [0, 0, 1, 1], [], []>} : vector<19x8xf32>, vector<8x32xf32>, vector<19x32xf32> -> vector<19x32xf32>
    %140 = arith.addf %121, %139 : vector<19x32xf32>
    %141 = vector.extract_strided_slice %34 {offsets = [19, 8], sizes = [19, 8], strides = [1, 1]} : vector<38x96xf32> to vector<19x8xf32>
    %142 = vector.extract_strided_slice %34 {offsets = [19, 40], sizes = [19, 8], strides = [1, 1]} : vector<38x96xf32> to vector<19x8xf32>
    %143 = vector.extract_strided_slice %34 {offsets = [19, 72], sizes = [19, 8], strides = [1, 1]} : vector<38x96xf32> to vector<19x8xf32>
    %cst_59 = arith.constant dense<0.000000e+00> : vector<19x19xf32>
    %144 = tpu.matmul %141, %142, %cst_59 {dimension_numbers = #tpu.dot_dimension_numbers<[1], [1], [0], [0], [0, 0, 1, 0], [], []>} : vector<19x8xf32>, vector<19x8xf32>, vector<19x19xf32> -> vector<19x19xf32>
    %cst_60 = arith.constant 0.353553385 : f32
    %145 = vector.broadcast %cst_60 : f32 to vector<19x19xf32>
    %146 = arith.mulf %144, %145 : vector<19x19xf32>
    %cst_61 = arith.constant dense<0xFF800000> : vector<19xf32>
    %147 = vector.multi_reduction <maximumf>, %146, %cst_61 [1] : vector<19x19xf32> to vector<19xf32>
    %148 = vector.shape_cast %147 : vector<19xf32> to vector<19x1xf32>
    %149 = vector.broadcast %148 : vector<19x1xf32> to vector<19x19xf32>
    %150 = arith.subf %146, %149 : vector<19x19xf32>
    %151 = math.exp %150 : vector<19x19xf32>
    %cst_62 = arith.constant dense<0.000000e+00> : vector<19xf32>
    %152 = vector.multi_reduction <add>, %151, %cst_62 [1] : vector<19x19xf32> to vector<19xf32>
    %153 = vector.shape_cast %152 : vector<19xf32> to vector<19x1xf32>
    %154 = vector.broadcast %153 : vector<19x1xf32> to vector<19x19xf32>
    %155 = arith.divf %151, %154 : vector<19x19xf32>
    %cst_63 = arith.constant dense<0.000000e+00> : vector<19x8xf32>
    %156 = tpu.matmul %155, %143, %cst_63 {dimension_numbers = #tpu.dot_dimension_numbers<[1], [0], [0], [1], [0, 0, 1, 1], [], []>} : vector<19x19xf32>, vector<19x8xf32>, vector<19x8xf32> -> vector<19x8xf32>
    %157 = vector.extract_strided_slice %36 {offsets = [8, 0], sizes = [8, 32], strides = [1, 1]} : vector<32x32xf32> to vector<8x32xf32>
    %cst_64 = arith.constant dense<0.000000e+00> : vector<19x32xf32>
    %158 = tpu.matmul %156, %157, %cst_64 {dimension_numbers = #tpu.dot_dimension_numbers<[1], [0], [0], [1], [0, 0, 1, 1], [], []>} : vector<19x8xf32>, vector<8x32xf32>, vector<19x32xf32> -> vector<19x32xf32>
    %159 = arith.addf %140, %158 : vector<19x32xf32>
    %160 = vector.extract_strided_slice %34 {offsets = [19, 16], sizes = [19, 8], strides = [1, 1]} : vector<38x96xf32> to vector<19x8xf32>
    %161 = vector.extract_strided_slice %34 {offsets = [19, 48], sizes = [19, 8], strides = [1, 1]} : vector<38x96xf32> to vector<19x8xf32>
    %162 = vector.extract_strided_slice %34 {offsets = [19, 80], sizes = [19, 8], strides = [1, 1]} : vector<38x96xf32> to vector<19x8xf32>
    %cst_65 = arith.constant dense<0.000000e+00> : vector<19x19xf32>
    %163 = tpu.matmul %160, %161, %cst_65 {dimension_numbers = #tpu.dot_dimension_numbers<[1], [1], [0], [0], [0, 0, 1, 0], [], []>} : vector<19x8xf32>, vector<19x8xf32>, vector<19x19xf32> -> vector<19x19xf32>
    %cst_66 = arith.constant 0.353553385 : f32
    %164 = vector.broadcast %cst_66 : f32 to vector<19x19xf32>
    %165 = arith.mulf %163, %164 : vector<19x19xf32>
    %cst_67 = arith.constant dense<0xFF800000> : vector<19xf32>
    %166 = vector.multi_reduction <maximumf>, %165, %cst_67 [1] : vector<19x19xf32> to vector<19xf32>
    %167 = vector.shape_cast %166 : vector<19xf32> to vector<19x1xf32>
    %168 = vector.broadcast %167 : vector<19x1xf32> to vector<19x19xf32>
    %169 = arith.subf %165, %168 : vector<19x19xf32>
    %170 = math.exp %169 : vector<19x19xf32>
    %cst_68 = arith.constant dense<0.000000e+00> : vector<19xf32>
    %171 = vector.multi_reduction <add>, %170, %cst_68 [1] : vector<19x19xf32> to vector<19xf32>
    %172 = vector.shape_cast %171 : vector<19xf32> to vector<19x1xf32>
    %173 = vector.broadcast %172 : vector<19x1xf32> to vector<19x19xf32>
    %174 = arith.divf %170, %173 : vector<19x19xf32>
    %cst_69 = arith.constant dense<0.000000e+00> : vector<19x8xf32>
    %175 = tpu.matmul %174, %162, %cst_69 {dimension_numbers = #tpu.dot_dimension_numbers<[1], [0], [0], [1], [0, 0, 1, 1], [], []>} : vector<19x19xf32>, vector<19x8xf32>, vector<19x8xf32> -> vector<19x8xf32>
    %176 = vector.extract_strided_slice %36 {offsets = [16, 0], sizes = [8, 32], strides = [1, 1]} : vector<32x32xf32> to vector<8x32xf32>
    %cst_70 = arith.constant dense<0.000000e+00> : vector<19x32xf32>
    %177 = tpu.matmul %175, %176, %cst_70 {dimension_numbers = #tpu.dot_dimension_numbers<[1], [0], [0], [1], [0, 0, 1, 1], [], []>} : vector<19x8xf32>, vector<8x32xf32>, vector<19x32xf32> -> vector<19x32xf32>
    %178 = arith.addf %159, %177 : vector<19x32xf32>
    %179 = vector.extract_strided_slice %34 {offsets = [19, 24], sizes = [19, 8], strides = [1, 1]} : vector<38x96xf32> to vector<19x8xf32>
    %180 = vector.extract_strided_slice %34 {offsets = [19, 56], sizes = [19, 8], strides = [1, 1]} : vector<38x96xf32> to vector<19x8xf32>
    %181 = vector.extract_strided_slice %34 {offsets = [19, 88], sizes = [19, 8], strides = [1, 1]} : vector<38x96xf32> to vector<19x8xf32>
    %cst_71 = arith.constant dense<0.000000e+00> : vector<19x19xf32>
    %182 = tpu.matmul %179, %180, %cst_71 {dimension_numbers = #tpu.dot_dimension_numbers<[1], [1], [0], [0], [0, 0, 1, 0], [], []>} : vector<19x8xf32>, vector<19x8xf32>, vector<19x19xf32> -> vector<19x19xf32>
    %cst_72 = arith.constant 0.353553385 : f32
    %183 = vector.broadcast %cst_72 : f32 to vector<19x19xf32>
    %184 = arith.mulf %182, %183 : vector<19x19xf32>
    %cst_73 = arith.constant dense<0xFF800000> : vector<19xf32>
    %185 = vector.multi_reduction <maximumf>, %184, %cst_73 [1] : vector<19x19xf32> to vector<19xf32>
    %186 = vector.shape_cast %185 : vector<19xf32> to vector<19x1xf32>
    %187 = vector.broadcast %186 : vector<19x1xf32> to vector<19x19xf32>
    %188 = arith.subf %184, %187 : vector<19x19xf32>
    %189 = math.exp %188 : vector<19x19xf32>
    %cst_74 = arith.constant dense<0.000000e+00> : vector<19xf32>
    %190 = vector.multi_reduction <add>, %189, %cst_74 [1] : vector<19x19xf32> to vector<19xf32>
    %191 = vector.shape_cast %190 : vector<19xf32> to vector<19x1xf32>
    %192 = vector.broadcast %191 : vector<19x1xf32> to vector<19x19xf32>
    %193 = arith.divf %189, %192 : vector<19x19xf32>
    %cst_75 = arith.constant dense<0.000000e+00> : vector<19x8xf32>
    %194 = tpu.matmul %193, %181, %cst_75 {dimension_numbers = #tpu.dot_dimension_numbers<[1], [0], [0], [1], [0, 0, 1, 1], [], []>} : vector<19x19xf32>, vector<19x8xf32>, vector<19x8xf32> -> vector<19x8xf32>
    %195 = vector.extract_strided_slice %36 {offsets = [24, 0], sizes = [8, 32], strides = [1, 1]} : vector<32x32xf32> to vector<8x32xf32>
    %cst_76 = arith.constant dense<0.000000e+00> : vector<19x32xf32>
    %196 = tpu.matmul %194, %195, %cst_76 {dimension_numbers = #tpu.dot_dimension_numbers<[1], [0], [0], [1], [0, 0, 1, 1], [], []>} : vector<19x8xf32>, vector<8x32xf32>, vector<19x32xf32> -> vector<19x32xf32>
    %197 = arith.addf %178, %196 : vector<19x32xf32>
    %198 = vector.extract_strided_slice %3 {offsets = [19, 0], sizes = [19, 32], strides = [1, 1]} : vector<38x32xf32> to vector<19x32xf32>
    %199 = arith.addf %198, %197 : vector<19x32xf32>
    %c0_77 = arith.constant 0 : index
    %c0_78 = arith.constant 0 : index
    %c0_79 = arith.constant 0 : index
    %200 = vector.load %arg14[%c0_77, %c0_78, %c0_79] : memref<1x1x32xf32, #tpu.memory_space<vmem>>, vector<1x1x32xf32>
    %201 = vector.shape_cast %200 : vector<1x1x32xf32> to vector<1x32xf32>
    %202 = vector.broadcast %201 : vector<1x32xf32> to vector<19x32xf32>
    %203 = arith.addf %199, %202 : vector<19x32xf32>
    %c19 = arith.constant 19 : index
    %c0_80 = arith.constant 0 : index
    %204 = vector.load %arg24[%c19, %c0_80] : memref<38x32xf32, #tpu.memory_space<vmem>>, vector<19x32xf32>
    tpu.vector_store %arg24[%c19, %c0_80], %203 {strides = array<i32>} : memref<38x32xf32, #tpu.memory_space<vmem>>, vector<19x32xf32>,
    %c0_81 = arith.constant 0 : index
    %c0_82 = arith.constant 0 : index
    %205 = vector.load %arg24[%c0_81, %c0_82] : memref<38x32xf32, #tpu.memory_space<vmem>>, vector<38x32xf32>
    %c0_83 = arith.constant 0 : index
    %c0_84 = arith.constant 0 : index
    %c0_85 = arith.constant 0 : index
    %206 = vector.load %arg15[%c0_83, %c0_84, %c0_85] : memref<1x1x32xf32, #tpu.memory_space<vmem>>, vector<1x1x32xf32>
    %207 = vector.shape_cast %206 : vector<1x1x32xf32> to vector<1x32xf32>
    %c0_86 = arith.constant 0 : index
    %c0_87 = arith.constant 0 : index
    %c0_88 = arith.constant 0 : index
    %208 = vector.load %arg16[%c0_86, %c0_87, %c0_88] : memref<1x1x32xf32, #tpu.memory_space<vmem>>, vector<1x1x32xf32>
    %209 = vector.shape_cast %208 : vector<1x1x32xf32> to vector<1x32xf32>
    %cst_89 = arith.constant dense<0.000000e+00> : vector<38xf32>
    %210 = vector.multi_reduction <add>, %205, %cst_89 [1] : vector<38x32xf32> to vector<38xf32>
    %211 = vector.shape_cast %210 : vector<38xf32> to vector<38x1xf32>
    %cst_90 = arith.constant 3.200000e+01 : f32
    %212 = vector.broadcast %cst_90 : f32 to vector<38x1xf32>
    %213 = arith.divf %211, %212 : vector<38x1xf32>
    %214 = vector.broadcast %213 : vector<38x1xf32> to vector<38x32xf32>
    %215 = arith.subf %205, %214 : vector<38x32xf32>
    %216 = arith.mulf %215, %215 : vector<38x32xf32>
    %cst_91 = arith.constant dense<0.000000e+00> : vector<38xf32>
    %217 = vector.multi_reduction <add>, %216, %cst_91 [1] : vector<38x32xf32> to vector<38xf32>
    %218 = vector.shape_cast %217 : vector<38xf32> to vector<38x1xf32>
    %cst_92 = arith.constant 3.200000e+01 : f32
    %219 = vector.broadcast %cst_92 : f32 to vector<38x1xf32>
    %220 = arith.divf %218, %219 : vector<38x1xf32>
    %cst_93 = arith.constant 9.99999974E-6 : f32
    %221 = vector.broadcast %cst_93 : f32 to vector<38x1xf32>
    %222 = arith.addf %220, %221 : vector<38x1xf32>
    %223 = math.rsqrt %222 : vector<38x1xf32>
    %224 = vector.broadcast %223 : vector<38x1xf32> to vector<38x32xf32>
    %225 = arith.mulf %215, %224 : vector<38x32xf32>
    %226 = vector.broadcast %207 : vector<1x32xf32> to vector<38x32xf32>
    %227 = arith.mulf %225, %226 : vector<38x32xf32>
    %228 = vector.broadcast %209 : vector<1x32xf32> to vector<38x32xf32>
    %229 = arith.addf %227, %228 : vector<38x32xf32>
    %c0_94 = arith.constant 0 : index
    %c0_95 = arith.constant 0 : index
    %c0_96 = arith.constant 0 : index
    %230 = vector.load %arg17[%c0_94, %c0_95, %c0_96] : memref<1x32x128xf32, #tpu.memory_space<vmem>>, vector<1x32x128xf32>
    %231 = vector.shape_cast %230 : vector<1x32x128xf32> to vector<32x128xf32>
    %cst_97 = arith.constant dense<0.000000e+00> : vector<38x128xf32>
    %232 = tpu.matmul %229, %231, %cst_97 {dimension_numbers = #tpu.dot_dimension_numbers<[1], [0], [0], [1], [0, 0, 1, 1], [], []>} : vector<38x32xf32>, vector<32x128xf32>, vector<38x128xf32> -> vector<38x128xf32>
    %c0_98 = arith.constant 0 : index
    %c0_99 = arith.constant 0 : index
    %c0_100 = arith.constant 0 : index
    %233 = vector.load %arg18[%c0_98, %c0_99, %c0_100] : memref<1x1x128xf32, #tpu.memory_space<vmem>>, vector<1x1x128xf32>
    %234 = vector.shape_cast %233 : vector<1x1x128xf32> to vector<1x128xf32>
    %235 = vector.broadcast %234 : vector<1x128xf32> to vector<38x128xf32>
    %236 = arith.addf %232, %235 : vector<38x128xf32>
    %237 = arith.mulf %236, %236 : vector<38x128xf32>
    %238 = arith.mulf %236, %237 : vector<38x128xf32>
    %cst_101 = arith.constant 4.471500e-02 : f32
    %239 = vector.broadcast %cst_101 : f32 to vector<38x128xf32>
    %240 = arith.mulf %239, %238 : vector<38x128xf32>
    %241 = arith.addf %236, %240 : vector<38x128xf32>
    %cst_102 = arith.constant 0.797884583 : f32
    %242 = vector.broadcast %cst_102 : f32 to vector<38x128xf32>
    %243 = arith.mulf %242, %241 : vector<38x128xf32>
    %244 = math.tanh %243 : vector<38x128xf32>
    %cst_103 = arith.constant 1.000000e+00 : f32
    %245 = vector.broadcast %cst_103 : f32 to vector<38x128xf32>
    %246 = arith.addf %245, %244 : vector<38x128xf32>
    %cst_104 = arith.constant 5.000000e-01 : f32
    %247 = vector.broadcast %cst_104 : f32 to vector<38x128xf32>
    %248 = arith.mulf %247, %246 : vector<38x128xf32>
    %249 = arith.mulf %236, %248 : vector<38x128xf32>
    %c0_105 = arith.constant 0 : index
    %c0_106 = arith.constant 0 : index
    %c0_107 = arith.constant 0 : index
    %250 = vector.load %arg19[%c0_105, %c0_106, %c0_107] : memref<1x128x32xf32, #tpu.memory_space<vmem>>, vector<1x128x32xf32>
    %251 = vector.shape_cast %250 : vector<1x128x32xf32> to vector<128x32xf32>
    %cst_108 = arith.constant dense<0.000000e+00> : vector<38x32xf32>
    %252 = tpu.matmul %249, %251, %cst_108 {dimension_numbers = #tpu.dot_dimension_numbers<[1], [0], [0], [1], [0, 0, 1, 1], [], []>} : vector<38x128xf32>, vector<128x32xf32>, vector<38x32xf32> -> vector<38x32xf32>
    %c0_109 = arith.constant 0 : index
    %c0_110 = arith.constant 0 : index
    %c0_111 = arith.constant 0 : index
    %253 = vector.load %arg20[%c0_109, %c0_110, %c0_111] : memref<1x1x32xf32, #tpu.memory_space<vmem>>, vector<1x1x32xf32>
    %254 = vector.shape_cast %253 : vector<1x1x32xf32> to vector<1x32xf32>
    %255 = vector.broadcast %254 : vector<1x32xf32> to vector<38x32xf32>
    %256 = arith.addf %252, %255 : vector<38x32xf32>
    %257 = arith.addf %205, %256 : vector<38x32xf32>
    %c0_112 = arith.constant 0 : index
    %c0_113 = arith.constant 0 : index
    %258 = vector.load %arg24[%c0_112, %c0_113] : memref<38x32xf32, #tpu.memory_space<vmem>>, vector<38x32xf32>
    tpu.vector_store %arg24[%c0_112, %c0_113], %257 {strides = array<i32>} : memref<38x32xf32, #tpu.memory_space<vmem>>, vector<38x32xf32>,
    %c1_i32 = arith.constant 1 : i32
    %259 = arith.cmpi eq, %arg1, %c1_i32 : i32
    %260 = arith.extui %259 : i1 to i32
    %c0_i32_114 = arith.constant 0 : i32
    %261 = arith.cmpi ne, %260, %c0_i32_114 : i32
    scf.if %261 {
      %c0_115 = arith.constant 0 : index
      %c0_116 = arith.constant 0 : index
      %262 = vector.load %arg21[%c0_115, %c0_116] : memref<1x32xf32, #tpu.memory_space<vmem>>, vector<1x32xf32>
      %c0_117 = arith.constant 0 : index
      %c0_118 = arith.constant 0 : index
      %263 = vector.load %arg22[%c0_117, %c0_118] : memref<1x32xf32, #tpu.memory_space<vmem>>, vector<1x32xf32>
      %cst_119 = arith.constant dense<0.000000e+00> : vector<38xf32>
      %264 = vector.multi_reduction <add>, %257, %cst_119 [1] : vector<38x32xf32> to vector<38xf32>
      %265 = vector.shape_cast %264 : vector<38xf32> to vector<38x1xf32>
      %cst_120 = arith.constant 3.200000e+01 : f32
      %266 = vector.broadcast %cst_120 : f32 to vector<38x1xf32>
      %267 = arith.divf %265, %266 : vector<38x1xf32>
      %268 = vector.broadcast %267 : vector<38x1xf32> to vector<38x32xf32>
      %269 = arith.subf %257, %268 : vector<38x32xf32>
      %270 = arith.mulf %269, %269 : vector<38x32xf32>
      %cst_121 = arith.constant dense<0.000000e+00> : vector<38xf32>
      %271 = vector.multi_reduction <add>, %270, %cst_121 [1] : vector<38x32xf32> to vector<38xf32>
      %272 = vector.shape_cast %271 : vector<38xf32> to vector<38x1xf32>
      %cst_122 = arith.constant 3.200000e+01 : f32
      %273 = vector.broadcast %cst_122 : f32 to vector<38x1xf32>
      %274 = arith.divf %272, %273 : vector<38x1xf32>
      %cst_123 = arith.constant 9.99999974E-6 : f32
      %275 = vector.broadcast %cst_123 : f32 to vector<38x1xf32>
      %276 = arith.addf %274, %275 : vector<38x1xf32>
      %277 = math.rsqrt %276 : vector<38x1xf32>
      %278 = vector.broadcast %277 : vector<38x1xf32> to vector<38x32xf32>
      %279 = arith.mulf %269, %278 : vector<38x32xf32>
      %280 = vector.broadcast %262 : vector<1x32xf32> to vector<38x32xf32>
      %281 = arith.mulf %279, %280 : vector<38x32xf32>
      %282 = vector.broadcast %263 : vector<1x32xf32> to vector<38x32xf32>
      %283 = arith.addf %281, %282 : vector<38x32xf32>
      %284 = vector.extract_strided_slice %283 {offsets = [0, 0], sizes = [19, 32], strides = [1, 1]} : vector<38x32xf32> to vector<19x32xf32>
      %c0_124 = arith.constant 0 : index
      %c0_125 = arith.constant 0 : index
      %c0_126 = arith.constant 0 : index
      %285 = vector.load %arg23[%c0_124, %c0_125, %c0_126] : memref<2x19x32xf32, #tpu.memory_space<vmem>>, vector<1x19x32xf32>
      %286 = vector.shape_cast %285 : vector<1x19x32xf32> to vector<19x32xf32>
      %287 = vector.shape_cast %284 : vector<19x32xf32> to vector<1x19x32xf32>
      tpu.vector_store %arg23[%c0_124, %c0_125, %c0_126], %287 {strides = array<i32>} : memref<2x19x32xf32, #tpu.memory_space<vmem>>, vector<1x19x32xf32>,
      %288 = vector.extract_strided_slice %283 {offsets = [19, 0], sizes = [19, 32], strides = [1, 1]} : vector<38x32xf32> to vector<19x32xf32>
      %c1 = arith.constant 1 : index
      %c0_127 = arith.constant 0 : index
      %c0_128 = arith.constant 0 : index
      %289 = vector.load %arg23[%c1, %c0_127, %c0_128] : memref<2x19x32xf32, #tpu.memory_space<vmem>>, vector<1x19x32xf32>
      %290 = vector.shape_cast %289 : vector<1x19x32xf32> to vector<19x32xf32>
      %291 = vector.shape_cast %288 : vector<19x32xf32> to vector<1x19x32xf32>
      tpu.vector_store %arg23[%c1, %c0_127, %c0_128], %291 {strides = array<i32>} : memref<2x19x32xf32, #tpu.memory_space<vmem>>, vector<1x19x32xf32>,
    } else {
    }
    return
  }
  func.func @transform_0(%arg0: i32, %arg1: i32) -> (i32, i32, i32) {
    %c0_i32 = arith.constant 0 : i32
    %c0_i32_0 = arith.constant 0 : i32
    %c0_i32_1 = arith.constant 0 : i32
    return %arg0, %c0_i32, %c0_i32_0 : i32, i32, i32
  }
  func.func @transform_1(%arg0: i32, %arg1: i32) -> (i32, i32, i32) {
    %c0_i32 = arith.constant 0 : i32
    %c0_i32_0 = arith.constant 0 : i32
    %c0_i32_1 = arith.constant 0 : i32
    return %arg0, %c0_i32, %c0_i32_0 : i32, i32, i32
  }
  func.func @transform_2(%arg0: i32, %arg1: i32) -> (i32, i32) {
    %c0_i32 = arith.constant 0 : i32
    %c0_i32_0 = arith.constant 0 : i32
    %c0_i32_1 = arith.constant 0 : i32
    return %c0_i32, %c0_i32_0 : i32, i32
  }
  func.func @transform_3(%arg0: i32, %arg1: i32) -> (i32, i32) {
    %c0_i32 = arith.constant 0 : i32
    %c0_i32_0 = arith.constant 0 : i32
    %c0_i32_1 = arith.constant 0 : i32
    return %c0_i32, %c0_i32_0 : i32, i32
  }
  func.func @transform_4(%arg0: i32, %arg1: i32) -> (i32, i32) {
    %c0_i32 = arith.constant 0 : i32
    %c0_i32_0 = arith.constant 0 : i32
    %c0_i32_1 = arith.constant 0 : i32
    return %c0_i32, %c0_i32_0 : i32, i32
  }
  func.func @transform_5(%arg0: i32, %arg1: i32) -> (i32, i32) {
    %c0_i32 = arith.constant 0 : i32
    %c0_i32_0 = arith.constant 0 : i32
    %c0_i32_1 = arith.constant 0 : i32
    return %c0_i32, %c0_i32_0 : i32, i32
  }
  func.func @transform_6(%arg0: i32, %arg1: i32) -> (i32, i32) {
    %c0_i32 = arith.constant 0 : i32
    %c0_i32_0 = arith.constant 0 : i32
    %c0_i32_1 = arith.constant 0 : i32
    return %c0_i32, %c0_i32_0 : i32, i32
  }
  func.func @transform_7(%arg0: i32, %arg1: i32) -> (i32, i32, i32) {
    %c0_i32 = arith.constant 0 : i32
    %c0_i32_0 = arith.constant 0 : i32
    %c0_i32_1 = arith.constant 0 : i32
    return %arg1, %c0_i32, %c0_i32_0 : i32, i32, i32
  }
  func.func @transform_8(%arg0: i32, %arg1: i32) -> (i32, i32, i32) {
    %c0_i32 = arith.constant 0 : i32
    %c0_i32_0 = arith.constant 0 : i32
    %c0_i32_1 = arith.constant 0 : i32
    return %arg1, %c0_i32, %c0_i32_0 : i32, i32, i32
  }
  func.func @transform_9(%arg0: i32, %arg1: i32) -> (i32, i32, i32) {
    %c0_i32 = arith.constant 0 : i32
    %c0_i32_0 = arith.constant 0 : i32
    %c0_i32_1 = arith.constant 0 : i32
    return %arg1, %c0_i32, %c0_i32_0 : i32, i32, i32
  }
  func.func @transform_10(%arg0: i32, %arg1: i32) -> (i32, i32, i32) {
    %c0_i32 = arith.constant 0 : i32
    %c0_i32_0 = arith.constant 0 : i32
    %c0_i32_1 = arith.constant 0 : i32
    return %arg1, %c0_i32, %c0_i32_0 : i32, i32, i32
  }
  func.func @transform_11(%arg0: i32, %arg1: i32) -> (i32, i32, i32) {
    %c0_i32 = arith.constant 0 : i32
    %c0_i32_0 = arith.constant 0 : i32
    %c0_i32_1 = arith.constant 0 : i32
    return %arg1, %c0_i32, %c0_i32_0 : i32, i32, i32
  }
  func.func @transform_12(%arg0: i32, %arg1: i32) -> (i32, i32, i32) {
    %c0_i32 = arith.constant 0 : i32
    %c0_i32_0 = arith.constant 0 : i32
    %c0_i32_1 = arith.constant 0 : i32
    return %arg1, %c0_i32, %c0_i32_0 : i32, i32, i32
  }
  func.func @transform_13(%arg0: i32, %arg1: i32) -> (i32, i32, i32) {
    %c0_i32 = arith.constant 0 : i32
    %c0_i32_0 = arith.constant 0 : i32
    %c0_i32_1 = arith.constant 0 : i32
    return %arg1, %c0_i32, %c0_i32_0 : i32, i32, i32
  }
  func.func @transform_14(%arg0: i32, %arg1: i32) -> (i32, i32, i32) {
    %c0_i32 = arith.constant 0 : i32
    %c0_i32_0 = arith.constant 0 : i32
    %c0_i32_1 = arith.constant 0 : i32
    return %arg1, %c0_i32, %c0_i32_0 : i32, i32, i32
  }
  func.func @transform_15(%arg0: i32, %arg1: i32) -> (i32, i32, i32) {
    %c0_i32 = arith.constant 0 : i32
    %c0_i32_0 = arith.constant 0 : i32
    %c0_i32_1 = arith.constant 0 : i32
    return %arg1, %c0_i32, %c0_i32_0 : i32, i32, i32
  }
  func.func @transform_16(%arg0: i32, %arg1: i32) -> (i32, i32, i32) {
    %c0_i32 = arith.constant 0 : i32
    %c0_i32_0 = arith.constant 0 : i32
    %c0_i32_1 = arith.constant 0 : i32
    return %arg1, %c0_i32, %c0_i32_0 : i32, i32, i32
  }
  func.func @transform_17(%arg0: i32, %arg1: i32) -> (i32, i32, i32) {
    %c0_i32 = arith.constant 0 : i32
    %c0_i32_0 = arith.constant 0 : i32
    %c0_i32_1 = arith.constant 0 : i32
    return %arg1, %c0_i32, %c0_i32_0 : i32, i32, i32
  }
  func.func @transform_18(%arg0: i32, %arg1: i32) -> (i32, i32, i32) {
    %c0_i32 = arith.constant 0 : i32
    %c0_i32_0 = arith.constant 0 : i32
    %c0_i32_1 = arith.constant 0 : i32
    return %arg1, %c0_i32, %c0_i32_0 : i32, i32, i32
  }
  func.func @transform_19(%arg0: i32, %arg1: i32) -> (i32, i32) {
    %c0_i32 = arith.constant 0 : i32
    %c0_i32_0 = arith.constant 0 : i32
    %c0_i32_1 = arith.constant 0 : i32
    return %c0_i32, %c0_i32_0 : i32, i32
  }
  func.func @transform_20(%arg0: i32, %arg1: i32) -> (i32, i32) {
    %c0_i32 = arith.constant 0 : i32
    %c0_i32_0 = arith.constant 0 : i32
    %c0_i32_1 = arith.constant 0 : i32
    return %c0_i32, %c0_i32_0 : i32, i32
  }
  func.func @transform_21(%arg0: i32, %arg1: i32) -> (i32, i32, i32) {
    %c0_i32 = arith.constant 0 : i32
    %c0_i32_0 = arith.constant 0 : i32
    %c0_i32_1 = arith.constant 0 : i32
    return %arg0, %c0_i32, %c0_i32_0 : i32, i32, i32
  }
}

</mosaic_0001>

<bundles_post_ra>
// kernel: tpu_custom_call.1
= control target key start
LH: loop header
LB: loop body
LE: loop exit
PB: predicated region body
PF: predicated region fallthrough
CT: control target
= control target key end

     0   :  { %s5663_s25 = smov 0   ;;  %s5665_s26 = smov 0   ;;  %s6674_s0 = inlined_call_operand.vmem [shape: f32[2,8,32], index: 0, kind: input, shape index: {}]   ;;  %s6675_s1 = inlined_call_operand.vmem [shape: f32[2,8,32], index: 1, kind: input, shape index: {}]   ;;  %s6676_s2 = inlined_call_operand.vmem [shape: f32[3,32], index: 2, kind: input, shape index: {}]   ;;  %s6677_s3 = inlined_call_operand.vmem [shape: f32[1,32], index: 3, kind: input, shape index: {}]   ;;  %s6678_s4 = inlined_call_operand.vmem [shape: f32[1,32], index: 4, kind: input, shape index: {}]   ;;  %s6679_s5 = inlined_call_operand.vmem [shape: f32[1,32], index: 5, kind: input, shape index: {}]   ;;  %s6680_s6 = inlined_call_operand.vmem [shape: f32[1,32], index: 6, kind: input, shape index: {}]   ;;  %s6681_s7 = inlined_call_operand.vmem [shape: f32[2,1,32], index: 7, kind: input, shape index: {}]   ;;  %s6682_s8 = inlined_call_operand.vmem [shape: f32[2,1,32], index: 8, kind: input, shape index: {}]   ;;  %s6683_s9 = inlined_call_operand.vmem [shape: f32[2,32,96], index: 9, kind: input, shape index: {}]   ;;  %s6684_s10 = inlined_call_operand.vmem [shape: f32[2,1,96], index: 10, kind: input, shape index: {}]   ;;  %s6685_s11 = inlined_call_operand.vmem [shape: f32[2,32,32], index: 11, kind: input, shape index: {}]   ;;  %s6686_s12 = inlined_call_operand.vmem [shape: f32[2,1,32], index: 12, kind: input, shape index: {}]   ;;  %s6687_s13 = inlined_call_operand.vmem [shape: f32[2,1,32], index: 13, kind: input, shape index: {}]   ;;  %s6688_s14 = inlined_call_operand.vmem [shape: f32[2,1,32], index: 14, kind: input, shape index: {}]   ;;  %s6689_s15 = inlined_call_operand.vmem [shape: f32[2,32,128], index: 15, kind: input, shape index: {}]   ;;  %s6690_s16 = inlined_call_operand.vmem [shape: f32[2,1,128], index: 16, kind: input, shape index: {}]   ;;  %s6691_s17 = inlined_call_operand.vmem [shape: f32[2,128,32], index: 17, kind: input, shape index: {}]   ;;  %s6692_s18 = inlined_call_operand.vmem [shape: f32[2,1,32], index: 18, kind: input, shape index: {}]   ;;  %s6693_s19 = inlined_call_operand.vmem [shape: f32[1,32], index: 19, kind: input, shape index: {}]   ;;  %s6694_s20 = inlined_call_operand.vmem [shape: f32[1,32], index: 20, kind: input, shape index: {}]   ;;  %s6695_s21 = inlined_call_operand.vmem [shape: f32[2,19,32], index: 21, kind: output, shape index: {}]  }
   0x1   :  { %6703 = sst [smem:[#allocation7_spill]] %s6674_s0 }
   0x2   :  { %6704 = sst [smem:[#allocation8_spill]] %s6675_s1 }
   0x3   :  { %6705 = sst [smem:[#allocation9_spill]] %s6676_s2  ;;  %s5661_s2 = smov 0  }
   0x4   :  { %6706 = sst [smem:[#allocation10_spill]] %s6677_s3 }
   0x5   :  { %6707 = sst [smem:[#allocation11_spill]] %s6678_s4 }
   0x6   :  { %6708 = sst [smem:[#allocation12_spill]] %s6679_s5 }
   0x7   :  { %6709 = sst [smem:[#allocation13_spill]] %s6683_s9 }
   0x8   :  { %6710 = sst [smem:[#allocation14_spill]] %s6685_s11 }
   0x9   :  { %6711 = sst [smem:[#allocation15_spill]] %s6693_s19 }
   0xa   :  { %6712 = sst [smem:[#allocation16_spill]] %s6694_s20 }
   0xb   :  { %6713 = sst [smem:[#allocation17_spill]] %s6695_s21 }
   0xc LB: > { %6714 = sst [smem:[#allocation3_spill]] %s5532_s25  ;;  %s40_s27 = sadd.s32 1, %s5532_s25  ;;  %s5536_s26 = sphi %s5665_s26, %s31_s26   ;;  %s5532_s25 = sphi %s5663_s25, %s6740_s25   ;;  %s5528_s2 = sphi %s5661_s2, %s6739_s2  }
   0xd   : > { %6715 = sst [smem:[#allocation4_spill]] %s5536_s26  ;;  %p4589_p0 = scmp.ge.s32.totalorder %s5536_s26, 1 }
   0xe   : > { %p41_p1 = scmp.ge.s32.totalorder %s40_s27, 2  ;;  %p715_p2 = scmp.lt.s32.totalorder %s5536_s26, 3 }
  0x10   : > { %s6742_s27 = smov (%p41_p1, %s40_s27), 0  ;;  %p716_p3 = pnand %p4589_p0, %p715_p2 }
  0x11   : > { %6716 = sst [smem:[#allocation5_spill]] %s6742_s27 }
  0x12   : > { %719 = sbr.rel (%p716_p3) target bundleno = 6007 (0x1777), region = 104 }
  0x17   : > { %p837_p4 = scmp.lt.s32.totalorder %s5528_s2, 1  ;;  %s6717_s9 = sld [smem:[#allocation13_spill]] }
  0x18   : > { %s6718_s11 = sld [smem:[#allocation14_spill]]  ;;  %p4598_p5 = scmp.ne.s32.totalorder %s5528_s2, 0 }
  0x19   : > { %s5683_s3 = scalar_select %p837_p4, %s5528_s2, 1 }
  0x1a   : > { %s6720_s28 = sld [smem:[#allocation7_spill]] (!%p4598_p5) }
  0x1b   : > { %s4736_s22 = sshll.u32 %s5683_s3, 5  ;;  %s861_s19 = scalar_lea.vmem %s6687_s13, %s5683_s3 }
  0x1c   : > { %891 = sbr.rel (%p4598_p5) target bundleno = 351 (0x15f), region = 108  ;;  %s6721_s26 = sld [smem:[#allocation8_spill]] (!%p4598_p5) }
  0x1d   : > { %s5701_s27 = scalar_lea.vmem %s6717_s9, %s4736_s22  ;;  %s5723_s9 = scalar_lea.vmem %s6689_s15, %s4736_s22 }
  0x1e   : > { %s5706_s21 = scalar_lea.vmem %s6718_s11, %s4736_s22  ;;  %s6723_s30 = sld [smem:[#allocation9_spill]] (!%p4598_p5) }
  0x1f   : > { %6719 = sst [smem:[#allocation6_spill]] %s5706_s21  ;;  %s4739_s21 = sshll.u32 %s5683_s3, 7 }
  0x20   : > { %s5733_s4 = scalar_lea.vmem %s6691_s17, %s4739_s21  ;;  %s6724_s29 = sld [smem:[#allocation10_spill]] (!%p4598_p5) }
  0x21   : > { %v892_v0 = vld [vmem:[%s6720_s28] sm:$0xff]  ;;  %vm896_vm0 = vcmask 261120   ;;  %v893_v2 = vld [vmem:[%s6720_s28 + $0x8] sm:$0xff]  ;;  %vm987_vm1 = vcmask 253952   ;;  %s6725_s20 = sld [smem:[#allocation11_spill]] }
  0x22   : > { %s6722_s11 = smov %s6721_s26  ;;  %v940_v1 = vld [vmem:[%s6721_s26] sm:$0xff]  ;;  %v897_v3 = vsel %vm896_vm0, %v892_v0, 0.0  ;;  %v900_v6 = vsel %vm896_vm0, %v893_v2, 0.0  ;;  %s6726_s24 = sld [smem:[#allocation12_spill]] }
  0x23   : > { %v944_v4 = vsel %vm896_vm0, %v940_v1, 0.0  ;;  %v941_v5 = vld [vmem:[%s6722_s11 + $0x8] sm:$0xff]  ;;  %898 = vadd.xlane.f32.xlu0 %v897_v3  ;;  %v4602_v58 = vld [vmem:[%s6680_s6] ss:$0 sm:$0xff] }
  0x24   : > { %945 = vadd.xlane.f32.xlu1 %v944_v4  ;;  %v947_v7 = vsel %vm896_vm0, %v941_v5, 0.0  ;;  %v986_v28 = vld [vmem:[%s6723_s30] sm:$0x1]  ;;  %v989_v29 = vld [vmem:[%s6723_s30 + $0x1] sm:$0x1] }
  0x25   : > { %988 = vst.msk [vmem:[#allocation2] sm:$0x1] %vm987_vm1, %v986_v28  ;;  %990 = vst.msk [vmem:[#allocation2 + $0x1] sm:$0x1] %vm987_vm1, %v989_v29  ;;  %v992_v30 = vld [vmem:[%s6723_s30 + $0x2] sm:$0x1] }
  0x26   : > { %v995_v31 = vld [vmem:[%s6723_s30] sm:$0x1]  ;;  %v997_v32 = vld [vmem:[%s6723_s30 + $0x1] sm:$0x1]  ;;  %993 = vst.msk [vmem:[#allocation2 + $0xa] sm:$0x1] %vm987_vm1, %v992_v30 }
  0x27   : > { %901 = vadd.xlane.f32.xlu0 %v900_v6  ;;  %996 = vst.msk [vmem:[#allocation2 + $0x13] sm:$0x1] %vm987_vm1, %v995_v31  ;;  %998 = vst.msk [vmem:[#allocation2 + $0x14] sm:$0x1] %vm987_vm1, %v997_v32  ;;  %v1000_v33 = vld [vmem:[%s6723_s30 + $0x2] sm:$0x1] }
  0x28   : > { %948 = vadd.xlane.f32.xlu1 %v947_v7  ;;  %1001 = vst.msk [vmem:[#allocation2 + $0x1d] sm:$0x1] %vm987_vm1, %v1000_v33  ;;  %v4599_v47 = vld [vmem:[%s6724_s29] ss:$0 sm:$0xff] }
  0x29   : > { %v4600_v49 = vld [vmem:[%s6725_s20] ss:$0 sm:$0xff] }
  0x2a   : > { %v4601_v55 = vld [vmem:[%s6726_s24] ss:$0 sm:$0xff] }
  0xac   : > { %v899_v8 = vpop.xlane.xlu0 %898 }
  0xad   : > { %v946_v9 = vpop.xlane.xlu1 %945  ;;  %v904_v10 = vmul.f32 0.03125, %v899_v8 }
  0xae   : > { %v950_v11 = vmul.f32 0.03125, %v946_v9 }
  0xaf   : > { %v906_v12 = vsub.f32 %v892_v0, %v904_v10 }
  0xb0   : > { %v952_v13 = vsub.f32 %v940_v1, %v950_v11  ;;  %v902_v14 = vpop.xlane.xlu0 %901 }
  0xb1   : > { %v949_v15 = vpop.xlane.xlu1 %948  ;;  %v905_v16 = vmul.f32 0.03125, %v902_v14  ;;  %v908_v18 = vmul.f32 %v906_v12, %v906_v12 }
  0xb2   : > { %v951_v17 = vmul.f32 0.03125, %v949_v15  ;;  %v954_v19 = vmul.f32 %v952_v13, %v952_v13 }
  0xb3   : > { %v907_v20 = vsub.f32 %v893_v2, %v905_v16  ;;  %v910_v22 = vsel %vm896_vm0, %v908_v18, 0.0 }
  0xb4   : > { %v953_v21 = vsub.f32 %v941_v5, %v951_v17  ;;  %911 = vadd.xlane.f32.xlu0 %v910_v22  ;;  %v956_v23 = vsel %vm896_vm0, %v954_v19, 0.0 }
  0xb5   : > { %v909_v24 = vmul.f32 %v907_v20, %v907_v20 }
  0xb6   : > { %v955_v25 = vmul.f32 %v953_v21, %v953_v21 }
  0xb7   : > { %v913_v26 = vsel %vm896_vm0, %v909_v24, 0.0 }
  0xb8   : > { %957 = vadd.xlane.f32.xlu0 %v956_v23  ;;  %914 = vadd.xlane.f32.xlu1 %v913_v26  ;;  %v959_v27 = vsel %vm896_vm0, %v955_v25, 0.0 }
  0xbc   : > { %960 = vadd.xlane.f32.xlu1 %v959_v27 }
 0x13d   : > { %v912_v34 = vpop.xlane.xlu0 %911 }
 0x13e   : > { %v916_v35 = vmul.f32 0.03125, %v912_v34 }
 0x140   : > { %v918_v36 = vadd.f32 1e-05, %v916_v35 }
 0x141   : > { %v915_v37 = vpop.xlane.xlu1 %914  ;;  %v958_v38 = vpop.xlane.xlu0 %957 }
 0x142   : > { %5365 = vrsqrt.f32 %v918_v36  ;;  %v917_v39 = vmul.f32 0.03125, %v915_v37  ;;  %v962_v40 = vmul.f32 0.03125, %v958_v38 }
 0x144   : > { %v919_v41 = vadd.f32 1e-05, %v917_v39  ;;  %v964_v42 = vadd.f32 1e-05, %v962_v40 }
 0x145   : > { %v961_v43 = vpop.xlane.xlu1 %960 }
 0x146   : > { %5367 = vrsqrt.f32 %v919_v41  ;;  %v963_v44 = vmul.f32 0.03125, %v961_v43 }
 0x147   : > { %5369 = vrsqrt.f32 %v964_v42 }
 0x148   : > { %v965_v45 = vadd.f32 1e-05, %v963_v44 }
 0x14a   : > { %5371 = vrsqrt.f32 %v965_v45 }
 0x14f   : > { %v5366_v46 = vpop.eup %5365 }
 0x150   : > { %v922_v48 = vmul.f32 %v5366_v46, %v906_v12 }
 0x152   : > { %v930_v50 = vmul.f32 %v4599_v47, %v922_v48 }
 0x153   : > { %v5368_v51 = vpop.eup %5367 }
 0x154   : > { %v5370_v52 = vpop.eup %5369  ;;  %v938_v53 = vadd.f32 %v4600_v49, %v930_v50  ;;  %v923_v54 = vmul.f32 %v5368_v51, %v907_v20 }
 0x155   : > { %v968_v56 = vmul.f32 %v5370_v52, %v952_v13 }
 0x156   : > { %991 = vst.msk [vmem:[#allocation2 + $0x2] sm:$0xff] %vm896_vm0, %v938_v53  ;;  %v931_v57 = vmul.f32 %v4599_v47, %v923_v54 }
 0x157   : > { %v5372_v59 = vpop.eup %5371  ;;  %v976_v60 = vmul.f32 %v4601_v55, %v968_v56 }
 0x158   : > { %v939_v61 = vadd.f32 %v4600_v49, %v931_v57  ;;  %v969_v62 = vmul.f32 %v5372_v59, %v953_v21 }
 0x159   : > { %v984_v63 = vadd.f32 %v4602_v58, %v976_v60 }
 0x15a   : > { %999 = vst.msk [vmem:[#allocation2 + $0x15] sm:$0xff] %vm896_vm0, %v939_v61  ;;  %v977_v0 = vmul.f32 %v4601_v55, %v969_v62 }
 0x15b   : > { %994 = vst.msk [vmem:[#allocation2 + $0xb] sm:$0xff] %vm896_vm0, %v984_v63 }
 0x15c   : > { %v985_v1 = vadd.f32 %v4602_v58, %v977_v0 }
 0x15e   : > { %1002 = vst.msk [vmem:[#allocation2 + $0x1e] sm:$0xff] %vm896_vm0, %v985_v1 }
 0x15f PF: > { %v1003_v2 = vld [vmem:[#allocation2] sm:$0xff]  ;;  %vm1010_vm2 = vcmask 261120   ;;  %vm1023_vm3 = vcmask 259072   ;;  %v1103_v27 = vld [vmem:[%s5701_s27 + $0x18] sm:$0xff]  ;;  %v5538_v28 = vmov 0.0   ;;  %v1102_v29 = vld [vmem:[%s5701_s27 + $0x10] sm:$0xff]  ;;  %s6727_s29 = scalar_lea.vmem %s6681_s7, %s5683_s3  ;;  %s6728_s20 = scalar_lea.vmem %s6682_s8, %s5683_s3 }
 0x160   : > { %v1011_v5 = vsel %vm1010_vm2, %v1003_v2, 0.0  ;;  %4907 = vmatprep.subr.mxu0 %v5538_v28  ;;  %vm5539_vm4 = vmmov 0   ;;  %4945 = vmatprep.subr.mxu1 %v5538_v28  ;;  %v1101_v30 = vld [vmem:[%s5701_s27 + $0x8] sm:$0xff]  ;;  %v1100_v31 = vld [vmem:[%s5701_s27] sm:$0xff]  ;;  %s6729_s24 = scalar_lea.vmem %s6684_s10, %s5683_s3  ;;  %s5540_s5 = smov 96   ;;  %vm1229_vm5 = vcmask 64512  }
 0x161   : > { %1012 = vadd.xlane.f32.xlu0 %v1011_v5  ;;  %4915 = vmatprep.mubr.msk.f32.mxu0 %vm5539_vm4, %v5538_v28  ;;  %v4603_v52 = vld [vmem:[%s6727_s29] ss:$0 sm:$0xff]  ;;  %s5541_s1 = smov 88   ;;  %s5542_s27 = smov 120   ;;  %vm1325_vm6 = vcmask 154624   ;;  %vm1332_vm7 = vcmask 149504  }
 0x162   : > { %v1005_v3 = vld [vmem:[#allocation2 + $0x10] sm:$0xff]  ;;  %v1004_v4 = vld [vmem:[#allocation2 + $0x8] sm:$0xff]  ;;  %4908 = vmatpush3.msra.mxu0 %v1103_v27  ;;  %4951 = vmatprep.mubr.msk.f32.mxu1 %vm5539_vm4, %v5538_v28  ;;  %v4604_v54 = vld [vmem:[%s6728_s20] ss:$0 sm:$0xff]  ;;  %s5543_s22 = smov 64   ;;  %s5544_s29 = smov 56  }
 0x163   : > { %v1017_v6 = vsel %vm1010_vm2, %v1005_v3, 0.0  ;;  %v1014_v7 = vsel %vm1010_vm2, %v1004_v4, 0.0  ;;  %4909 = vmatprep.subr.mxu0 %v5538_v28  ;;  %vm1377_vm8 = vcmask 1042432   ;;  %s5545_s25 = smov 80   ;;  %s5546_s26 = smov 112   ;;  %vm2558_vm9 = vcmask 1044480  }
 0x164   : > { %1018 = vadd.xlane.f32.xlu1 %v1017_v6  ;;  %4910 = vmatpush3.msra.mxu0 %v1102_v29  ;;  %s6730_s20 = sld [smem:[#allocation6_spill]]  ;;  %s5547_s21 = smov 48   ;;  %vm2554_vm10 = vcmask 256000   ;;  %vm3900_vm11 = vcmask 261123  }
 0x165   : > { %1015 = vadd.xlane.f32.xlu0 %v1014_v7  ;;  %v1006_v22 = vld [vmem:[#allocation2 + $0x18] sm:$0xff]  ;;  %v1007_v23 = vld [vmem:[#allocation2 + $0x20] sm:$0x3f]  ;;  %4911 = vmatprep.subr.mxu0 %v5538_v28  ;;  %s5548_s0 = smov 72   ;;  %s5550_s23 = smov 40  }
 0x166   : > { %v1020_v25 = vsel %vm1010_vm2, %v1006_v22, 0.0  ;;  %v1024_v26 = vsel %vm1023_vm3, %v1007_v23, 0.0  ;;  %4912 = vmatpush3.msra.mxu0 %v1101_v30  ;;  %p4726_p6 = scmp.ne.s32.totalorder %s5528_s2, 1 }
 0x167   : > { %4913 = vmatprep.subr.mxu0 %v5538_v28 }
 0x168   : > { %4914 = vmatpush3.msra.mxu0 %v1100_v31 }
 0x169   : > { %4930 = vmatprep.subr.mxu0 %v5538_v28 }
 0x1ea   : > { %v1013_v8 = vpop.xlane.xlu0 %1012 }
 0x1eb   : > { %v1028_v10 = vmul.f32 0.03125, %v1013_v8 }
 0x1ed   : > { %v1019_v9 = vpop.xlane.xlu1 %1018  ;;  %v5797_v12 = vsub.f32 %v1003_v2, %v1028_v10 }
 0x1ee   : > { %v1030_v11 = vmul.f32 0.03125, %v1019_v9  ;;  %v1016_v14 = vpop.xlane.xlu0 %1015 }
 0x1ef   : > { %v1029_v15 = vmul.f32 0.03125, %v1016_v14  ;;  %v1038_v16 = vmul.f32 %v5797_v12, %v5797_v12 }
 0x1f0   : > { %v5799_v13 = vsub.f32 %v1005_v3, %v1030_v11 }
 0x1f1   : > { %v5805_v18 = vsub.f32 %v1004_v4, %v1029_v15  ;;  %v1043_v19 = vsel %vm1010_vm2, %v1038_v16, 0.0 }
 0x1f2   : > { %v1040_v17 = vmul.f32 %v5799_v13, %v5799_v13  ;;  %1044 = vadd.xlane.f32.xlu1 %v1043_v19 }
 0x1f3   : > { %v1039_v21 = vmul.f32 %v5805_v18, %v5805_v18 }
 0x1f4   : > { %v1049_v20 = vsel %vm1010_vm2, %v1040_v17, 0.0  ;;  %v5863_v17 = vld [vmem:[%s6729_s24] ss:$0 sm:$0xff]  ;;  %s5549_s24 = smov 104  }
 0x1f5   : > { %v1046_v24 = vsel %vm1010_vm2, %v1039_v21, 0.0 }
 0x1f6   : > { %1050 = vadd.xlane.f32.xlu1 %v1049_v20  ;;  %1047 = vadd.xlane.f32.xlu0 %v1046_v24 }
 0x1fa   : > { %1021 = vadd.xlane.f32.xlu0 %v1020_v25  ;;  %1025 = vadd.xlane.f32.xlu1 %v1024_v26 }
 0x27b   : > { %v1045_v32 = vpop.xlane.xlu1 %1044 }
 0x27c   : > { %v1058_v33 = vmul.f32 0.03125, %v1045_v32 }
 0x27e   : > { %v1063_v34 = vadd.f32 1e-05, %v1058_v33 }
 0x27f   : > { %v1051_v35 = vpop.xlane.xlu1 %1050  ;;  %v1048_v36 = vpop.xlane.xlu0 %1047 }
 0x280   : > { %5373 = vrsqrt.f32 %v1063_v34  ;;  %v1060_v37 = vmul.f32 0.03125, %v1051_v35  ;;  %v1059_v38 = vmul.f32 0.03125, %v1048_v36 }
 0x282   : > { %v1065_v39 = vadd.f32 1e-05, %v1060_v37  ;;  %v1064_v40 = vadd.f32 1e-05, %v1059_v38 }
 0x283   : > { %v1022_v41 = vpop.xlane.xlu0 %1021  ;;  %v1026_v42 = vpop.xlane.xlu1 %1025 }
 0x284   : > { %5375 = vrsqrt.f32 %v1065_v39  ;;  %v1031_v43 = vmul.f32 0.03125, %v1022_v41  ;;  %v1032_v44 = vmul.f32 0.03125, %v1026_v42 }
 0x285   : > { %5377 = vrsqrt.f32 %v1064_v40 }
 0x286   : > { %v1036_v45 = vsub.f32 %v1006_v22, %v1031_v43  ;;  %v1037_v46 = vsub.f32 %v1007_v23, %v1032_v44 }
 0x288   : > { %v1041_v47 = vmul.f32 %v1036_v45, %v1036_v45  ;;  %v1042_v48 = vmul.f32 %v1037_v46, %v1037_v46 }
 0x28a   : > { %v1052_v49 = vsel %vm1010_vm2, %v1041_v47, 0.0  ;;  %v1055_v50 = vsel %vm1023_vm3, %v1042_v48, 0.0 }
 0x28b   : > { %1053 = vadd.xlane.f32.xlu0 %v1052_v49  ;;  %1056 = vadd.xlane.f32.xlu1 %v1055_v50 }
 0x28d   : > { %v5374_v51 = vpop.eup %5373 }
 0x28e   : > { %v1073_v53 = vmul.f32 %v5374_v51, %v5797_v12 }
 0x290   : > { %v1084_v55 = vmul.f32 %v4603_v52, %v1073_v53 }
 0x291   : > { %v5376_v56 = vpop.eup %5375 }
 0x292   : > { %v5378_v57 = vpop.eup %5377  ;;  %v1095_v58 = vadd.f32 %v4604_v54, %v1084_v55  ;;  %v1075_v60 = vmul.f32 %v5376_v56, %v5799_v13 }
 0x293   : > { %v1074_v59 = vmul.f32 %v5378_v57, %v5805_v18 }
 0x294   : > { %4916 = vmatmul.mubr.msk.f32.vlgmr.msra.gmra.mxu0 %vm1010_vm2, %v1095_v58  ;;  %v1086_v63 = vmul.f32 %v4603_v52, %v1075_v60 }
 0x295   : > { %4918 = vmatprep.mubr.msk.f32.mxu0 %vm5539_vm4, %v5538_v28  ;;  %v1085_v61 = vmul.f32 %v4603_v52, %v1074_v59 }
 0x296   : > { %v1097_v0 = vadd.f32 %v4604_v54, %v1086_v63 }
 0x297   : > { %v1096_v62 = vadd.f32 %v4604_v54, %v1085_v61 }
 0x299   : > { %4919 = vmatmul.mubr.msk.f32.gmra.mxu0 %vm1010_vm2, %v1096_v62 }
 0x29a   : > { %4921 = vmatprep.mubr.msk.f32.mxu0 %vm5539_vm4, %v5538_v28 }
 0x29d   : > { %4922 = vmatmul.mubr.msk.f32.gmra.mxu0 %vm1010_vm2, %v1097_v0 }
 0x29e   : > { %4924 = vmatprep.mubr.msk.f32.mxu0 %vm5539_vm4, %v5538_v28 }
 0x314   : > { %v1054_v1 = vpop.xlane.xlu0 %1053  ;;  %v1057_v2 = vpop.xlane.xlu1 %1056 }
 0x315   : > { %v1061_v3 = vmul.f32 0.03125, %v1054_v1  ;;  %v1062_v4 = vmul.f32 0.03125, %v1057_v2 }
 0x317   : > { %v1066_v5 = vadd.f32 1e-05, %v1061_v3  ;;  %v1067_v6 = vadd.f32 1e-05, %v1062_v4 }
 0x319   : > { %5379 = vrsqrt.f32 %v1066_v5 }
 0x31a   : > { %5381 = vrsqrt.f32 %v1067_v6 }
 0x326   : > { %v5380_v7 = vpop.eup %5379 }
 0x327   : > { %v5382_v8 = vpop.eup %5381  ;;  %v1076_v9 = vmul.f32 %v5380_v7, %v1036_v45 }
 0x328   : > { %v1077_v10 = vmul.f32 %v5382_v8, %v1037_v46 }
 0x329   : > { %v1087_v11 = vmul.f32 %v4603_v52, %v1076_v9 }
 0x32a   : > { %v1088_v12 = vmul.f32 %v4603_v52, %v1077_v10 }
 0x32b   : > { %v1098_v13 = vadd.f32 %v4604_v54, %v1087_v11 }
 0x32c   : > { %v1099_v14 = vadd.f32 %v4604_v54, %v1088_v12 }
 0x32d   : > { %4925 = vmatmul.mubr.msk.f32.gmra.mxu0 %vm1010_vm2, %v1098_v13 }
 0x32e   : > { %4927 = vmatprep.mubr.msk.f32.mxu0 %vm5539_vm4, %v5538_v28 }
 0x331   : > { %4928 = vmatmul.mubr.msk.f32.gmra.mxu0 %vm1010_vm2, %v1099_v14 }
 0x332   : > { %4936 = vmatprep.mubr.msk.f32.mxu0 %vm5539_vm4, %v5538_v28 }
 0x354   : > { %v1192_v15 = vpop.f32.mrf.mxu0 }
 0x355   : > { %v5871_v22 = vadd.f32 %v5863_v17, %v1192_v15 }
 0x356   : > { %v4917_v16 = vpop.f32.mrf.mxu0 }
 0x359   : > { %v1197_v18 = vpop.f32.mrf.mxu0 }
 0x35a   : > { %v5866_v19 = vadd.f32 %v5863_v17, %v1197_v18 }
 0x35b   : > { %v4920_v20 = vpop.f32.mrf.mxu0 }
 0x35c   : > { %1225 = vrot.lane.b32.xlu1 %v5866_v19, %s5540_s5 }
 0x35d   : > { %v1202_v21 = vpop.f32.mrf.mxu0 }
 0x35e   : > { %v5874_v23 = vadd.f32 %v5863_v17, %v1202_v21 }
 0x35f   : > { %v4923_v24 = vpop.f32.mrf.mxu0 }
 0x360   : > { %1223 = vrot.lane.b32.xlu1 %v5871_v22, %s5540_s5  ;;  %1227 = vrot.lane.b32.xlu0 %v5874_v23, %s5540_s5 }
 0x364   : > { %1470 = vrot.lane.b32.xlu1 %v5874_v23, %s5541_s1  ;;  %1468 = vrot.lane.b32.xlu0 %v5866_v19, %s5541_s1 }
 0x368   : > { %1466 = vrot.lane.b32.xlu1 %v5871_v22, %s5541_s1  ;;  %1460 = vrot.lane.b32.xlu0 %v5871_v22, %s5542_s27 }
 0x36c   : > { %1462 = vrot.lane.b32.xlu1 %v5866_v19, %s5542_s27  ;;  %1464 = vrot.lane.b32.xlu0 %v5874_v23, %s5542_s27 }
 0x3ce   : > { %v1226_v25 = vpop.permute.xlu1 %1225 }
 0x3d2   : > { %v1228_v26 = vpop.permute.xlu0 %1227  ;;  %v1224_v27 = vpop.permute.xlu1 %1223 }
 0x3d3   : > { %4931 = vmatpush3.xpose.msk.msra.mxu0 %vm1229_vm5, %v1228_v26 }
 0x3d4   : > { %4932 = vmatprep.subr.mxu0 %v5538_v28 }
 0x3d6   : > { %v1471_v29 = vpop.permute.xlu1 %1470  ;;  %v1469_v30 = vpop.permute.xlu0 %1468 }
 0x3d7   : > { %4933 = vmatpush3.xpose.msk.msra.mxu0 %vm1229_vm5, %v1226_v25 }
 0x3d8   : > { %4934 = vmatprep.subr.mxu0 %v5538_v28 }
 0x3da   : > { %v1467_v31 = vpop.permute.xlu1 %1466  ;;  %v1461_v32 = vpop.permute.xlu0 %1460 }
 0x3db   : > { %4935 = vmatpush3.xpose.msk.msra.mxu0 %vm1229_vm5, %v1224_v27 }
 0x3dc   : > { %4960 = vmatprep.subr.mxu0 %v5538_v28 }
 0x3de   : > { %4937 = vmatmul.mubr.msk.f32.vlgmr.msra.gmra.mxu0 %vm1229_vm5, %v5871_v22  ;;  %v1463_v33 = vpop.permute.xlu1 %1462  ;;  %v1465_v36 = vpop.permute.xlu0 %1464 }
 0x3df   : > { %4961 = vmatpush3.xpose.msk.msra.mxu0 %vm1229_vm5, %v1471_v29  ;;  %4939 = vmatprep.mubr.msk.f32.mxu0 %vm5539_vm4, %v5538_v28 }
 0x3e0   : > { %4962 = vmatprep.subr.mxu0 %v5538_v28 }
 0x3e2   : > { %4940 = vmatmul.mubr.msk.f32.gmra.mxu0 %vm1229_vm5, %v5866_v19 }
 0x3e3   : > { %4963 = vmatpush3.xpose.msk.msra.mxu0 %vm1229_vm5, %v1469_v30  ;;  %4942 = vmatprep.mubr.msk.f32.mxu0 %vm5539_vm4, %v5538_v28 }
 0x3e4   : > { %4964 = vmatprep.subr.mxu0 %v5538_v28 }
 0x3e6   : > { %4943 = vmatmul.mubr.msk.f32.gmra.mxu0 %vm1229_vm5, %v5874_v23 }
 0x3e7   : > { %4965 = vmatpush3.xpose.msk.msra.mxu0 %vm1229_vm5, %v1467_v31  ;;  %4966 = vmatprep.mubr.msk.f32.mxu0 %vm5539_vm4, %v5538_v28 }
 0x3e8   : > { %4990 = vmatprep.subr.mxu0 %v5538_v28 }
 0x3ea   : > { %4967 = vmatmul.mubr.msk.f32.vlgmr.msra.gmra.mxu0 %vm1229_vm5, %v1461_v32 }
 0x3eb   : > { %4969 = vmatprep.mubr.msk.f32.mxu0 %vm5539_vm4, %v5538_v28 }
 0x3ed   : > { %v5919_v34 = vpop.f32.mrf.mxu0 }
 0x3ee   : > { %4970 = vmatmul.mubr.msk.f32.gmra.mxu0 %vm1229_vm5, %v1463_v33 }
 0x3ef   : > { %4972 = vmatprep.mubr.msk.f32.mxu0 %vm5539_vm4, %v5538_v28  ;;  %v4926_v35 = vpop.f32.mrf.mxu0 }
 0x3f1   : > { %v5924_v37 = vpop.f32.mrf.mxu0 }
 0x3f2   : > { %4973 = vmatmul.mubr.msk.f32.gmra.mxu0 %vm1229_vm5, %v1465_v36 }
 0x3f3   : > { %v4929_v38 = vpop.f32.mrf.mxu0  ;;  %4992 = vmatprep.mubr.msk.f32.mxu0 %vm5539_vm4, %v5538_v28 }
 0x49e   : > { %v1308_v39 = vpop.f32.mrf.mxu0 }
 0x49f   : > { %v1322_v40 = vmul.f32 0.35355338, %v1308_v39 }
 0x4a0   : > { %v4938_v41 = vpop.f32.mrf.mxu0 }
 0x4a1   : > { %v1326_v42 = vsel %vm1325_vm6, %v1322_v40, -inf }
 0x4a2   : > { %1327 = vmax.xlane.f32.xlu1 %v1326_v42  ;;  %v1313_v43 = vpop.f32.mrf.mxu0 }
 0x4a3   : > { %v1323_v44 = vmul.f32 0.35355338, %v1313_v43 }
 0x4a4   : > { %v4941_v45 = vpop.f32.mrf.mxu0 }
 0x4a5   : > { %v1329_v46 = vsel %vm1325_vm6, %v1323_v44, -inf }
 0x4a6   : > { %1330 = vmax.xlane.f32.xlu0 %v1329_v46  ;;  %v1318_v47 = vpop.f32.mrf.mxu0 }
 0x4a7   : > { %v1324_v48 = vmul.f32 0.35355338, %v1318_v47 }
 0x4a8   : > { %v4944_v49 = vpop.f32.mrf.mxu0 }
 0x4a9   : > { %v1333_v50 = vsel %vm1332_vm7, %v1324_v48, -inf }
 0x4aa   : > { %1334 = vmax.xlane.f32.xlu0 %v1333_v50  ;;  %v1550_v51 = vpop.f32.mrf.mxu0 }
 0x4ab   : > { %v1564_v52 = vmul.f32 0.35355338, %v1550_v51 }
 0x4ac   : > { %v4968_v53 = vpop.f32.mrf.mxu0 }
 0x4ad   : > { %v1567_v54 = vsel %vm1325_vm6, %v1564_v52, -inf }
 0x4ae   : > { %1568 = vmax.xlane.f32.xlu0 %v1567_v54  ;;  %v1555_v55 = vpop.f32.mrf.mxu0 }
 0x4af   : > { %v1565_v56 = vmul.f32 0.35355338, %v1555_v55 }
 0x4b0   : > { %v4971_v57 = vpop.f32.mrf.mxu0 }
 0x4b1   : > { %v1570_v58 = vsel %vm1325_vm6, %v1565_v56, -inf }
 0x4b2   : > { %1571 = vmax.xlane.f32.xlu1 %v1570_v58  ;;  %v1560_v59 = vpop.f32.mrf.mxu0 }
 0x4b3   : > { %v1566_v60 = vmul.f32 0.35355338, %v1560_v59 }
 0x4b4   : > { %v4974_v61 = vpop.f32.mrf.mxu0 }
 0x4b5   : > { %v1573_v62 = vsel %vm1332_vm7, %v1566_v60, -inf  ;;  %v5997_v61 = vld [vmem:[%s6730_s20 + $0x8] sm:$0xff] }
 0x4b6   : > { %1574 = vmax.xlane.f32.xlu0 %v1573_v62  ;;  %4991 = vmatpush3.msra.mxu0 %v5997_v61 }
 0x4b7   : > { %5012 = vmatprep.subr.mxu0 %v5538_v28 }
 0x4c3   : > { %1364 = vrot.lane.b32.xlu1 %v5874_v23, %s5543_s22 }
 0x4c7   : > { %1360 = vrot.lane.b32.xlu1 %v5871_v22, %s5543_s22 }
 0x4cb   : > { %1604 = vrot.lane.b32.xlu1 %v5874_v23, %s5544_s29 }
 0x4cc   : > { %1362 = vrot.lane.b32.xlu0 %v5866_v19, %s5543_s22 }
 0x52b   : > { %v1328_v63 = vpop.xlane.xlu1 %1327 }
 0x52c   : > { %v1336_v0 = vsub.f32 %v1322_v40, %v1328_v63 }
 0x52e   : > { %v1339_v1 = vmul.f32 1.442695, %v1336_v0 }
 0x52f   : > { %v1331_v2 = vpop.xlane.xlu0 %1330 }
 0x530   : > { %5383 = vpow2.f32 %v1339_v1  ;;  %v1337_v3 = vsub.f32 %v1323_v44, %v1331_v2 }
 0x532   : > { %v1341_v4 = vmul.f32 1.442695, %v1337_v3 }
 0x533   : > { %v1335_v5 = vpop.xlane.xlu0 %1334 }
 0x534   : > { %5385 = vpow2.f32 %v1341_v4  ;;  %v1338_v6 = vsub.f32 %v1324_v48, %v1335_v5 }
 0x536   : > { %v1343_v7 = vmul.f32 1.442695, %v1338_v6 }
 0x537   : > { %v1569_v8 = vpop.xlane.xlu0 %1568 }
 0x538   : > { %5387 = vpow2.f32 %v1343_v7  ;;  %v1576_v9 = vsub.f32 %v1564_v52, %v1569_v8 }
 0x53a   : > { %v1579_v10 = vmul.f32 1.442695, %v1576_v9 }
 0x53b   : > { %v1572_v11 = vpop.xlane.xlu1 %1571 }
 0x53c   : > { %5389 = vpow2.f32 %v1579_v10  ;;  %v1577_v12 = vsub.f32 %v1565_v56, %v1572_v11 }
 0x53d   : > { %v5384_v13 = vpop.eup %5383 }
 0x53e   : > { %v1581_v14 = vmul.f32 1.442695, %v1577_v12  ;;  %v1345_v15 = vsel %vm1325_vm6, %v5384_v13, 0.0 }
 0x53f   : > { %1346 = vadd.xlane.f32.xlu1 %v1345_v15  ;;  %v1365_v16 = vpop.permute.xlu1 %1364  ;;  %v1575_v18 = vpop.xlane.xlu0 %1574 }
 0x540   : > { %5391 = vpow2.f32 %v1581_v14  ;;  %v1578_v20 = vsub.f32 %v1566_v60, %v1575_v18  ;;  %4946 = vmatpush3.msk.msra.mxu1 %vm1377_vm8, %v1365_v16  ;;  %v5992_v60 = vld [vmem:[%s6730_s20] sm:$0xff] }
 0x541   : > { %v5386_v21 = vpop.eup %5385  ;;  %4947 = vmatprep.subr.mxu1 %v5538_v28 }
 0x542   : > { %v1583_v24 = vmul.f32 1.442695, %v1578_v20  ;;  %v1348_v25 = vsel %vm1325_vm6, %v5386_v21, 0.0 }
 0x543   : > { %1349 = vadd.xlane.f32.xlu0 %v1348_v25  ;;  %v1363_v26 = vpop.permute.xlu0 %1362  ;;  %v1361_v29 = vpop.permute.xlu1 %1360 }
 0x544   : > { %5393 = vpow2.f32 %v1583_v24  ;;  %4948 = vmatpush3.msra.mxu1 %v1363_v26 }
 0x545   : > { %v5388_v27 = vpop.eup %5387  ;;  %4949 = vmatprep.subr.mxu1 %v5538_v28 }
 0x546   : > { %4950 = vmatpush3.msra.mxu1 %v1361_v29  ;;  %v1351_v30 = vsel %vm1332_vm7, %v5388_v27, 0.0 }
 0x547   : > { %1352 = vadd.xlane.f32.xlu1 %v1351_v30  ;;  %4975 = vmatprep.subr.mxu1 %v5538_v28  ;;  %v1605_v39 = vpop.permute.xlu1 %1604 }
 0x549   : > { %v5390_v31 = vpop.eup %5389 }
 0x54a   : > { %v1585_v32 = vsel %vm1325_vm6, %v5390_v31, 0.0 }
 0x54b   : > { %1586 = vadd.xlane.f32.xlu0 %v1585_v32 }
 0x54d   : > { %v5392_v33 = vpop.eup %5391 }
 0x54e   : > { %v1588_v35 = vsel %vm1325_vm6, %v5392_v33, 0.0 }
 0x54f   : > { %1589 = vadd.xlane.f32.xlu1 %v1588_v35 }
 0x551   : > { %v5394_v36 = vpop.eup %5393 }
 0x552   : > { %v1591_v38 = vsel %vm1332_vm7, %v5394_v36, 0.0 }
 0x553   : > { %1592 = vadd.xlane.f32.xlu0 %v1591_v38 }
 0x560   : > { %1602 = vrot.lane.b32.xlu1 %v5866_v19, %s5544_s29 }
 0x564   : > { %1887 = vrot.lane.b32.xlu1 %v5874_v23, %s5545_s25 }
 0x568   : > { %1883 = vrot.lane.b32.xlu1 %v5871_v22, %s5545_s25 }
 0x569   : > { %1600 = vrot.lane.b32.xlu0 %v5871_v22, %s5544_s29 }
 0x56c   : > { %1879 = vrot.lane.b32.xlu1 %v5866_v19, %s5546_s26 }
 0x56d   : > { %1885 = vrot.lane.b32.xlu0 %v5866_v19, %s5545_s25 }
 0x571   : > { %1877 = vrot.lane.b32.xlu0 %v5871_v22, %s5546_s26 }
 0x575   : > { %1881 = vrot.lane.b32.xlu0 %v5874_v23, %s5546_s26 }
 0x5c8   : > { %v1347_v40 = vpop.xlane.xlu1 %1346 }
 0x5c9   : > { %5395 = vrcp.f32 %v1347_v40 }
 0x5cc   : > { %v1350_v41 = vpop.xlane.xlu0 %1349 }
 0x5cd   : > { %5397 = vrcp.f32 %v1350_v41 }
 0x5d0   : > { %v1353_v42 = vpop.xlane.xlu1 %1352 }
 0x5d1   : > { %5399 = vrcp.f32 %v1353_v42 }
 0x5d4   : > { %v1587_v43 = vpop.xlane.xlu0 %1586 }
 0x5d5   : > { %5401 = vrcp.f32 %v1587_v43 }
 0x5d6   : > { %v5396_v44 = vpop.eup %5395 }
 0x5d7   : > { %v1355_v45 = vmul.f32 %v5396_v44, %v5384_v13 }
 0x5d8   : > { %v1590_v46 = vpop.xlane.xlu1 %1589 }
 0x5d9   : > { %5403 = vrcp.f32 %v1590_v46  ;;  %4952 = vmatmul.mubr.msk.f32.vlgmr.msra.gmra.mxu1 %vm1325_vm6, %v1355_v45 }
 0x5da   : > { %v5398_v47 = vpop.eup %5397  ;;  %4976 = vmatpush3.msk.msra.mxu1 %vm1377_vm8, %v1605_v39  ;;  %4954 = vmatprep.mubr.msk.f32.mxu1 %vm5539_vm4, %v5538_v28 }
 0x5db   : > { %4977 = vmatprep.subr.mxu1 %v5538_v28  ;;  %v1357_v48 = vmul.f32 %v5398_v47, %v5386_v21 }
 0x5dc   : > { %v1603_v49 = vpop.permute.xlu1 %1602  ;;  %v1593_v50 = vpop.xlane.xlu0 %1592 }
 0x5dd   : > { %5405 = vrcp.f32 %v1593_v50  ;;  %4955 = vmatmul.mubr.msk.f32.gmra.mxu1 %vm1325_vm6, %v1357_v48 }
 0x5de   : > { %v5400_v51 = vpop.eup %5399  ;;  %4978 = vmatpush3.msra.mxu1 %v1603_v49  ;;  %4957 = vmatprep.mubr.msk.f32.mxu1 %vm5539_vm4, %v5538_v28 }
 0x5df   : > { %4979 = vmatprep.subr.mxu1 %v5538_v28  ;;  %v1359_v52 = vmul.f32 %v5400_v51, %v5388_v27 }
 0x5e0   : > { %v1601_v53 = vpop.permute.xlu0 %1600  ;;  %v1888_v5 = vpop.permute.xlu1 %1887 }
 0x5e1   : > { %4958 = vmatmul.mubr.msk.f32.gmra.mxu1 %vm1325_vm6, %v1359_v52 }
 0x5e2   : > { %v5402_v54 = vpop.eup %5401  ;;  %4980 = vmatpush3.msra.mxu1 %v1601_v53  ;;  %4981 = vmatprep.mubr.msk.f32.mxu1 %vm5539_vm4, %v5538_v28 }
 0x5e3   : > { %v1595_v55 = vmul.f32 %v5402_v54, %v5390_v31  ;;  %5001 = vmatprep.subr.mxu1 %v5538_v28 }
 0x5e4   : > { %v1886_v8 = vpop.permute.xlu0 %1885  ;;  %v1884_v11 = vpop.permute.xlu1 %1883 }
 0x5e5   : > { %4982 = vmatmul.mubr.msk.f32.vlgmr.msra.gmra.mxu1 %vm1325_vm6, %v1595_v55 }
 0x5e6   : > { %v5404_v56 = vpop.eup %5403  ;;  %4984 = vmatprep.mubr.msk.f32.mxu1 %vm5539_vm4, %v5538_v28  ;;  %5002 = vmatpush3.msra.mxu1 %v5992_v60 }
 0x5e7   : > { %v1597_v57 = vmul.f32 %v5404_v56, %v5392_v33  ;;  %5027 = vmatprep.subr.mxu1 %v5538_v28 }
 0x5e8   : > { %v1878_v13 = vpop.permute.xlu0 %1877  ;;  %v1880_v14 = vpop.permute.xlu1 %1879 }
 0x5e9   : > { %4985 = vmatmul.mubr.msk.f32.gmra.mxu1 %vm1325_vm6, %v1597_v57 }
 0x5ea   : > { %v5406_v58 = vpop.eup %5405  ;;  %4987 = vmatprep.mubr.msk.f32.mxu1 %vm5539_vm4, %v5538_v28 }
 0x5eb   : > { %v1599_v59 = vmul.f32 %v5406_v58, %v5394_v36 }
 0x5ec   : > { %v1882_v15 = vpop.permute.xlu0 %1881 }
 0x5ed   : > { %4988 = vmatmul.mubr.msk.f32.gmra.mxu1 %vm1325_vm6, %v1599_v59 }
 0x5ee   : > { %5003 = vmatprep.mubr.msk.f32.mxu1 %vm5539_vm4, %v5538_v28 }
 0x699   : > { %v1446_v62 = vpop.f32.mrf.mxu1 }
 0x69a   : > { %5004 = vmatmul.mubr.msk.f32.vlgmr.msra.gmra.mxu1 %vm1229_vm5, %v1446_v62 }
 0x69b   : > { %v4953_v63 = vpop.f32.mrf.mxu1  ;;  %5006 = vmatprep.mubr.msk.f32.mxu1 %vm5539_vm4, %v5538_v28 }
 0x69d   : > { %v1451_v0 = vpop.f32.mrf.mxu1 }
 0x69e   : > { %5007 = vmatmul.mubr.msk.f32.gmra.mxu1 %vm1229_vm5, %v1451_v0 }
 0x69f   : > { %v4956_v1 = vpop.f32.mrf.mxu1  ;;  %5009 = vmatprep.mubr.msk.f32.mxu1 %vm5539_vm4, %v5538_v28 }
 0x6a1   : > { %v1456_v2 = vpop.f32.mrf.mxu1 }
 0x6a2   : > { %5010 = vmatmul.mubr.msk.f32.gmra.mxu1 %vm1229_vm5, %v1456_v2 }
 0x6a3   : > { %v4959_v3 = vpop.f32.mrf.mxu1  ;;  %5033 = vmatprep.mubr.msk.f32.mxu1 %vm5539_vm4, %v5538_v28 }
 0x6a5   : > { %v1685_v4 = vpop.f32.mrf.mxu1 }
 0x6a6   : > { %4993 = vmatmul.mubr.msk.f32.vlgmr.msra.gmra.mxu0 %vm1229_vm5, %v1685_v4 }
 0x6a7   : > { %5013 = vmatpush3.xpose.msk.msra.mxu0 %vm1229_vm5, %v1888_v5  ;;  %v4983_v6 = vpop.f32.mrf.mxu1  ;;  %4995 = vmatprep.mubr.msk.f32.mxu0 %vm5539_vm4, %v5538_v28 }
 0x6a8   : > { %5014 = vmatprep.subr.mxu0 %v5538_v28 }
 0x6a9   : > { %v1690_v7 = vpop.f32.mrf.mxu1 }
 0x6aa   : > { %4996 = vmatmul.mubr.msk.f32.gmra.mxu0 %vm1229_vm5, %v1690_v7 }
 0x6ab   : > { %5015 = vmatpush3.xpose.msk.msra.mxu0 %vm1229_vm5, %v1886_v8  ;;  %v4986_v9 = vpop.f32.mrf.mxu1  ;;  %4998 = vmatprep.mubr.msk.f32.mxu0 %vm5539_vm4, %v5538_v28 }
 0x6ac   : > { %5016 = vmatprep.subr.mxu0 %v5538_v28 }
 0x6ad   : > { %v1695_v10 = vpop.f32.mrf.mxu1 }
 0x6ae   : > { %4999 = vmatmul.mubr.msk.f32.gmra.mxu0 %vm1229_vm5, %v1695_v10 }
 0x6af   : > { %5017 = vmatpush3.xpose.msk.msra.mxu0 %vm1229_vm5, %v1884_v11  ;;  %v4989_v12 = vpop.f32.mrf.mxu1  ;;  %5018 = vmatprep.mubr.msk.f32.mxu0 %vm5539_vm4, %v5538_v28 }
 0x6b0   : > { %5042 = vmatprep.subr.mxu0 %v5538_v28 }
 0x6b2   : > { %5019 = vmatmul.mubr.msk.f32.vlgmr.msra.gmra.mxu0 %vm1229_vm5, %v1878_v13 }
 0x6b3   : > { %5021 = vmatprep.mubr.msk.f32.mxu0 %vm5539_vm4, %v5538_v28 }
 0x6b6   : > { %5022 = vmatmul.mubr.msk.f32.gmra.mxu0 %vm1229_vm5, %v1880_v14 }
 0x6b7   : > { %5024 = vmatprep.mubr.msk.f32.mxu0 %vm5539_vm4, %v5538_v28 }
 0x6ba   : > { %5025 = vmatmul.mubr.msk.f32.gmra.mxu0 %vm1229_vm5, %v1882_v15 }
 0x6bb   : > { %5044 = vmatprep.mubr.msk.f32.mxu0 %vm5539_vm4, %v5538_v28 }
 0x75a   : > { %v1863_v16 = vpop.f32.mrf.mxu1 }
 0x75c   : > { %v5005_v18 = vpop.f32.mrf.mxu1 }
 0x75e   : > { %v1868_v20 = vpop.f32.mrf.mxu1 }
 0x760   : > { %v5008_v21 = vpop.f32.mrf.mxu1 }
 0x762   : > { %v1873_v24 = vpop.f32.mrf.mxu1 }
 0x764   : > { %v5011_v25 = vpop.f32.mrf.mxu1 }
 0x765   : > { %v6090_v25 = vld [vmem:[%s6730_s20 + $0x10] sm:$0xff] }
 0x766   : > { %v1774_v26 = vpop.f32.mrf.mxu0  ;;  %5043 = vmatpush3.msra.mxu0 %v6090_v25 }
 0x767   : > { %v6034_v27 = vadd.f32 %v1863_v16, %v1774_v26  ;;  %5068 = vmatprep.subr.mxu0 %v5538_v28 }
 0x768   : > { %v4994_v29 = vpop.f32.mrf.mxu0 }
 0x76a   : > { %v1779_v30 = vpop.f32.mrf.mxu0 }
 0x76b   : > { %v6036_v31 = vadd.f32 %v1868_v20, %v1779_v30 }
 0x76c   : > { %v4997_v32 = vpop.f32.mrf.mxu0 }
 0x76e   : > { %v1784_v33 = vpop.f32.mrf.mxu0 }
 0x76f   : > { %v6038_v35 = vadd.f32 %v1873_v24, %v1784_v33 }
 0x770   : > { %v5000_v36 = vpop.f32.mrf.mxu0 }
 0x772   : > { %v1967_v38 = vpop.f32.mrf.mxu0 }
 0x773   : > { %v1981_v39 = vmul.f32 0.35355338, %v1967_v38 }
 0x774   : > { %v5020_v40 = vpop.f32.mrf.mxu0 }
 0x775   : > { %v1984_v41 = vsel %vm1325_vm6, %v1981_v39, -inf }
 0x776   : > { %1985 = vmax.xlane.f32.xlu1 %v1984_v41  ;;  %v1972_v42 = vpop.f32.mrf.mxu0 }
 0x777   : > { %v1982_v43 = vmul.f32 0.35355338, %v1972_v42 }
 0x778   : > { %v5023_v44 = vpop.f32.mrf.mxu0 }
 0x779   : > { %v1987_v45 = vsel %vm1325_vm6, %v1982_v43, -inf }
 0x77a   : > { %1988 = vmax.xlane.f32.xlu0 %v1987_v45  ;;  %v1977_v46 = vpop.f32.mrf.mxu0 }
 0x77b   : > { %v1983_v47 = vmul.f32 0.35355338, %v1977_v46 }
 0x77c   : > { %v5026_v48 = vpop.f32.mrf.mxu0 }
 0x77d   : > { %v1990_v49 = vsel %vm1332_vm7, %v1983_v47, -inf }
 0x77e   : > { %1991 = vmax.xlane.f32.xlu0 %v1990_v49 }
 0x787   : > { %2021 = vrot.lane.b32.xlu1 %v5874_v23, %s5547_s21 }
 0x78b   : > { %2017 = vrot.lane.b32.xlu1 %v5871_v22, %s5547_s21 }
 0x78f   : > { %2218 = vrot.lane.b32.xlu1 %v5874_v23, %s5548_s0 }
 0x793   : > { %2216 = vrot.lane.b32.xlu1 %v5866_v19, %s5548_s0 }
 0x7ff   : > { %v1986_v50 = vpop.xlane.xlu1 %1985 }
 0x800   : > { %v1993_v51 = vsub.f32 %v1981_v39, %v1986_v50  ;;  %v1213_v50 = vadd.f32 %v5863_v17, %v5924_v37 }
 0x802   : > { %v1996_v52 = vmul.f32 1.442695, %v1993_v51  ;;  %v6115_v51 = vrot.slane %v1213_v50, 3 }
 0x803   : > { %v2022_v53 = vpop.permute.xlu1 %2021  ;;  %v1989_v54 = vpop.xlane.xlu0 %1988 }
 0x804   : > { %5407 = vpow2.f32 %v1996_v52  ;;  %v1994_v55 = vsub.f32 %v1982_v43, %v1989_v54  ;;  %5028 = vmatpush3.msk.msra.mxu1 %vm1377_vm8, %v2022_v53 }
 0x805   : > { %5029 = vmatprep.subr.mxu1 %v5538_v28 }
 0x806   : > { %v1998_v56 = vmul.f32 1.442695, %v1994_v55 }
 0x807   : > { %v1992_v63 = vpop.xlane.xlu0 %1991  ;;  %v2018_v4 = vpop.permute.xlu1 %2017 }
 0x808   : > { %5409 = vpow2.f32 %v1998_v56  ;;  %v1995_v0 = vsub.f32 %v1983_v47, %v1992_v63 }
 0x80a   : > { %v2000_v1 = vmul.f32 1.442695, %v1995_v0 }
 0x80b   : > { %v2219_v5 = vpop.permute.xlu1 %2218 }
 0x80c   : > { %5411 = vpow2.f32 %v2000_v1 }
 0x80f   : > { %v2217_v6 = vpop.permute.xlu1 %2216 }
 0x811   : > { %v5408_v57 = vpop.eup %5407 }
 0x812   : > { %v2002_v58 = vsel %vm1325_vm6, %v5408_v57, 0.0 }
 0x813   : > { %2003 = vadd.xlane.f32.xlu0 %v2002_v58 }
 0x815   : > { %v5410_v59 = vpop.eup %5409 }
 0x816   : > { %v2005_v62 = vsel %vm1325_vm6, %v5410_v59, 0.0 }
 0x817   : > { %2006 = vadd.xlane.f32.xlu1 %v2005_v62 }
 0x819   : > { %v5412_v2 = vpop.eup %5411 }
 0x81a   : > { %v2008_v3 = vsel %vm1332_vm7, %v5412_v2, 0.0 }
 0x828   : > { %2208 = vrot.lane.b32.xlu1 %v5871_v22, %s5549_s24 }
 0x829   : > { %2019 = vrot.lane.b32.xlu0 %v5866_v19, %s5547_s21 }
 0x82c   : > { %2212 = vrot.lane.b32.xlu1 %v5874_v23, %s5549_s24 }
 0x848   : > { %2009 = vadd.xlane.f32.xlu0 %v2008_v3 }
 0x85e   : > { %2214 = vrot.lane.b32.xlu0 %v5871_v22, %s5548_s0 }
 0x862   : > { %2210 = vrot.lane.b32.xlu0 %v5866_v19, %s5549_s24 }
 0x89c   : > { %v2004_v7 = vpop.xlane.xlu0 %2003 }
 0x89d   : > { %5413 = vrcp.f32 %v2004_v7 }
 0x8a0   : > { %v2007_v8 = vpop.xlane.xlu1 %2006  ;;  %v2020_v9 = vpop.permute.xlu0 %2019 }
 0x8a1   : > { %5415 = vrcp.f32 %v2007_v8  ;;  %5030 = vmatpush3.msra.mxu1 %v2020_v9  ;;  %v1208_v9 = vadd.f32 %v5863_v17, %v5919_v34 }
 0x8a2   : > { %5031 = vmatprep.subr.mxu1 %v5538_v28 }
 0x8a3   : > { %5032 = vmatpush3.msra.mxu1 %v2018_v4 }
 0x8a4   : > { %5053 = vmatprep.subr.mxu1 %v5538_v28  ;;  %v2209_v20 = vpop.permute.xlu1 %2208 }
 0x8a8   : > { %v2213_v24 = vpop.permute.xlu1 %2212 }
 0x8aa   : > { %v5414_v10 = vpop.eup %5413 }
 0x8ab   : > { %v2012_v11 = vmul.f32 %v5414_v10, %v5408_v57  ;;  %v2560_v10 = vrot.slane %v1208_v9, 3 }
 0x8ad   : > { %5034 = vmatmul.mubr.msk.f32.vlgmr.msra.gmra.mxu1 %vm1325_vm6, %v2012_v11  ;;  %v2559_v11 = vrot.slane %v5874_v23, 3 }
 0x8ae   : > { %v5416_v12 = vpop.eup %5415  ;;  %5054 = vmatpush3.xpose.msk.msra.mxu1 %vm1229_vm5, %v2219_v5  ;;  %5036 = vmatprep.mubr.msk.f32.mxu1 %vm5539_vm4, %v5538_v28 }
 0x8af   : > { %5055 = vmatprep.subr.mxu1 %v5538_v28  ;;  %v2014_v13 = vmul.f32 %v5416_v12, %v5410_v59  ;;  %v6137_v12 = vsel %vm2558_vm9, %v2559_v11, %v2560_v10 }
 0x8b1   : > { %5037 = vmatmul.mubr.msk.f32.gmra.mxu1 %vm1325_vm6, %v2014_v13  ;;  %v6142_v13 = vsel %vm2558_vm9, %v2560_v10, %v6115_v51 }
 0x8b2   : > { %5056 = vmatpush3.xpose.msk.msra.mxu1 %vm1229_vm5, %v2217_v6  ;;  %5039 = vmatprep.mubr.msk.f32.mxu1 %vm5539_vm4, %v5538_v28 }
 0x8b3   : > { %5057 = vmatprep.subr.mxu1 %v5538_v28 }
 0x8d1   : > { %v2010_v14 = vpop.xlane.xlu0 %2009 }
 0x8d2   : > { %5417 = vrcp.f32 %v2010_v14 }
 0x8d5   : > { %v2215_v15 = vpop.permute.xlu0 %2214 }
 0x8d6   : > { %5058 = vmatpush3.xpose.msk.msra.mxu1 %vm1229_vm5, %v2215_v15 }
 0x8d7   : > { %5083 = vmatprep.subr.mxu1 %v5538_v28 }
 0x8d9   : > { %v2211_v21 = vpop.permute.xlu0 %2210 }
 0x8df   : > { %v5418_v16 = vpop.eup %5417 }
 0x8e0   : > { %v2016_v18 = vmul.f32 %v5418_v16, %v5412_v2 }
 0x8e2   : > { %5040 = vmatmul.mubr.msk.f32.gmra.mxu1 %vm1325_vm6, %v2016_v18 }
 0x8e3   : > { %5059 = vmatprep.mubr.msk.f32.mxu1 %vm5539_vm4, %v5538_v28 }
 0x8e6   : > { %5060 = vmatmul.mubr.msk.f32.vlgmr.msra.gmra.mxu1 %vm1229_vm5, %v2209_v20 }
 0x8e7   : > { %5062 = vmatprep.mubr.msk.f32.mxu1 %vm5539_vm4, %v5538_v28 }
 0x8ea   : > { %5063 = vmatmul.mubr.msk.f32.gmra.mxu1 %vm1229_vm5, %v2211_v21 }
 0x8eb   : > { %5065 = vmatprep.mubr.msk.f32.mxu1 %vm5539_vm4, %v5538_v28 }
 0x8ee   : > { %5066 = vmatmul.mubr.msk.f32.gmra.mxu1 %vm1229_vm5, %v2213_v24 }
 0x8ef   : > { %5085 = vmatprep.mubr.msk.f32.mxu1 %vm5539_vm4, %v5538_v28 }
 0x96d   : > { %v2102_v26 = vpop.f32.mrf.mxu1 }
 0x96e   : > { %5045 = vmatmul.mubr.msk.f32.vlgmr.msra.gmra.mxu0 %vm1229_vm5, %v2102_v26 }
 0x96f   : > { %v5035_v29 = vpop.f32.mrf.mxu1  ;;  %5047 = vmatprep.mubr.msk.f32.mxu0 %vm5539_vm4, %v5538_v28 }
 0x971   : > { %v2107_v30 = vpop.f32.mrf.mxu1 }
 0x972   : > { %5048 = vmatmul.mubr.msk.f32.gmra.mxu0 %vm1229_vm5, %v2107_v30 }
 0x973   : > { %v5038_v32 = vpop.f32.mrf.mxu1  ;;  %5050 = vmatprep.mubr.msk.f32.mxu0 %vm5539_vm4, %v5538_v28 }
 0x9a2   : > { %v2112_v33 = vpop.f32.mrf.mxu1 }
 0x9a3   : > { %5051 = vmatmul.mubr.msk.f32.gmra.mxu0 %vm1229_vm5, %v2112_v33 }
 0x9a4   : > { %v5041_v36 = vpop.f32.mrf.mxu1  ;;  %5074 = vmatprep.mubr.msk.f32.mxu0 %vm5539_vm4, %v5538_v28 }
 0x9a6   : > { %v2298_v38 = vpop.f32.mrf.mxu1 }
 0x9a7   : > { %v2312_v39 = vmul.f32 0.35355338, %v2298_v38 }
 0x9a8   : > { %v5061_v40 = vpop.f32.mrf.mxu1 }
 0x9a9   : > { %v2315_v41 = vsel %vm1325_vm6, %v2312_v39, -inf }
 0x9aa   : > { %2316 = vmax.xlane.f32.xlu0 %v2315_v41  ;;  %v2303_v42 = vpop.f32.mrf.mxu1 }
 0x9ab   : > { %v2313_v43 = vmul.f32 0.35355338, %v2303_v42  ;;  %v6206_v42 = vld [vmem:[%s6730_s20 + $0x18] sm:$0xff] }
 0x9ac   : > { %v5064_v44 = vpop.f32.mrf.mxu1  ;;  %5084 = vmatpush3.msra.mxu1 %v6206_v42 }
 0x9ad   : > { %v2318_v45 = vsel %vm1325_vm6, %v2313_v43, -inf  ;;  %5109 = vmatprep.subr.mxu1 %v5538_v28 }
 0x9ae   : > { %2319 = vmax.xlane.f32.xlu1 %v2318_v45  ;;  %v2308_v46 = vpop.f32.mrf.mxu1 }
 0x9af   : > { %v2314_v47 = vmul.f32 0.35355338, %v2308_v46 }
 0x9b0   : > { %v5067_v48 = vpop.f32.mrf.mxu1 }
 0x9b1   : > { %v2321_v49 = vsel %vm1332_vm7, %v2314_v47, -inf }
 0x9b2   : > { %2322 = vmax.xlane.f32.xlu0 %v2321_v49 }
 0x9bf   : > { %2350 = vrot.lane.b32.xlu1 %v5866_v19, %s5550_s23 }
 0x9c3   : > { %2348 = vrot.lane.b32.xlu1 %v5871_v22, %s5550_s23 }
 0x9c7   : > { %2568 = vrot.lane.b32.xlu1 %v6115_v51, %s5540_s5 }
 0x9c8   : > { %2352 = vrot.lane.b32.xlu0 %v5874_v23, %s5550_s23 }
 0xa2e   : > { %v2191_v52 = vpop.f32.mrf.mxu0 }
 0xa2f   : > { %v6122_v53 = vadd.f32 %v2191_v52, %v6034_v27 }
 0xa30   : > { %v5046_v54 = vpop.f32.mrf.mxu0 }
 0xa32   : > { %v2196_v19 = vpop.f32.mrf.mxu0 }
 0xa33   : > { %v6125_v55 = vadd.f32 %v2196_v19, %v6036_v31  ;;  %v2317_v37 = vpop.xlane.xlu0 %2316 }
 0xa34   : > { %v2324_v56 = vsub.f32 %v2312_v39, %v2317_v37  ;;  %v5049_v22 = vpop.f32.mrf.mxu0 }
 0xa36   : > { %v2327_v57 = vmul.f32 1.442695, %v2324_v56 }
 0xa37   : > { %v2320_v58 = vpop.xlane.xlu1 %2319 }
 0xa38   : > { %5419 = vpow2.f32 %v2327_v57  ;;  %v2325_v59 = vsub.f32 %v2313_v43, %v2320_v58 }
 0xa3a   : > { %v2329_v62 = vmul.f32 1.442695, %v2325_v59 }
 0xa3b   : > { %v2323_v63 = vpop.xlane.xlu0 %2322  ;;  %v2351_v1 = vpop.permute.xlu1 %2350 }
 0xa3c   : > { %5421 = vpow2.f32 %v2329_v62  ;;  %v2326_v0 = vsub.f32 %v2314_v47, %v2323_v63 }
 0xa3e   : > { %v2331_v2 = vmul.f32 1.442695, %v2326_v0 }
 0xa3f   : > { %v2353_v27 = vpop.permute.xlu0 %2352  ;;  %v2349_v31 = vpop.permute.xlu1 %2348 }
 0xa40   : > { %5423 = vpow2.f32 %v2331_v2  ;;  %5069 = vmatpush3.msk.msra.mxu0 %vm1377_vm8, %v2353_v27 }
 0xa41   : > { %5070 = vmatprep.subr.mxu0 %v5538_v28 }
 0xa42   : > { %5071 = vmatpush3.msra.mxu0 %v2351_v1 }
 0xa43   : > { %5072 = vmatprep.subr.mxu0 %v5538_v28  ;;  %v2569_v34 = vpop.permute.xlu1 %2568 }
 0xa44   : > { %5073 = vmatpush3.msra.mxu0 %v2349_v31 }
 0xa45   : > { %v5420_v3 = vpop.eup %5419  ;;  %5094 = vmatprep.subr.mxu0 %v5538_v28 }
 0xa46   : > { %v2333_v4 = vsel %vm1325_vm6, %v5420_v3, 0.0 }
 0xa47   : > { %2334 = vadd.xlane.f32.xlu0 %v2333_v4 }
 0xa49   : > { %v5422_v5 = vpop.eup %5421 }
 0xa4a   : > { %v2336_v6 = vsel %vm1325_vm6, %v5422_v5, 0.0 }
 0xa4b   : > { %2337 = vadd.xlane.f32.xlu0 %v2336_v6 }
 0xa4d   : > { %v5424_v7 = vpop.eup %5423 }
 0xa4e   : > { %v2339_v8 = vsel %vm1332_vm7, %v5424_v7, 0.0 }
 0xa4f   : > { %2340 = vadd.xlane.f32.xlu1 %v2339_v8 }
 0xa60   : > { %2564 = vrot.lane.b32.xlu1 %v6137_v12, %s5540_s5 }
 0xa61   : > { %2566 = vrot.lane.b32.xlu0 %v6142_v13, %s5540_s5 }
 0xa63   : > { %v2201_v14 = vpop.f32.mrf.mxu0 }
 0xa64   : > { %v6147_v15 = vadd.f32 %v2201_v14, %v6038_v35  ;;  %2805 = vrot.lane.b32.xlu1 %v6142_v13, %s5541_s1 }
 0xa65   : > { %v5052_v17 = vpop.f32.mrf.mxu0  ;;  %2807 = vrot.lane.b32.xlu0 %v6115_v51, %s5541_s1 }
 0xa68   : > { %2797 = vrot.lane.b32.xlu1 %v6137_v12, %s5542_s27 }
 0xa69   : > { %2803 = vrot.lane.b32.xlu0 %v6137_v12, %s5541_s1 }
 0xa6c   : > { %2801 = vrot.lane.b32.xlu1 %v6115_v51, %s5542_s27 }
 0xa6d   : > { %2799 = vrot.lane.b32.xlu0 %v6142_v13, %s5542_s27  ;;  %s6731_s27 = scalar_lea.vmem %s6686_s12, %s5683_s3 }
 0xad0   : > { %v2335_v23 = vpop.xlane.xlu0 %2334 }
 0xad1   : > { %5425 = vrcp.f32 %v2335_v23 }
 0xad4   : > { %v2338_v35 = vpop.xlane.xlu0 %2337 }
 0xad5   : > { %5427 = vrcp.f32 %v2338_v35 }
 0xad8   : > { %v2341_v16 = vpop.xlane.xlu1 %2340  ;;  %v2567_v26 = vpop.permute.xlu0 %2566 }
 0xad9   : > { %5429 = vrcp.f32 %v2341_v16 }
 0xadc   : > { %v2565_v32 = vpop.permute.xlu1 %2564  ;;  %v2808_v33 = vpop.permute.xlu0 %2807 }
 0xade   : > { %v5426_v18 = vpop.eup %5425 }
 0xadf   : > { %v2343_v20 = vmul.f32 %v5426_v18, %v5420_v3 }
 0xae0   : > { %v2806_v36 = vpop.permute.xlu1 %2805  ;;  %v2804_v38 = vpop.permute.xlu0 %2803 }
 0xae1   : > { %5075 = vmatmul.mubr.msk.f32.vlgmr.msra.gmra.mxu0 %vm1325_vm6, %v2343_v20 }
 0xae2   : > { %v5428_v21 = vpop.eup %5427  ;;  %5095 = vmatpush3.xpose.msk.msra.mxu0 %vm1229_vm5, %v2569_v34  ;;  %5077 = vmatprep.mubr.msk.f32.mxu0 %vm5539_vm4, %v5538_v28 }
 0xae3   : > { %5096 = vmatprep.subr.mxu0 %v5538_v28  ;;  %v2345_v24 = vmul.f32 %v5428_v21, %v5422_v5 }
 0xae4   : > { %v2798_v39 = vpop.permute.xlu1 %2797  ;;  %v2800_v40 = vpop.permute.xlu0 %2799 }
 0xae5   : > { %5078 = vmatmul.mubr.msk.f32.gmra.mxu0 %vm1325_vm6, %v2345_v24 }
 0xae6   : > { %v5430_v29 = vpop.eup %5429  ;;  %5097 = vmatpush3.xpose.msk.msra.mxu0 %vm1229_vm5, %v2567_v26  ;;  %5080 = vmatprep.mubr.msk.f32.mxu0 %vm5539_vm4, %v5538_v28 }
 0xae7   : > { %5098 = vmatprep.subr.mxu0 %v5538_v28  ;;  %v2347_v30 = vmul.f32 %v5430_v29, %v5424_v7 }
 0xae8   : > { %v2802_v41 = vpop.permute.xlu1 %2801 }
 0xae9   : > { %5081 = vmatmul.mubr.msk.f32.gmra.mxu0 %vm1325_vm6, %v2347_v30 }
 0xaea   : > { %5099 = vmatpush3.xpose.msk.msra.mxu0 %vm1229_vm5, %v2565_v32  ;;  %5100 = vmatprep.mubr.msk.f32.mxu0 %vm5539_vm4, %v5538_v28 }
 0xaeb   : > { %5124 = vmatprep.subr.mxu0 %v5538_v28 }
 0xaed   : > { %5101 = vmatmul.mubr.msk.f32.vlgmr.msra.gmra.mxu0 %vm1229_vm5, %v6137_v12 }
 0xaee   : > { %5125 = vmatpush3.xpose.msk.msra.mxu0 %vm1229_vm5, %v2808_v33  ;;  %5103 = vmatprep.mubr.msk.f32.mxu0 %vm5539_vm4, %v5538_v28 }
 0xaef   : > { %5126 = vmatprep.subr.mxu0 %v5538_v28 }
 0xaf1   : > { %5104 = vmatmul.mubr.msk.f32.gmra.mxu0 %vm1229_vm5, %v6142_v13 }
 0xaf2   : > { %5127 = vmatpush3.xpose.msk.msra.mxu0 %vm1229_vm5, %v2806_v36  ;;  %5106 = vmatprep.mubr.msk.f32.mxu0 %vm5539_vm4, %v5538_v28 }
 0xaf3   : > { %5128 = vmatprep.subr.mxu0 %v5538_v28 }
 0xaf5   : > { %5107 = vmatmul.mubr.msk.f32.gmra.mxu0 %vm1229_vm5, %v6115_v51 }
 0xaf6   : > { %5129 = vmatpush3.xpose.msk.msra.mxu0 %vm1229_vm5, %v2804_v38  ;;  %5130 = vmatprep.mubr.msk.f32.mxu0 %vm5539_vm4, %v5538_v28 }
 0xaf7   : > { %5154 = vmatprep.subr.mxu0 %v5538_v28 }
 0xaf9   : > { %5131 = vmatmul.mubr.msk.f32.vlgmr.msra.gmra.mxu0 %vm1229_vm5, %v2798_v39 }
 0xafa   : > { %5133 = vmatprep.mubr.msk.f32.mxu0 %vm5539_vm4, %v5538_v28  ;;  %5155 = vmatpush3.msra.mxu0 %v5997_v61 }
 0xafb   : > { %5176 = vmatprep.subr.mxu0 %v5538_v28 }
 0xafd   : > { %5134 = vmatmul.mubr.msk.f32.gmra.mxu0 %vm1229_vm5, %v2800_v40 }
 0xafe   : > { %5136 = vmatprep.mubr.msk.f32.mxu0 %vm5539_vm4, %v5538_v28 }
 0xb01   : > { %5137 = vmatmul.mubr.msk.f32.gmra.mxu0 %vm1229_vm5, %v2802_v41 }
 0xb02   : > { %5156 = vmatprep.mubr.msk.f32.mxu0 %vm5539_vm4, %v5538_v28 }
 0xba1   : > { %v2433_v61 = vpop.f32.mrf.mxu0 }
 0xba2   : > { %5086 = vmatmul.mubr.msk.f32.vlgmr.msra.gmra.mxu1 %vm1229_vm5, %v2433_v61 }
 0xba3   : > { %v5076_v43 = vpop.f32.mrf.mxu0  ;;  %5088 = vmatprep.mubr.msk.f32.mxu1 %vm5539_vm4, %v5538_v28 }
 0xba5   : > { %v2438_v44 = vpop.f32.mrf.mxu0 }
 0xba6   : > { %5089 = vmatmul.mubr.msk.f32.gmra.mxu1 %vm1229_vm5, %v2438_v44 }
 0xba7   : > { %v5079_v45 = vpop.f32.mrf.mxu0  ;;  %5091 = vmatprep.mubr.msk.f32.mxu1 %vm5539_vm4, %v5538_v28 }
 0xba9   : > { %v2443_v46 = vpop.f32.mrf.mxu0 }
 0xbaa   : > { %5092 = vmatmul.mubr.msk.f32.gmra.mxu1 %vm1229_vm5, %v2443_v46 }
 0xbab   : > { %v5082_v47 = vpop.f32.mrf.mxu0  ;;  %5115 = vmatprep.mubr.msk.f32.mxu1 %vm5539_vm4, %v5538_v28 }
 0xbad   : > { %v2648_v48 = vpop.f32.mrf.mxu0 }
 0xbae   : > { %v2662_v49 = vmul.f32 0.35355338, %v2648_v48 }
 0xbaf   : > { %v5102_v50 = vpop.f32.mrf.mxu0 }
 0xbb0   : > { %v2665_v52 = vsel %vm1325_vm6, %v2662_v49, -inf }
 0xbb1   : > { %2666 = vmax.xlane.f32.xlu0 %v2665_v52  ;;  %v2653_v54 = vpop.f32.mrf.mxu0 }
 0xbb2   : > { %v2663_v19 = vmul.f32 0.35355338, %v2653_v54 }
 0xbb3   : > { %v5105_v37 = vpop.f32.mrf.mxu0 }
 0xbb4   : > { %v2668_v56 = vsel %vm1325_vm6, %v2663_v19, -inf }
 0xbb5   : > { %2669 = vmax.xlane.f32.xlu1 %v2668_v56  ;;  %v2658_v22 = vpop.f32.mrf.mxu0  ;;  %v5499_v56 = vld [vmem:[#allocation2] sm:$0xff] }
 0xbb6   : > { %v2664_v57 = vmul.f32 0.35355338, %v2658_v22 }
 0xbb7   : > { %v5108_v58 = vpop.f32.mrf.mxu0 }
 0xbb8   : > { %v2671_v59 = vsel %vm1332_vm7, %v2664_v57, -inf }
 0xbb9   : > { %2672 = vmax.xlane.f32.xlu0 %v2671_v59  ;;  %v2887_v62 = vpop.f32.mrf.mxu0 }
 0xbba   : > { %v2901_v63 = vmul.f32 0.35355338, %v2887_v62 }
 0xbbb   : > { %v5132_v0 = vpop.f32.mrf.mxu0 }
 0xbbc   : > { %v2904_v1 = vsel %vm1325_vm6, %v2901_v63, -inf }
 0xbbd   : > { %2905 = vmax.xlane.f32.xlu0 %v2904_v1  ;;  %v2892_v2 = vpop.f32.mrf.mxu0 }
 0xbbe   : > { %v2902_v27 = vmul.f32 0.35355338, %v2892_v2 }
 0xbbf   : > { %v5135_v31 = vpop.f32.mrf.mxu0 }
 0xbc0   : > { %v2907_v3 = vsel %vm1325_vm6, %v2902_v27, -inf  ;;  %v6275_v31 = vld [vmem:[#allocation2 + $0x10] sm:$0xff] }
 0xbc1   : > { %2908 = vmax.xlane.f32.xlu0 %v2907_v3  ;;  %v2897_v4 = vpop.f32.mrf.mxu0 }
 0xbc2   : > { %v2903_v5 = vmul.f32 0.35355338, %v2897_v4 }
 0xbc3   : > { %v5138_v6 = vpop.f32.mrf.mxu0 }
 0xbc4   : > { %v2910_v7 = vsel %vm1332_vm7, %v2903_v5, -inf }
 0xbc5   : > { %2911 = vmax.xlane.f32.xlu1 %v2910_v7 }
 0xbd6   : > { %2700 = vrot.lane.b32.xlu1 %v6142_v13, %s5543_s22 }
 0xbd7   : > { %2702 = vrot.lane.b32.xlu0 %v6115_v51, %s5543_s22 }
 0xbda   : > { %2698 = vrot.lane.b32.xlu1 %v6137_v12, %s5543_s22  ;;  %s6737_s22 = sld [smem:[#allocation17_spill]] (!%p4726_p6) }
 0xbde   : > { %2941 = vrot.lane.b32.xlu1 %v6115_v51, %s5544_s29 }
 0xc3a   : > { %v2667_v8 = vpop.xlane.xlu0 %2666 }
 0xc3b   : > { %v2674_v9 = vsub.f32 %v2662_v49, %v2667_v8 }
 0xc3d   : > { %v2677_v10 = vmul.f32 1.442695, %v2674_v9 }
 0xc3e   : > { %v2670_v11 = vpop.xlane.xlu1 %2669 }
 0xc3f   : > { %5431 = vpow2.f32 %v2677_v10  ;;  %v2675_v14 = vsub.f32 %v2663_v19, %v2670_v11  ;;  %v6267_v19 = vld [vmem:[%s6731_s27] ss:$0 sm:$0xff]  ;;  %s6736_s27 = sld [smem:[#allocation16_spill]] (!%p4726_p6) }
 0xc41   : > { %v2679_v17 = vmul.f32 1.442695, %v2675_v14 }
 0xc42   : > { %v2673_v23 = vpop.xlane.xlu0 %2672 }
 0xc43   : > { %5433 = vpow2.f32 %v2679_v17  ;;  %v2676_v34 = vsub.f32 %v2664_v57, %v2673_v23 }
 0xc45   : > { %v2681_v35 = vmul.f32 1.442695, %v2676_v34 }
 0xc46   : > { %v2906_v16 = vpop.xlane.xlu0 %2905 }
 0xc47   : > { %5435 = vpow2.f32 %v2681_v35  ;;  %v2913_v18 = vsub.f32 %v2901_v63, %v2906_v16  ;;  %v5500_v63 = vld [vmem:[#allocation2 + $0x8] sm:$0xff] }
 0xc49   : > { %v2916_v20 = vmul.f32 1.442695, %v2913_v18 }
 0xc4a   : > { %v2909_v21 = vpop.xlane.xlu0 %2908 }
 0xc4b   : > { %5437 = vpow2.f32 %v2916_v20  ;;  %v2914_v24 = vsub.f32 %v2902_v27, %v2909_v21 }
 0xc4c   : > { %v6233_v26 = vpop.eup %5431 }
 0xc4d   : > { %v2918_v29 = vmul.f32 1.442695, %v2914_v24  ;;  %v2683_v30 = vsel %vm1325_vm6, %v6233_v26, 0.0 }
 0xc4e   : > { %v2912_v32 = vpop.xlane.xlu1 %2911  ;;  %2684 = vadd.xlane.f32.xlu0 %v2683_v30  ;;  %v2703_v33 = vpop.permute.xlu0 %2702 }
 0xc4f   : > { %5439 = vpow2.f32 %v2918_v29  ;;  %v2915_v36 = vsub.f32 %v2903_v5, %v2912_v32  ;;  %5110 = vmatpush3.msk.msra.mxu1 %vm1377_vm8, %v2703_v33 }
 0xc50   : > { %v6238_v38 = vpop.eup %5433  ;;  %5111 = vmatprep.subr.mxu1 %v5538_v28 }
 0xc51   : > { %v2920_v39 = vmul.f32 1.442695, %v2915_v36  ;;  %v2686_v40 = vsel %vm1325_vm6, %v6238_v38, 0.0 }
 0xc52   : > { %2687 = vadd.xlane.f32.xlu1 %v2686_v40  ;;  %v2701_v41 = vpop.permute.xlu1 %2700 }
 0xc53   : > { %5441 = vpow2.f32 %v2920_v39  ;;  %5112 = vmatpush3.msra.mxu1 %v2701_v41 }
 0xc54   : > { %v6243_v61 = vpop.eup %5435  ;;  %5113 = vmatprep.subr.mxu1 %v5538_v28 }
 0xc55   : > { %v2689_v43 = vsel %vm1332_vm7, %v6243_v61, 0.0 }
 0xc56   : > { %v2699_v44 = vpop.permute.xlu1 %2698  ;;  %2690 = vadd.xlane.f32.xlu0 %v2689_v43 }
 0xc57   : > { %5114 = vmatpush3.msra.mxu1 %v2699_v44 }
 0xc58   : > { %v6248_v45 = vpop.eup %5437  ;;  %5139 = vmatprep.subr.mxu1 %v5538_v28 }
 0xc59   : > { %v2922_v46 = vsel %vm1325_vm6, %v6248_v45, 0.0 }
 0xc5a   : > { %2923 = vadd.xlane.f32.xlu1 %v2922_v46 }
 0xc5c   : > { %v6253_v47 = vpop.eup %5439 }
 0xc5d   : > { %v2925_v48 = vsel %vm1325_vm6, %v6253_v47, 0.0 }
 0xc5e   : > { %2926 = vadd.xlane.f32.xlu0 %v2925_v48 }
 0xc60   : > { %v6257_v49 = vpop.eup %5441 }
 0xc61   : > { %v2928_v50 = vsel %vm1332_vm7, %v6257_v49, 0.0 }
 0xc62   : > { %v2522_v52 = vpop.f32.mrf.mxu1  ;;  %2929 = vadd.xlane.f32.xlu1 %v2928_v50 }
 0xc63   : > { %v2536_v54 = vadd.f32 %v2522_v52, %v6122_v53 }
 0xc64   : > { %v5087_v37 = vpop.f32.mrf.mxu1 }
 0xc65   : > { %v2539_v22 = vadd.f32 %v5499_v56, %v2536_v54 }
 0xc66   : > { %v2527_v57 = vpop.f32.mrf.mxu1 }
 0xc67   : > { %v2549_v58 = vadd.f32 %v6267_v19, %v2539_v22  ;;  %v2537_v59 = vadd.f32 %v2527_v57, %v6125_v55 }
 0xc68   : > { %v5090_v62 = vpop.f32.mrf.mxu1 }
 0xc69   : > { %2552 = vst.msk [vmem:[#allocation2] sm:$0xff] %vm1010_vm2, %v2549_v58  ;;  %v2540_v0 = vadd.f32 %v5500_v63, %v2537_v59 }
 0xc6a   : > { %v2532_v53 = vpop.f32.mrf.mxu1 }
 0xc6b   : > { %v2550_v1 = vadd.f32 %v6267_v19, %v2540_v0  ;;  %v2538_v2 = vadd.f32 %v2532_v53, %v6147_v15  ;;  %v2942_v15 = vpop.permute.xlu1 %2941 }
 0xc6c   : > { %v5093_v27 = vpop.f32.mrf.mxu1 }
 0xc6d   : > { %2553 = vst.msk [vmem:[#allocation2 + $0x8] sm:$0xff] %vm1010_vm2, %v2550_v1  ;;  %v2541_v3 = vadd.f32 %v6275_v31, %v2538_v2 }
 0xc6f   : > { %v2551_v55 = vadd.f32 %v6267_v19, %v2541_v3 }
 0xc71   : > { %2555 = vst.msk [vmem:[#allocation2 + $0x10] sm:$0x7] %vm2554_vm10, %v2551_v55 }
 0xc73   : > { %2937 = vrot.lane.b32.xlu1 %v6137_v12, %s5544_s29 }
 0xc74   : > { %2939 = vrot.lane.b32.xlu0 %v6142_v13, %s5544_s29 }
 0xc77   : > { %3222 = vrot.lane.b32.xlu1 %v6142_v13, %s5545_s25 }
 0xc78   : > { %3224 = vrot.lane.b32.xlu0 %v6115_v51, %s5545_s25 }
 0xc7b   : > { %3214 = vrot.lane.b32.xlu1 %v6137_v12, %s5546_s26 }
 0xc7c   : > { %3220 = vrot.lane.b32.xlu0 %v6137_v12, %s5545_s25  ;;  %s6732_s25 = scalar_lea.vmem %s6688_s14, %s5683_s3 }
 0xc7f   : > { %3218 = vrot.lane.b32.xlu1 %v6115_v51, %s5546_s26 }
 0xc80   : > { %3216 = vrot.lane.b32.xlu0 %v6142_v13, %s5546_s26  ;;  %s6733_s26 = scalar_lea.vmem %s6690_s16, %s5683_s3 }
 0xcd7   : > { %v2685_v4 = vpop.xlane.xlu0 %2684 }
 0xcd8   : > { %5443 = vrcp.f32 %v2685_v4 }
 0xcdb   : > { %v2688_v5 = vpop.xlane.xlu1 %2687 }
 0xcdc   : > { %5445 = vrcp.f32 %v2688_v5 }
 0xcdf   : > { %v2691_v6 = vpop.xlane.xlu0 %2690 }
 0xce0   : > { %5447 = vrcp.f32 %v2691_v6 }
 0xce3   : > { %v2924_v7 = vpop.xlane.xlu1 %2923 }
 0xce4   : > { %5449 = vrcp.f32 %v2924_v7 }
 0xce5   : > { %v5444_v8 = vpop.eup %5443 }
 0xce6   : > { %v2693_v9 = vmul.f32 %v5444_v8, %v6233_v26 }
 0xce7   : > { %v2927_v10 = vpop.xlane.xlu0 %2926 }
 0xce8   : > { %5451 = vrcp.f32 %v2927_v10  ;;  %5116 = vmatmul.mubr.msk.f32.vlgmr.msra.gmra.mxu1 %vm1325_vm6, %v2693_v9 }
 0xce9   : > { %v5446_v11 = vpop.eup %5445  ;;  %5140 = vmatpush3.msk.msra.mxu1 %vm1377_vm8, %v2942_v15  ;;  %5118 = vmatprep.mubr.msk.f32.mxu1 %vm5539_vm4, %v5538_v28 }
 0xcea   : > { %5141 = vmatprep.subr.mxu1 %v5538_v28  ;;  %v2695_v14 = vmul.f32 %v5446_v11, %v6238_v38 }
 0xceb   : > { %v2930_v17 = vpop.xlane.xlu1 %2929  ;;  %v2940_v23 = vpop.permute.xlu0 %2939 }
 0xcec   : > { %5453 = vrcp.f32 %v2930_v17  ;;  %5119 = vmatmul.mubr.msk.f32.gmra.mxu1 %vm1325_vm6, %v2695_v14 }
 0xced   : > { %v5448_v34 = vpop.eup %5447  ;;  %5142 = vmatpush3.msra.mxu1 %v2940_v23  ;;  %5121 = vmatprep.mubr.msk.f32.mxu1 %vm5539_vm4, %v5538_v28 }
 0xcee   : > { %5143 = vmatprep.subr.mxu1 %v5538_v28  ;;  %v2697_v35 = vmul.f32 %v5448_v34, %v6243_v61 }
 0xcef   : > { %v2938_v16 = vpop.permute.xlu1 %2937  ;;  %v3225_v40 = vpop.permute.xlu0 %3224 }
 0xcf0   : > { %5122 = vmatmul.mubr.msk.f32.gmra.mxu1 %vm1325_vm6, %v2697_v35 }
 0xcf1   : > { %v5450_v18 = vpop.eup %5449  ;;  %5144 = vmatpush3.msra.mxu1 %v2938_v16  ;;  %5145 = vmatprep.mubr.msk.f32.mxu1 %vm5539_vm4, %v5538_v28 }
 0xcf2   : > { %v2932_v20 = vmul.f32 %v5450_v18, %v6248_v45  ;;  %5165 = vmatprep.subr.mxu1 %v5538_v28 }
 0xcf3   : > { %v3223_v43 = vpop.permute.xlu1 %3222  ;;  %v3221_v46 = vpop.permute.xlu0 %3220 }
 0xcf4   : > { %5146 = vmatmul.mubr.msk.f32.vlgmr.msra.gmra.mxu1 %vm1325_vm6, %v2932_v20 }
 0xcf5   : > { %v5452_v21 = vpop.eup %5451  ;;  %5148 = vmatprep.mubr.msk.f32.mxu1 %vm5539_vm4, %v5538_v28  ;;  %5166 = vmatpush3.msra.mxu1 %v5992_v60 }
 0xcf6   : > { %v2934_v24 = vmul.f32 %v5452_v21, %v6253_v47  ;;  %5191 = vmatprep.subr.mxu1 %v5538_v28 }
 0xcf7   : > { %v3215_v48 = vpop.permute.xlu1 %3214 }
 0xcf8   : > { %5149 = vmatmul.mubr.msk.f32.gmra.mxu1 %vm1325_vm6, %v2934_v24 }
 0xcf9   : > { %v5454_v26 = vpop.eup %5453  ;;  %5151 = vmatprep.mubr.msk.f32.mxu1 %vm5539_vm4, %v5538_v28 }
 0xcfa   : > { %v2936_v29 = vmul.f32 %v5454_v26, %v6257_v49  ;;  %v3217_v49 = vpop.permute.xlu0 %3216 }
 0xcfb   : > { %v3219_v50 = vpop.permute.xlu1 %3218 }
 0xcfc   : > { %5152 = vmatmul.mubr.msk.f32.gmra.mxu1 %vm1325_vm6, %v2936_v29 }
 0xcfd   : > { %5167 = vmatprep.mubr.msk.f32.mxu1 %vm5539_vm4, %v5538_v28 }
 0xda8   : > { %v2783_v30 = vpop.f32.mrf.mxu1 }
 0xda9   : > { %5168 = vmatmul.mubr.msk.f32.vlgmr.msra.gmra.mxu1 %vm1229_vm5, %v2783_v30 }
 0xdaa   : > { %v5117_v60 = vpop.f32.mrf.mxu1  ;;  %5170 = vmatprep.mubr.msk.f32.mxu1 %vm5539_vm4, %v5538_v28 }
 0xdac   : > { %v2788_v32 = vpop.f32.mrf.mxu1 }
 0xdad   : > { %5171 = vmatmul.mubr.msk.f32.gmra.mxu1 %vm1229_vm5, %v2788_v32 }
 0xdae   : > { %v5120_v33 = vpop.f32.mrf.mxu1  ;;  %5173 = vmatprep.mubr.msk.f32.mxu1 %vm5539_vm4, %v5538_v28 }
 0xdb0   : > { %v2793_v36 = vpop.f32.mrf.mxu1 }
 0xdb1   : > { %5174 = vmatmul.mubr.msk.f32.gmra.mxu1 %vm1229_vm5, %v2793_v36 }
 0xdb2   : > { %v5123_v38 = vpop.f32.mrf.mxu1  ;;  %5197 = vmatprep.mubr.msk.f32.mxu1 %vm5539_vm4, %v5538_v28 }
 0xdb4   : > { %v3022_v39 = vpop.f32.mrf.mxu1 }
 0xdb5   : > { %5157 = vmatmul.mubr.msk.f32.vlgmr.msra.gmra.mxu0 %vm1229_vm5, %v3022_v39 }
 0xdb6   : > { %5177 = vmatpush3.xpose.msk.msra.mxu0 %vm1229_vm5, %v3225_v40  ;;  %v5147_v41 = vpop.f32.mrf.mxu1  ;;  %5159 = vmatprep.mubr.msk.f32.mxu0 %vm5539_vm4, %v5538_v28 }
 0xdb7   : > { %5178 = vmatprep.subr.mxu0 %v5538_v28 }
 0xdb8   : > { %v3027_v61 = vpop.f32.mrf.mxu1 }
 0xdb9   : > { %5160 = vmatmul.mubr.msk.f32.gmra.mxu0 %vm1229_vm5, %v3027_v61 }
 0xdba   : > { %5179 = vmatpush3.xpose.msk.msra.mxu0 %vm1229_vm5, %v3223_v43  ;;  %v5150_v44 = vpop.f32.mrf.mxu1  ;;  %5162 = vmatprep.mubr.msk.f32.mxu0 %vm5539_vm4, %v5538_v28 }
 0xdbb   : > { %5180 = vmatprep.subr.mxu0 %v5538_v28 }
 0xdbc   : > { %v3032_v45 = vpop.f32.mrf.mxu1 }
 0xdbd   : > { %5163 = vmatmul.mubr.msk.f32.gmra.mxu0 %vm1229_vm5, %v3032_v45 }
 0xdbe   : > { %5181 = vmatpush3.xpose.msk.msra.mxu0 %vm1229_vm5, %v3221_v46  ;;  %v5153_v47 = vpop.f32.mrf.mxu1  ;;  %5182 = vmatprep.mubr.msk.f32.mxu0 %vm5539_vm4, %v5538_v28 }
 0xdbf   : > { %5206 = vmatprep.subr.mxu0 %v5538_v28 }
 0xdc1   : > { %5183 = vmatmul.mubr.msk.f32.vlgmr.msra.gmra.mxu0 %vm1229_vm5, %v3215_v48 }
 0xdc2   : > { %5185 = vmatprep.mubr.msk.f32.mxu0 %vm5539_vm4, %v5538_v28  ;;  %5207 = vmatpush3.msra.mxu0 %v6090_v25 }
 0xdc3   : > { %5232 = vmatprep.subr.mxu0 %v5538_v28 }
 0xdc5   : > { %5186 = vmatmul.mubr.msk.f32.gmra.mxu0 %vm1229_vm5, %v3217_v49 }
 0xdc6   : > { %5188 = vmatprep.mubr.msk.f32.mxu0 %vm5539_vm4, %v5538_v28 }
 0xdc9   : > { %5189 = vmatmul.mubr.msk.f32.gmra.mxu0 %vm1229_vm5, %v3219_v50 }
 0xdca   : > { %5208 = vmatprep.mubr.msk.f32.mxu0 %vm5539_vm4, %v5538_v28 }
 0xe69   : > { %v3200_v52 = vpop.f32.mrf.mxu1 }
 0xe6b   : > { %v5169_v54 = vpop.f32.mrf.mxu1 }
 0xe6d   : > { %v3205_v37 = vpop.f32.mrf.mxu1 }
 0xe6f   : > { %v5172_v56 = vpop.f32.mrf.mxu1 }
 0xe71   : > { %v3210_v22 = vpop.f32.mrf.mxu1 }
 0xe73   : > { %v5175_v25 = vpop.f32.mrf.mxu1 }
 0xe75   : > { %v3111_v57 = vpop.f32.mrf.mxu0 }
 0xe76   : > { %v6361_v58 = vadd.f32 %v3200_v52, %v3111_v57 }
 0xe77   : > { %v5158_v59 = vpop.f32.mrf.mxu0 }
 0xe79   : > { %v3116_v62 = vpop.f32.mrf.mxu0 }
 0xe7a   : > { %v6363_v63 = vadd.f32 %v3205_v37, %v3116_v62 }
 0xe7b   : > { %v5161_v0 = vpop.f32.mrf.mxu0 }
 0xe7d   : > { %v3121_v53 = vpop.f32.mrf.mxu0 }
 0xe7e   : > { %v6365_v1 = vadd.f32 %v3210_v22, %v3121_v53 }
 0xe7f   : > { %v5164_v2 = vpop.f32.mrf.mxu0 }
 0xe81   : > { %v3304_v27 = vpop.f32.mrf.mxu0 }
 0xe82   : > { %v3318_v3 = vmul.f32 0.35355338, %v3304_v27 }
 0xe83   : > { %v5184_v55 = vpop.f32.mrf.mxu0 }
 0xe84   : > { %v3321_v15 = vsel %vm1325_vm6, %v3318_v3, -inf }
 0xe85   : > { %3322 = vmax.xlane.f32.xlu0 %v3321_v15  ;;  %v3309_v4 = vpop.f32.mrf.mxu0 }
 0xe86   : > { %v3319_v5 = vmul.f32 0.35355338, %v3309_v4 }
 0xe87   : > { %v5187_v6 = vpop.f32.mrf.mxu0 }
 0xe88   : > { %v3324_v7 = vsel %vm1325_vm6, %v3319_v5, -inf }
 0xe89   : > { %3325 = vmax.xlane.f32.xlu1 %v3324_v7  ;;  %v3314_v8 = vpop.f32.mrf.mxu0 }
 0xe8a   : > { %v3320_v9 = vmul.f32 0.35355338, %v3314_v8 }
 0xe8b   : > { %v5190_v10 = vpop.f32.mrf.mxu0 }
 0xe8c   : > { %v3327_v11 = vsel %vm1332_vm7, %v3320_v9, -inf }
 0xe8d   : > { %3328 = vmax.xlane.f32.xlu0 %v3327_v11 }
 0xe9a   : > { %3356 = vrot.lane.b32.xlu1 %v6142_v13, %s5547_s21 }
 0xe9e   : > { %3354 = vrot.lane.b32.xlu1 %v6137_v12, %s5547_s21 }
 0xea2   : > { %3555 = vrot.lane.b32.xlu1 %v6115_v51, %s5548_s0 }
 0xea3   : > { %3358 = vrot.lane.b32.xlu0 %v6115_v51, %s5547_s21 }
 0xea6   : > { %3551 = vrot.lane.b32.xlu1 %v6137_v12, %s5548_s0 }
 0xf0e   : > { %v3323_v14 = vpop.xlane.xlu0 %3322 }
 0xf0f   : > { %v3330_v17 = vsub.f32 %v3318_v3, %v3323_v14 }
 0xf11   : > { %v3333_v23 = vmul.f32 1.442695, %v3330_v17 }
 0xf12   : > { %v3326_v34 = vpop.xlane.xlu1 %3325 }
 0xf13   : > { %5455 = vpow2.f32 %v3333_v23  ;;  %v3331_v35 = vsub.f32 %v3319_v5, %v3326_v34 }
 0xf15   : > { %v3335_v16 = vmul.f32 1.442695, %v3331_v35 }
 0xf16   : > { %v3329_v18 = vpop.xlane.xlu0 %3328  ;;  %v3357_v21 = vpop.permute.xlu1 %3356 }
 0xf17   : > { %5457 = vpow2.f32 %v3335_v16  ;;  %v3332_v20 = vsub.f32 %v3320_v9, %v3329_v18 }
 0xf19   : > { %v3337_v24 = vmul.f32 1.442695, %v3332_v20 }
 0xf1a   : > { %v3359_v26 = vpop.permute.xlu0 %3358  ;;  %v3355_v29 = vpop.permute.xlu1 %3354 }
 0xf1b   : > { %5459 = vpow2.f32 %v3337_v24  ;;  %5192 = vmatpush3.msk.msra.mxu1 %vm1377_vm8, %v3359_v26 }
 0xf1c   : > { %5193 = vmatprep.subr.mxu1 %v5538_v28 }
 0xf1d   : > { %5194 = vmatpush3.msra.mxu1 %v3357_v21 }
 0xf1e   : > { %5195 = vmatprep.subr.mxu1 %v5538_v28  ;;  %v3556_v39 = vpop.permute.xlu1 %3555 }
 0xf1f   : > { %5196 = vmatpush3.msra.mxu1 %v3355_v29 }
 0xf20   : > { %v5456_v30 = vpop.eup %5455  ;;  %5217 = vmatprep.subr.mxu1 %v5538_v28 }
 0xf21   : > { %v3339_v60 = vsel %vm1325_vm6, %v5456_v30, 0.0 }
 0xf22   : > { %3340 = vadd.xlane.f32.xlu0 %v3339_v60  ;;  %v3552_v41 = vpop.permute.xlu1 %3551 }
 0xf24   : > { %v5458_v32 = vpop.eup %5457 }
 0xf25   : > { %v3342_v33 = vsel %vm1325_vm6, %v5458_v32, 0.0 }
 0xf26   : > { %3343 = vadd.xlane.f32.xlu0 %v3342_v33 }
 0xf28   : > { %v5460_v36 = vpop.eup %5459 }
 0xf29   : > { %v3345_v38 = vsel %vm1332_vm7, %v5460_v36, 0.0 }
 0xf2a   : > { %3346 = vadd.xlane.f32.xlu1 %v3345_v38 }
 0xf3b   : > { %3547 = vrot.lane.b32.xlu1 %v6142_v13, %s5549_s24 }
 0xf3c   : > { %3553 = vrot.lane.b32.xlu0 %v6142_v13, %s5548_s0  ;;  %s6734_s0 = scalar_lea.vmem %s6692_s18, %s5683_s3 }
 0xf40   : > { %3545 = vrot.lane.b32.xlu0 %v6137_v12, %s5549_s24 }
 0xf44   : > { %3549 = vrot.lane.b32.xlu0 %v6115_v51, %s5549_s24  ;;  %s6735_s24 = sld [smem:[#allocation15_spill]] (!%p4726_p6) }
 0xfab   : > { %v3341_v40 = vpop.xlane.xlu0 %3340 }
 0xfac   : > { %5461 = vrcp.f32 %v3341_v40 }
 0xfaf   : > { %v3344_v61 = vpop.xlane.xlu0 %3343 }
 0xfb0   : > { %5463 = vrcp.f32 %v3344_v61  ;;  %v6451_v61 = vld [vmem:[#allocation2 + $0x8] sm:$0xff] }
 0xfb3   : > { %v3347_v43 = vpop.xlane.xlu1 %3346  ;;  %v3554_v48 = vpop.permute.xlu0 %3553 }
 0xfb4   : > { %5465 = vrcp.f32 %v3347_v43 }
 0xfb7   : > { %v3546_v52 = vpop.permute.xlu0 %3545  ;;  %v3548_v54 = vpop.permute.xlu1 %3547 }
 0xfb9   : > { %v5462_v44 = vpop.eup %5461 }
 0xfba   : > { %v3349_v45 = vmul.f32 %v5462_v44, %v5456_v30 }
 0xfbb   : > { %v3550_v37 = vpop.permute.xlu0 %3549 }
 0xfbc   : > { %5198 = vmatmul.mubr.msk.f32.vlgmr.msra.gmra.mxu1 %vm1325_vm6, %v3349_v45 }
 0xfbd   : > { %v5464_v46 = vpop.eup %5463  ;;  %5218 = vmatpush3.xpose.msk.msra.mxu1 %vm1229_vm5, %v3556_v39  ;;  %5200 = vmatprep.mubr.msk.f32.mxu1 %vm5539_vm4, %v5538_v28 }
 0xfbe   : > { %5219 = vmatprep.subr.mxu1 %v5538_v28  ;;  %v3351_v47 = vmul.f32 %v5464_v46, %v5458_v32 }
 0xfc0   : > { %5201 = vmatmul.mubr.msk.f32.gmra.mxu1 %vm1325_vm6, %v3351_v47 }
 0xfc1   : > { %v5466_v49 = vpop.eup %5465  ;;  %5220 = vmatpush3.xpose.msk.msra.mxu1 %vm1229_vm5, %v3554_v48  ;;  %5203 = vmatprep.mubr.msk.f32.mxu1 %vm5539_vm4, %v5538_v28 }
 0xfc2   : > { %5221 = vmatprep.subr.mxu1 %v5538_v28  ;;  %v3353_v50 = vmul.f32 %v5466_v49, %v5460_v36 }
 0xfc4   : > { %5204 = vmatmul.mubr.msk.f32.gmra.mxu1 %vm1325_vm6, %v3353_v50 }
 0xfc5   : > { %5222 = vmatpush3.xpose.msk.msra.mxu1 %vm1229_vm5, %v3552_v41  ;;  %5223 = vmatprep.mubr.msk.f32.mxu1 %vm5539_vm4, %v5538_v28  ;;  %v6447_v41 = vld [vmem:[#allocation2] sm:$0xff] }
 0xfc6   : > { %5247 = vmatprep.subr.mxu1 %v5538_v28 }
 0xfc8   : > { %5224 = vmatmul.mubr.msk.f32.vlgmr.msra.gmra.mxu1 %vm1229_vm5, %v3546_v52 }
 0xfc9   : > { %5226 = vmatprep.mubr.msk.f32.mxu1 %vm5539_vm4, %v5538_v28  ;;  %5248 = vmatpush3.msra.mxu1 %v6206_v42 }
 0xfca   : > { %5281 = vmatprep.subr.mxu1 %v5538_v28 }
 0xfcc   : > { %5227 = vmatmul.mubr.msk.f32.gmra.mxu1 %vm1229_vm5, %v3548_v54 }
 0xfcd   : > { %5229 = vmatprep.mubr.msk.f32.mxu1 %vm5539_vm4, %v5538_v28 }
 0xfd0   : > { %5230 = vmatmul.mubr.msk.f32.gmra.mxu1 %vm1229_vm5, %v3550_v37 }
 0xfd1   : > { %5249 = vmatprep.mubr.msk.f32.mxu1 %vm5539_vm4, %v5538_v28 }
0x107c   : > { %v3439_v56 = vpop.f32.mrf.mxu1 }
0x107d   : > { %5209 = vmatmul.mubr.msk.f32.vlgmr.msra.gmra.mxu0 %vm1229_vm5, %v3439_v56 }
0x107e   : > { %v5199_v22 = vpop.f32.mrf.mxu1  ;;  %5211 = vmatprep.mubr.msk.f32.mxu0 %vm5539_vm4, %v5538_v28 }
0x1080   : > { %v3444_v42 = vpop.f32.mrf.mxu1 }
0x1081   : > { %5212 = vmatmul.mubr.msk.f32.gmra.mxu0 %vm1229_vm5, %v3444_v42 }
0x1082   : > { %v5202_v25 = vpop.f32.mrf.mxu1  ;;  %5214 = vmatprep.mubr.msk.f32.mxu0 %vm5539_vm4, %v5538_v28 }
0x1084   : > { %v3449_v57 = vpop.f32.mrf.mxu1 }
0x1085   : > { %5215 = vmatmul.mubr.msk.f32.gmra.mxu0 %vm1229_vm5, %v3449_v57 }
0x1086   : > { %v5205_v59 = vpop.f32.mrf.mxu1  ;;  %5238 = vmatprep.mubr.msk.f32.mxu0 %vm5539_vm4, %v5538_v28 }
0x1088   : > { %v3635_v62 = vpop.f32.mrf.mxu1 }
0x1089   : > { %v3649_v0 = vmul.f32 0.35355338, %v3635_v62 }
0x108a   : > { %v5225_v53 = vpop.f32.mrf.mxu1 }
0x108b   : > { %v3652_v2 = vsel %vm1325_vm6, %v3649_v0, -inf }
0x108c   : > { %3653 = vmax.xlane.f32.xlu1 %v3652_v2  ;;  %v3640_v27 = vpop.f32.mrf.mxu1 }
0x108d   : > { %v3650_v3 = vmul.f32 0.35355338, %v3640_v27 }
0x108e   : > { %v5228_v55 = vpop.f32.mrf.mxu1 }
0x108f   : > { %v3655_v15 = vsel %vm1325_vm6, %v3650_v3, -inf }
0x1090   : > { %3656 = vmax.xlane.f32.xlu0 %v3655_v15  ;;  %v3645_v4 = vpop.f32.mrf.mxu1 }
0x1091   : > { %v3651_v5 = vmul.f32 0.35355338, %v3645_v4 }
0x1092   : > { %v5231_v6 = vpop.f32.mrf.mxu1 }
0x1093   : > { %v3658_v7 = vsel %vm1332_vm7, %v3651_v5, -inf  ;;  %v5502_v6 = vld [vmem:[#allocation2 + $0x18] sm:$0xff] }
0x1094   : > { %3659 = vmax.xlane.f32.xlu0 %v3658_v7 }
0x109d   : > { %3689 = vrot.lane.b32.xlu1 %v6115_v51, %s5550_s23 }
0x1115   : > { %v3654_v8 = vpop.xlane.xlu1 %3653 }
0x1116   : > { %v3661_v9 = vsub.f32 %v3649_v0, %v3654_v8 }
0x1118   : > { %v3664_v10 = vmul.f32 1.442695, %v3661_v9 }
0x1119   : > { %v3690_v11 = vpop.permute.xlu1 %3689  ;;  %v3657_v14 = vpop.xlane.xlu0 %3656 }
0x111a   : > { %5467 = vpow2.f32 %v3664_v10  ;;  %v3662_v17 = vsub.f32 %v3650_v3, %v3657_v14  ;;  %5233 = vmatpush3.msk.msra.mxu0 %vm1377_vm8, %v3690_v11 }
0x111b   : > { %5234 = vmatprep.subr.mxu0 %v5538_v28 }
0x111c   : > { %v3666_v23 = vmul.f32 1.442695, %v3662_v17  ;;  %v5503_v17 = vld [vmem:[#allocation2 + $0x20] sm:$0x3f] }
0x111d   : > { %v3660_v34 = vpop.xlane.xlu0 %3659 }
0x111e   : > { %5469 = vpow2.f32 %v3666_v23  ;;  %v3663_v35 = vsub.f32 %v3651_v5, %v3660_v34 }
0x1120   : > { %v3668_v16 = vmul.f32 1.442695, %v3663_v35 }
0x1122   : > { %5471 = vpow2.f32 %v3668_v16 }
0x1127   : > { %v5468_v18 = vpop.eup %5467 }
0x1128   : > { %v3670_v51 = vsel %vm1325_vm6, %v5468_v18, 0.0 }
0x1129   : > { %3671 = vadd.xlane.f32.xlu0 %v3670_v51 }
0x112b   : > { %v5470_v20 = vpop.eup %5469 }
0x112c   : > { %v3673_v21 = vsel %vm1325_vm6, %v5470_v20, 0.0 }
0x112d   : > { %3674 = vadd.xlane.f32.xlu1 %v3673_v21 }
0x112f   : > { %v5472_v24 = vpop.eup %5471 }
0x1130   : > { %v3676_v26 = vsel %vm1332_vm7, %v5472_v24, 0.0 }
0x1131   : > { %3677 = vadd.xlane.f32.xlu0 %v3676_v26 }
0x113d   : > { %v3528_v29 = vpop.f32.mrf.mxu0 }
0x113e   : > { %v3542_v30 = vadd.f32 %v3528_v29, %v6361_v58  ;;  %3685 = vrot.lane.b32.xlu1 %v6137_v12, %s5550_s23  ;;  %v3911_v58 = vsel %vm1010_vm2, %v6447_v41, 0.0  ;;  %v3914_v12 = vsel %vm1010_vm2, %v6451_v61, 0.0 }
0x113f   : > { %v5210_v60 = vpop.f32.mrf.mxu0 }
0x1141   : > { %v3533_v32 = vpop.f32.mrf.mxu0 }
0x1142   : > { %v3543_v33 = vadd.f32 %v3533_v32, %v6363_v63 }
0x1143   : > { %v5213_v36 = vpop.f32.mrf.mxu0 }
0x1144   : > { %v4001_v36 = vld [vmem:[%s5723_s9 + $0x18] sm:$0xff] }
0x1145   : > { %v3538_v38 = vpop.f32.mrf.mxu0 }
0x1146   : > { %v3544_v39 = vadd.f32 %v3538_v38, %v6365_v1  ;;  %v4000_v38 = vld [vmem:[%s5723_s9 + $0x10] sm:$0xff] }
0x1147   : > { %v5216_v40 = vpop.f32.mrf.mxu0  ;;  %3687 = vrot.lane.b32.xlu0 %v6142_v13, %s5550_s23 }
0x1148   : > { %v3998_v40 = vld [vmem:[%s5723_s9] sm:$0xff] }
0x1162   : > { %3912 = vadd.xlane.f32.xlu1 %v3911_v58 }
0x1166   : > { %3915 = vadd.xlane.f32.xlu0 %v3914_v12 }
0x11b2   : > { %v3672_v63 = vpop.xlane.xlu0 %3671 }
0x11b3   : > { %5473 = vrcp.f32 %v3672_v63 }
0x11b6   : > { %v3675_v43 = vpop.xlane.xlu1 %3674 }
0x11b7   : > { %5475 = vrcp.f32 %v3675_v43 }
0x11ba   : > { %v3678_v1 = vpop.xlane.xlu0 %3677  ;;  %v3686_v45 = vpop.permute.xlu1 %3685 }
0x11bb   : > { %5477 = vrcp.f32 %v3678_v1 }
0x11be   : > { %v3688_v44 = vpop.permute.xlu0 %3687 }
0x11bf   : > { %5235 = vmatpush3.msra.mxu0 %v3688_v44 }
0x11c0   : > { %v5474_v13 = vpop.eup %5473  ;;  %5236 = vmatprep.subr.mxu0 %v5538_v28 }
0x11c1   : > { %v3680_v46 = vmul.f32 %v5474_v13, %v5468_v18  ;;  %5237 = vmatpush3.msra.mxu0 %v3686_v45 }
0x11c2   : > { %5258 = vmatprep.subr.mxu0 %v5538_v28 }
0x11c3   : > { %5239 = vmatmul.mubr.msk.f32.vlgmr.msra.gmra.mxu0 %vm1325_vm6, %v3680_v46 }
0x11c4   : > { %v5476_v47 = vpop.eup %5475  ;;  %5241 = vmatprep.mubr.msk.f32.mxu0 %vm5539_vm4, %v5538_v28  ;;  %5259 = vmatpush3.msra.mxu0 %v4001_v36 }
0x11c5   : > { %v3682_v48 = vmul.f32 %v5476_v47, %v5470_v20  ;;  %5260 = vmatprep.subr.mxu0 %v5538_v28 }
0x11c6   : > { %5261 = vmatpush3.msra.mxu0 %v4000_v38 }
0x11c7   : > { %5242 = vmatmul.mubr.msk.f32.gmra.mxu0 %vm1325_vm6, %v3682_v48  ;;  %5262 = vmatprep.subr.mxu0 %v5538_v28 }
0x11c8   : > { %v5478_v49 = vpop.eup %5477  ;;  %5244 = vmatprep.mubr.msk.f32.mxu0 %vm5539_vm4, %v5538_v28 }
0x11c9   : > { %v3684_v50 = vmul.f32 %v5478_v49, %v5472_v24 }
0x11cb   : > { %5245 = vmatmul.mubr.msk.f32.gmra.mxu0 %vm1325_vm6, %v3684_v50 }
0x11cc   : > { %5266 = vmatprep.mubr.msk.f32.mxu0 %vm5539_vm4, %v5538_v28 }
0x11eb   : > { %v3913_v9 = vpop.xlane.xlu1 %3912 }
0x11ec   : > { %v3926_v14 = vmul.f32 0.03125, %v3913_v9  ;;  %v4170_v9 = vld [vmem:[%s5733_s4 + $0x58] sm:$0xff] }
0x11ee   : > { %v3931_v51 = vsub.f32 %v6447_v41, %v3926_v14  ;;  %v4166_v14 = vld [vmem:[%s5733_s4 + $0x38] sm:$0xff] }
0x11ef   : > { %v3916_v34 = vpop.xlane.xlu0 %3915 }
0x11f0   : > { %v3927_v20 = vmul.f32 0.03125, %v3916_v34  ;;  %v3936_v26 = vmul.f32 %v3931_v51, %v3931_v51  ;;  %v4163_v34 = vld [vmem:[%s5733_s4 + $0x20] sm:$0xff] }
0x11f2   : > { %v3932_v24 = vsub.f32 %v6451_v61, %v3927_v20  ;;  %v4159_v20 = vld [vmem:[%s5733_s4] sm:$0xff] }
0x11f4   : > { %v3937_v32 = vmul.f32 %v3932_v24, %v3932_v24 }
0x1283   : > { %v3770_v52 = vpop.f32.mrf.mxu0 }
0x1284   : > { %5250 = vmatmul.mubr.msk.f32.vlgmr.msra.gmra.mxu1 %vm1229_vm5, %v3770_v52 }
0x1285   : > { %v5240_v54 = vpop.f32.mrf.mxu0  ;;  %5252 = vmatprep.mubr.msk.f32.mxu1 %vm5539_vm4, %v5538_v28 }
0x1287   : > { %v3775_v37 = vpop.f32.mrf.mxu0 }
0x1288   : > { %5253 = vmatmul.mubr.msk.f32.gmra.mxu1 %vm1229_vm5, %v3775_v37 }
0x1289   : > { %v5243_v56 = vpop.f32.mrf.mxu0  ;;  %5255 = vmatprep.mubr.msk.f32.mxu1 %vm5539_vm4, %v5538_v28 }
0x128b   : > { %v3780_v22 = vpop.f32.mrf.mxu0 }
0x128c   : > { %5256 = vmatmul.mubr.msk.f32.gmra.mxu1 %vm1229_vm5, %v3780_v22 }
0x128d   : > { %v5246_v42 = vpop.f32.mrf.mxu0  ;;  %5313 = vmatprep.mubr.msk.f32.mxu1 %vm5539_vm4, %v5538_v28 }
0x1344   : > { %v3859_v25 = vpop.f32.mrf.mxu1 }
0x1345   : > { %v3873_v57 = vadd.f32 %v3859_v25, %v3542_v30  ;;  %v3941_v30 = vsel %vm1010_vm2, %v3936_v26, 0.0 }
0x1346   : > { %v5251_v59 = vpop.f32.mrf.mxu1 }
0x1347   : > { %v3879_v62 = vrot.slane %v3873_v57, 5 }
0x1348   : > { %v3864_v0 = vpop.f32.mrf.mxu1 }
0x1349   : > { %v3887_v53 = vadd.f32 %v6275_v31, %v3879_v62  ;;  %v3874_v2 = vadd.f32 %v3864_v0, %v3543_v33  ;;  %v3944_v33 = vsel %vm1010_vm2, %v3937_v32, 0.0 }
0x134a   : > { %v5254_v27 = vpop.f32.mrf.mxu1 }
0x134b   : > { %v3897_v3 = vadd.f32 %v6267_v19, %v3887_v53  ;;  %v3880_v55 = vrot.slane %v3874_v2, 5  ;;  %v6537_v53 = vld [vmem:[%s6732_s25] ss:$0 sm:$0xff] }
0x134c   : > { %v3869_v15 = vpop.f32.mrf.mxu1 }
0x134d   : > { %3901 = vst.msk [vmem:[#allocation2 + $0x10] sm:$0xf8] %vm3900_vm11, %v3897_v3  ;;  %v3881_v4 = vsel %vm1377_vm8, %v3879_v62, %v3880_v55  ;;  %v3875_v5 = vadd.f32 %v3869_v15, %v3544_v39  ;;  %v3999_v39 = vld [vmem:[%s5723_s9 + $0x8] sm:$0xff]  ;;  %v6530_v62 = vld [vmem:[%s861_s19] ss:$0 sm:$0xff] }
0x134e   : > { %v3888_v7 = vadd.f32 %v5502_v6, %v3881_v4  ;;  %v5257_v8 = vpop.f32.mrf.mxu1  ;;  %5263 = vmatpush3.msra.mxu0 %v3999_v39  ;;  %v4173_v6 = vld [vmem:[%s5733_s4 + $0x70] sm:$0xff] }
0x134f   : > { %v3882_v10 = vrot.slane %v3875_v5, 5  ;;  %5264 = vmatprep.subr.mxu0 %v5538_v28  ;;  %v4174_v5 = vld [vmem:[%s5733_s4 + $0x78] sm:$0xff]  ;;  %v4171_v8 = vld [vmem:[%s5733_s4 + $0x60] sm:$0xff] }
0x1350   : > { %v3898_v11 = vadd.f32 %v6267_v19, %v3888_v7  ;;  %5265 = vmatpush3.msra.mxu0 %v3998_v40  ;;  %5282 = vmatpush3.msra.mxu1 %v4174_v5  ;;  %v4172_v7 = vld [vmem:[%s5733_s4 + $0x68] sm:$0xff] }
0x1351   : > { %v3883_v31 = vsel %vm1377_vm8, %v3880_v55, %v3882_v10  ;;  %5283 = vmatprep.subr.mxu1 %v5538_v28  ;;  %v4169_v10 = vld [vmem:[%s5733_s4 + $0x50] sm:$0xff] }
0x1352   : > { %3902 = vst.msk [vmem:[#allocation2 + $0x18] sm:$0xff] %vm1010_vm2, %v3898_v11  ;;  %v3889_v23 = vadd.f32 %v5503_v17, %v3883_v31  ;;  %5284 = vmatpush3.msra.mxu1 %v4173_v6  ;;  %v4168_v11 = vld [vmem:[%s5733_s4 + $0x48] sm:$0xff]  ;;  %v4167_v31 = vld [vmem:[%s5733_s4 + $0x40] sm:$0xff]  ;;  %v4165_v17 = vld [vmem:[%s5733_s4 + $0x30] sm:$0xff] }
0x1353   : > { %5285 = vmatprep.subr.mxu1 %v5538_v28 }
0x1354   : > { %v3899_v35 = vadd.f32 %v6267_v19, %v3889_v23  ;;  %v6483_v16 = vld [vmem:[#allocation2 + $0x10] sm:$0xff]  ;;  %5286 = vmatpush3.msra.mxu1 %v4172_v7  ;;  %v4164_v23 = vld [vmem:[%s5733_s4 + $0x28] sm:$0xff] }
0x1355   : > { %v3917_v18 = vsel %vm1010_vm2, %v6483_v16, 0.0  ;;  %5287 = vmatprep.subr.mxu1 %v5538_v28 }
0x1356   : > { %3903 = vst.msk [vmem:[#allocation2 + $0x20] sm:$0x3f] %vm1023_vm3, %v3899_v35  ;;  %3918 = vadd.xlane.f32.xlu0 %v3917_v18  ;;  %5288 = vmatpush3.msra.mxu1 %v4171_v8  ;;  %v4162_v35 = vld [vmem:[%s5733_s4 + $0x18] sm:$0xff]  ;;  %v4161_v18 = vld [vmem:[%s5733_s4 + $0x10] sm:$0xff] }
0x1357   : > { %5289 = vmatprep.subr.mxu1 %v5538_v28 }
0x1358   : > { %5290 = vmatpush3.msra.mxu1 %v4170_v9 }
0x1359   : > { %v6489_v21 = vld [vmem:[#allocation2 + $0x18] sm:$0xff]  ;;  %5291 = vmatprep.subr.mxu1 %v5538_v28 }
0x135a   : > { %v3920_v19 = vsel %vm1010_vm2, %v6489_v21, 0.0  ;;  %5292 = vmatpush3.msra.mxu1 %v4169_v10 }
0x135b   : > { %3921 = vadd.xlane.f32.xlu1 %v3920_v19  ;;  %5293 = vmatprep.subr.mxu1 %v5538_v28 }
0x135c   : > { %5294 = vmatpush3.msra.mxu1 %v4168_v11 }
0x135d   : > { %v6494_v29 = vld [vmem:[#allocation2 + $0x20] sm:$0x3f]  ;;  %5295 = vmatprep.subr.mxu1 %v5538_v28 }
0x135e   : > { %v3923_v60 = vsel %vm1023_vm3, %v6494_v29, 0.0  ;;  %5296 = vmatpush3.msra.mxu1 %v4167_v31 }
0x135f   : > { %3942 = vadd.xlane.f32.xlu1 %v3941_v30  ;;  %3924 = vadd.xlane.f32.xlu0 %v3923_v60 }
0x1360   : > { %5297 = vmatprep.subr.mxu1 %v5538_v28 }
0x1361   : > { %5298 = vmatpush3.msra.mxu1 %v4166_v14 }
0x1362   : > { %5299 = vmatprep.subr.mxu1 %v5538_v28 }
0x1363   : > { %3945 = vadd.xlane.f32.xlu0 %v3944_v33  ;;  %5300 = vmatpush3.msra.mxu1 %v4165_v17 }
0x1364   : > { %5301 = vmatprep.subr.mxu1 %v5538_v28 }
0x1365   : > { %5302 = vmatpush3.msra.mxu1 %v4164_v23 }
0x1366   : > { %5303 = vmatprep.subr.mxu1 %v5538_v28 }
0x1367   : > { %5304 = vmatpush3.msra.mxu1 %v4163_v34 }
0x1368   : > { %5305 = vmatprep.subr.mxu1 %v5538_v28 }
0x1369   : > { %5306 = vmatpush3.msra.mxu1 %v4162_v35 }
0x136a   : > { %5307 = vmatprep.subr.mxu1 %v5538_v28 }
0x136b   : > { %5308 = vmatpush3.msra.mxu1 %v4161_v18 }
0x136c   : > { %5309 = vmatprep.subr.mxu1 %v5538_v28 }
0x13df   : > { %v3919_v58 = vpop.xlane.xlu0 %3918 }
0x13e0   : > { %v3928_v12 = vmul.f32 0.03125, %v3919_v58 }
0x13e2   : > { %v6508_v63 = vsub.f32 %v6483_v16, %v3928_v12 }
0x13e4   : > { %v3922_v43 = vpop.xlane.xlu1 %3921  ;;  %v3938_v1 = vmul.f32 %v6508_v63, %v6508_v63 }
0x13e5   : > { %v3929_v44 = vmul.f32 0.03125, %v3922_v43 }
0x13e6   : > { %v3947_v13 = vsel %vm1010_vm2, %v3938_v1, 0.0 }
0x13e7   : > { %v6514_v45 = vsub.f32 %v6489_v21, %v3929_v44  ;;  %3948 = vadd.xlane.f32.xlu1 %v3947_v13 }
0x13e8   : > { %v3943_v46 = vpop.xlane.xlu1 %3942  ;;  %v3925_v47 = vpop.xlane.xlu0 %3924 }
0x13e9   : > { %v3956_v48 = vmul.f32 0.03125, %v3943_v46  ;;  %v3930_v49 = vmul.f32 0.03125, %v3925_v47  ;;  %v3939_v50 = vmul.f32 %v6514_v45, %v6514_v45 }
0x13eb   : > { %v3961_v52 = vadd.f32 1e-05, %v3956_v48  ;;  %v6519_v54 = vsub.f32 %v6494_v29, %v3930_v49  ;;  %v3950_v37 = vsel %vm1010_vm2, %v3939_v50, 0.0  ;;  %v4719_v48 = vld [vmem:[%s6733_s26] ss:$0 sm:$0xff] }
0x13ec   : > { %3951 = vadd.xlane.f32.xlu0 %v3950_v37  ;;  %v3946_v56 = vpop.xlane.xlu0 %3945 }
0x13ed   : > { %5479 = vrsqrt.f32 %v3961_v52  ;;  %v3957_v22 = vmul.f32 0.03125, %v3946_v56  ;;  %v3940_v42 = vmul.f32 %v6519_v54, %v6519_v54 }
0x13ef   : > { %v3962_v25 = vadd.f32 1e-05, %v3957_v22  ;;  %v3953_v57 = vsel %vm1023_vm3, %v3940_v42, 0.0 }
0x13f0   : > { %3954 = vadd.xlane.f32.xlu1 %v3953_v57 }
0x13f1   : > { %5481 = vrsqrt.f32 %v3962_v25 }
0x13fa   : > { %v5480_v59 = vpop.eup %5479 }
0x13fb   : > { %v3971_v0 = vmul.f32 %v5480_v59, %v3931_v51  ;;  %v4160_v51 = vld [vmem:[%s5733_s4 + $0x8] sm:$0xff] }
0x13fc   : > { %5310 = vmatpush3.msra.mxu1 %v4160_v51 }
0x13fd   : > { %v3982_v2 = vmul.f32 %v6530_v62, %v3971_v0  ;;  %5311 = vmatprep.subr.mxu1 %v5538_v28 }
0x13fe   : > { %v5482_v27 = vpop.eup %5481  ;;  %5312 = vmatpush3.msra.mxu1 %v4159_v20 }
0x13ff   : > { %v3993_v3 = vadd.f32 %v6537_v53, %v3982_v2  ;;  %v3972_v55 = vmul.f32 %v5482_v27, %v3932_v24 }
0x1401   : > { %5267 = vmatmul.mubr.msk.f32.vlgmr.msra.gmra.mxu0 %vm1010_vm2, %v3993_v3  ;;  %v3983_v15 = vmul.f32 %v6530_v62, %v3972_v55 }
0x1402   : > { %5269 = vmatprep.mubr.msk.f32.mxu0 %vm5539_vm4, %v5538_v28 }
0x1403   : > { %v3994_v4 = vadd.f32 %v6537_v53, %v3983_v15 }
0x1405   : > { %5270 = vmatmul.mubr.msk.f32.gmra.mxu0 %vm1010_vm2, %v3994_v4 }
0x1406   : > { %5272 = vmatprep.mubr.msk.f32.mxu0 %vm5539_vm4, %v5538_v28 }
0x1470   : > { %v3949_v24 = vpop.xlane.xlu1 %3948 }
0x1471   : > { %v3958_v19 = vmul.f32 0.03125, %v3949_v24 }
0x1473   : > { %v3963_v26 = vadd.f32 1e-05, %v3958_v19 }
0x1475   : > { %5483 = vrsqrt.f32 %v3963_v26  ;;  %v3952_v30 = vpop.xlane.xlu0 %3951 }
0x1476   : > { %v3959_v60 = vmul.f32 0.03125, %v3952_v30 }
0x1478   : > { %v3964_v32 = vadd.f32 1e-05, %v3959_v60 }
0x1479   : > { %v3955_v33 = vpop.xlane.xlu1 %3954 }
0x147a   : > { %5485 = vrsqrt.f32 %v3964_v32  ;;  %v3960_v36 = vmul.f32 0.03125, %v3955_v33 }
0x147c   : > { %v3965_v38 = vadd.f32 1e-05, %v3960_v36 }
0x147e   : > { %5487 = vrsqrt.f32 %v3965_v38 }
0x1482   : > { %v5484_v39 = vpop.eup %5483 }
0x1483   : > { %v3973_v40 = vmul.f32 %v5484_v39, %v6508_v63 }
0x1485   : > { %v3984_v58 = vmul.f32 %v6530_v62, %v3973_v40 }
0x1487   : > { %v5486_v12 = vpop.eup %5485  ;;  %v3995_v43 = vadd.f32 %v6537_v53, %v3984_v58 }
0x1488   : > { %v3974_v1 = vmul.f32 %v5486_v12, %v6514_v45 }
0x1489   : > { %5273 = vmatmul.mubr.msk.f32.gmra.mxu0 %vm1010_vm2, %v3995_v43 }
0x148a   : > { %5275 = vmatprep.mubr.msk.f32.mxu0 %vm5539_vm4, %v5538_v28  ;;  %v3985_v44 = vmul.f32 %v6530_v62, %v3974_v1 }
0x148b   : > { %v5488_v13 = vpop.eup %5487 }
0x148c   : > { %v3996_v46 = vadd.f32 %v6537_v53, %v3985_v44  ;;  %v3975_v63 = vmul.f32 %v5488_v13, %v6519_v54 }
0x148e   : > { %5276 = vmatmul.mubr.msk.f32.gmra.mxu0 %vm1010_vm2, %v3996_v46  ;;  %v3986_v47 = vmul.f32 %v6530_v62, %v3975_v63 }
0x148f   : > { %5278 = vmatprep.mubr.msk.f32.mxu0 %vm5539_vm4, %v5538_v28 }
0x1490   : > { %v3997_v45 = vadd.f32 %v6537_v53, %v3986_v47 }
0x1492   : > { %5279 = vmatmul.mubr.msk.f32.gmra.mxu0 %vm1010_vm2, %v3997_v45 }
0x14c1   : > { %v4090_v49 = vpop.f32.mrf.mxu0 }
0x14c2   : > { %v4091_v50 = vadd.f32 %v4719_v48, %v4090_v49 }
0x14c3   : > { %v5268_v52 = vpop.f32.mrf.mxu0 }
0x14c4   : > { %v4114_v54 = vmul.f32 %v4091_v50, %v4091_v50  ;;  %v4725_v52 = vld [vmem:[%s6734_s0] ss:$0 sm:$0xff] }
0x14c5   : > { %v4095_v37 = vpop.f32.mrf.mxu0 }
0x14c6   : > { %v4119_v56 = vmul.f32 %v4114_v54, %v4091_v50  ;;  %v4096_v22 = vadd.f32 %v4719_v48, %v4095_v37 }
0x14c7   : > { %v5271_v42 = vpop.f32.mrf.mxu0 }
0x14c8   : > { %v4124_v25 = vmul.f32 0.044715, %v4119_v56  ;;  %v4115_v57 = vmul.f32 %v4096_v22, %v4096_v22 }
0x14ca   : > { %v4129_v59 = vadd.f32 %v4124_v25, %v4091_v50  ;;  %v4120_v62 = vmul.f32 %v4115_v57, %v4096_v22 }
0x14cc   : > { %v4134_v0 = vmul.f32 0.7978846, %v4129_v59  ;;  %v4125_v53 = vmul.f32 0.044715, %v4120_v62 }
0x14ce   : > { %5489 = vtanh.f32 %v4134_v0  ;;  %v4130_v2 = vadd.f32 %v4125_v53, %v4096_v22 }
0x14d0   : > { %v4135_v27 = vmul.f32 0.7978846, %v4130_v2 }
0x14d2   : > { %5491 = vtanh.f32 %v4135_v27 }
0x14db   : > { %v5490_v3 = vpop.eup %5489 }
0x14dc   : > { %v4144_v55 = vadd.f32 1.0, %v5490_v3 }
0x14de   : > { %v4149_v15 = vmul.f32 0.5, %v4144_v55 }
0x14df   : > { %v5492_v4 = vpop.eup %5491 }
0x14e0   : > { %v4154_v5 = vmul.f32 %v4149_v15, %v4091_v50  ;;  %v4145_v6 = vadd.f32 1.0, %v5492_v4 }
0x14e2   : > { %5314 = vmatmul.mubr.f32.vlgmr.msra.gmra.mxu1 %v4154_v5  ;;  %v4150_v7 = vmul.f32 0.5, %v4145_v6 }
0x14e3   : > { %5316 = vmatprep.mubr.msk.f32.mxu1 %vm5539_vm4, %v5538_v28 }
0x14e4   : > { %v4155_v8 = vmul.f32 %v4150_v7, %v4096_v22 }
0x14e6   : > { %5317 = vmatmul.mubr.f32.gmra.mxu1 %v4155_v8 }
0x14e7   : > { %5319 = vmatprep.mubr.msk.f32.mxu1 %vm5539_vm4, %v5538_v28 }
0x1549   : > { %v4100_v9 = vpop.f32.mrf.mxu0 }
0x154a   : > { %v4101_v10 = vadd.f32 %v4719_v48, %v4100_v9 }
0x154b   : > { %v5274_v11 = vpop.f32.mrf.mxu0 }
0x154c   : > { %v4116_v31 = vmul.f32 %v4101_v10, %v4101_v10 }
0x154e   : > { %v4121_v14 = vmul.f32 %v4116_v31, %v4101_v10  ;;  %v4105_v17 = vpop.f32.mrf.mxu0 }
0x154f   : > { %v4106_v23 = vadd.f32 %v4719_v48, %v4105_v17 }
0x1550   : > { %v4126_v34 = vmul.f32 0.044715, %v4121_v14  ;;  %v5277_v35 = vpop.f32.mrf.mxu0 }
0x1551   : > { %v4117_v18 = vmul.f32 %v4106_v23, %v4106_v23 }
0x1552   : > { %v4131_v51 = vadd.f32 %v4126_v34, %v4101_v10  ;;  %v4110_v20 = vpop.f32.mrf.mxu0 }
0x1553   : > { %v4122_v24 = vmul.f32 %v4117_v18, %v4106_v23  ;;  %v4111_v19 = vadd.f32 %v4719_v48, %v4110_v20 }
0x1554   : > { %v4136_v26 = vmul.f32 0.7978846, %v4131_v51  ;;  %v5280_v30 = vpop.f32.mrf.mxu0 }
0x1555   : > { %v4127_v60 = vmul.f32 0.044715, %v4122_v24  ;;  %v4118_v32 = vmul.f32 %v4111_v19, %v4111_v19 }
0x1556   : > { %5493 = vtanh.f32 %v4136_v26 }
0x1557   : > { %v4132_v33 = vadd.f32 %v4127_v60, %v4106_v23  ;;  %v4123_v36 = vmul.f32 %v4118_v32, %v4111_v19 }
0x1559   : > { %v4137_v38 = vmul.f32 0.7978846, %v4132_v33  ;;  %v4128_v39 = vmul.f32 0.044715, %v4123_v36 }
0x155b   : > { %5495 = vtanh.f32 %v4137_v38  ;;  %v4133_v40 = vadd.f32 %v4128_v39, %v4111_v19 }
0x155d   : > { %v4138_v58 = vmul.f32 0.7978846, %v4133_v40 }
0x155f   : > { %5497 = vtanh.f32 %v4138_v58 }
0x1563   : > { %v5494_v12 = vpop.eup %5493 }
0x1564   : > { %v4146_v43 = vadd.f32 1.0, %v5494_v12 }
0x1566   : > { %v4151_v1 = vmul.f32 0.5, %v4146_v43 }
0x1568   : > { %v5496_v44 = vpop.eup %5495  ;;  %v4156_v13 = vmul.f32 %v4151_v1, %v4101_v10 }
0x1569   : > { %v4147_v46 = vadd.f32 1.0, %v5496_v44 }
0x156a   : > { %5320 = vmatmul.mubr.f32.gmra.mxu1 %v4156_v13 }
0x156b   : > { %5322 = vmatprep.mubr.msk.f32.mxu1 %vm5539_vm4, %v5538_v28  ;;  %v4152_v63 = vmul.f32 0.5, %v4147_v46 }
0x156c   : > { %v5498_v47 = vpop.eup %5497 }
0x156d   : > { %v4157_v45 = vmul.f32 %v4152_v63, %v4106_v23  ;;  %v4148_v48 = vadd.f32 1.0, %v5498_v47 }
0x156f   : > { %5323 = vmatmul.mubr.f32.gmra.mxu1 %v4157_v45  ;;  %v4153_v49 = vmul.f32 0.5, %v4148_v48 }
0x1570   : > { %5325 = vmatprep.mubr.msk.f32.mxu1 %vm5539_vm4, %v5538_v28 }
0x1571   : > { %v4158_v50 = vmul.f32 %v4153_v49, %v4111_v19 }
0x1573   : > { %5326 = vmatmul.mubr.f32.gmra.mxu1 %v4158_v50 }
0x15a2   : > { %v4248_v54 = vpop.f32.mrf.mxu1 }
0x15a3   : > { %v4249_v37 = vadd.f32 %v4725_v52, %v4248_v54 }
0x15a4   : > { %v5315_v56 = vpop.f32.mrf.mxu1 }
0x15a5   : > { %v4272_v22 = vadd.f32 %v4249_v37, %v6447_v41 }
0x15a6   : > { %v4253_v42 = vpop.f32.mrf.mxu1 }
0x15a7   : > { %4277 = vst.msk [vmem:[#allocation2] sm:$0xff] %vm1010_vm2, %v4272_v22  ;;  %v4254_v25 = vadd.f32 %v4725_v52, %v4253_v42 }
0x15a8   : > { %v5318_v57 = vpop.f32.mrf.mxu1 }
0x15a9   : > { %v4273_v59 = vadd.f32 %v4254_v25, %v6451_v61 }
0x15ab   : > { %4278 = vst.msk [vmem:[#allocation2 + $0x8] sm:$0xff] %vm1010_vm2, %v4273_v59 }
0x162a   : > { %v4258_v28 = vpop.f32.mrf.mxu1 }
0x162b   : > { %v4259_v62 = vadd.f32 %v4725_v52, %v4258_v28 }
0x162c   : > { %v5321_v0 = vpop.f32.mrf.mxu1 }
0x162d   : > { %v4274_v53 = vadd.f32 %v4259_v62, %v6483_v16 }
0x162f   : > { %4279 = vst.msk [vmem:[#allocation2 + $0x10] sm:$0xff] %vm1010_vm2, %v4274_v53  ;;  %v4263_v2 = vpop.f32.mrf.mxu1 }
0x1630   : > { %v4264_v27 = vadd.f32 %v4725_v52, %v4263_v2 }
0x1631   : > { %v5324_v3 = vpop.f32.mrf.mxu1 }
0x1632   : > { %v4275_v41 = vadd.f32 %v4264_v27, %v6489_v21 }
0x1633   : > { %v4268_v55 = vpop.f32.mrf.mxu1 }
0x1634   : > { %4280 = vst.msk [vmem:[#allocation2 + $0x18] sm:$0xff] %vm1010_vm2, %v4275_v41  ;;  %v4269_v15 = vadd.f32 %v4725_v52, %v4268_v55  ;;  %4285 = sbr.rel (%p4726_p6) target bundleno = 6007 (0x1777), region = 112 }
0x1635   : > { %v5327_v4 = vpop.f32.mrf.mxu1 }
0x1636   : > { %v4276_v61 = vadd.f32 %v4269_v15, %v6494_v29 }
0x1638   : > { %4281 = vst.msk [vmem:[#allocation2 + $0x20] sm:$0x3f] %vm1023_vm3, %v4276_v61 }
0x1639   : > { %v4288_v16 = vsel %vm1010_vm2, %v4272_v22, 0.0  ;;  %v4294_v5 = vsel %vm1010_vm2, %v4274_v53, 0.0  ;;  %v4291_v21 = vsel %vm1010_vm2, %v4273_v59, 0.0  ;;  %v4297_v6 = vsel %vm1010_vm2, %v4275_v41, 0.0  ;;  %v4727_v56 = vld [vmem:[%s6735_s24] ss:$0 sm:$0xff] }
0x163a   : > { %4289 = vadd.xlane.f32.xlu0 %v4288_v16  ;;  %4295 = vadd.xlane.f32.xlu1 %v4294_v5  ;;  %v4300_v7 = vsel %vm1023_vm3, %v4276_v61, 0.0  ;;  %v4728_v42 = vld [vmem:[%s6736_s27] ss:$0 sm:$0xff] }
0x163e   : > { %4292 = vadd.xlane.f32.xlu0 %v4291_v21  ;;  %4298 = vadd.xlane.f32.xlu1 %v4297_v6 }
0x1642   : > { %4301 = vadd.xlane.f32.xlu0 %v4300_v7 }
0x16c3   : > { %v4290_v29 = vpop.xlane.xlu0 %4289  ;;  %v4296_v8 = vpop.xlane.xlu1 %4295 }
0x16c4   : > { %v4303_v9 = vmul.f32 0.03125, %v4290_v29  ;;  %v4305_v10 = vmul.f32 0.03125, %v4296_v8 }
0x16c6   : > { %v4308_v11 = vsub.f32 %v4272_v22, %v4303_v9  ;;  %v4310_v31 = vsub.f32 %v4274_v53, %v4305_v10 }
0x16c7   : > { %v4293_v14 = vpop.xlane.xlu0 %4292  ;;  %v4299_v17 = vpop.xlane.xlu1 %4298 }
0x16c8   : > { %v4304_v23 = vmul.f32 0.03125, %v4293_v14  ;;  %v4306_v34 = vmul.f32 0.03125, %v4299_v17  ;;  %v4313_v35 = vmul.f32 %v4308_v11, %v4308_v11  ;;  %v4315_v18 = vmul.f32 %v4310_v31, %v4310_v31 }
0x16ca   : > { %v4309_v51 = vsub.f32 %v4273_v59, %v4304_v23  ;;  %v4311_v20 = vsub.f32 %v4275_v41, %v4306_v34  ;;  %v4318_v24 = vsel %vm1010_vm2, %v4313_v35, 0.0  ;;  %v4324_v30 = vsel %vm1010_vm2, %v4315_v18, 0.0 }
0x16cb   : > { %4319 = vadd.xlane.f32.xlu1 %v4318_v24  ;;  %v4302_v19 = vpop.xlane.xlu0 %4301 }
0x16cc   : > { %v4307_v26 = vmul.f32 0.03125, %v4302_v19  ;;  %v4314_v60 = vmul.f32 %v4309_v51, %v4309_v51  ;;  %v4316_v32 = vmul.f32 %v4311_v20, %v4311_v20 }
0x16ce   : > { %v4312_v33 = vsub.f32 %v4276_v61, %v4307_v26  ;;  %v4321_v36 = vsel %vm1010_vm2, %v4314_v60, 0.0  ;;  %v4327_v38 = vsel %vm1010_vm2, %v4316_v32, 0.0 }
0x16cf   : > { %4325 = vadd.xlane.f32.xlu1 %v4324_v30  ;;  %4322 = vadd.xlane.f32.xlu0 %v4321_v36 }
0x16d0   : > { %v4317_v39 = vmul.f32 %v4312_v33, %v4312_v33 }
0x16d2   : > { %v4330_v40 = vsel %vm1023_vm3, %v4317_v39, 0.0 }
0x16d3   : > { %4328 = vadd.xlane.f32.xlu0 %v4327_v38  ;;  %4331 = vadd.xlane.f32.xlu1 %v4330_v40 }
0x1754   : > { %v4320_v58 = vpop.xlane.xlu1 %4319 }
0x1755   : > { %v4333_v12 = vmul.f32 0.03125, %v4320_v58 }
0x1757   : > { %v4338_v43 = vadd.f32 1e-05, %v4333_v12 }
0x1758   : > { %v4326_v1 = vpop.xlane.xlu1 %4325  ;;  %v4323_v44 = vpop.xlane.xlu0 %4322 }
0x1759   : > { %5504 = vrsqrt.f32 %v4338_v43  ;;  %v4335_v13 = vmul.f32 0.03125, %v4326_v1  ;;  %v4334_v46 = vmul.f32 0.03125, %v4323_v44 }
0x175b   : > { %v4340_v63 = vadd.f32 1e-05, %v4335_v13  ;;  %v4339_v47 = vadd.f32 1e-05, %v4334_v46 }
0x175c   : > { %v4332_v45 = vpop.xlane.xlu1 %4331  ;;  %v4329_v48 = vpop.xlane.xlu0 %4328 }
0x175d   : > { %5506 = vrsqrt.f32 %v4340_v63  ;;  %v4337_v49 = vmul.f32 0.03125, %v4332_v45  ;;  %v4336_v50 = vmul.f32 0.03125, %v4329_v48 }
0x175e   : > { %5508 = vrsqrt.f32 %v4339_v47 }
0x175f   : > { %v4342_v52 = vadd.f32 1e-05, %v4337_v49  ;;  %v4341_v54 = vadd.f32 1e-05, %v4336_v50 }
0x1761   : > { %5510 = vrsqrt.f32 %v4342_v52 }
0x1762   : > { %5512 = vrsqrt.f32 %v4341_v54 }
0x1766   : > { %v5505_v37 = vpop.eup %5504 }
0x1767   : > { %v4348_v22 = vmul.f32 %v5505_v37, %v4308_v11 }
0x1769   : > { %v4359_v25 = vmul.f32 %v4727_v56, %v4348_v22 }
0x176a   : > { %v5507_v57 = vpop.eup %5506 }
0x176b   : > { %v5509_v59 = vpop.eup %5508  ;;  %v4370_v28 = vadd.f32 %v4728_v42, %v4359_v25  ;;  %v4350_v62 = vmul.f32 %v5507_v57, %v4310_v31 }
0x176c   : > { %v4349_v0 = vmul.f32 %v5509_v59, %v4309_v51 }
0x176d   : > { %4375 = vst.msk [vmem:[%s6737_s22] sm:$0xff] %vm1010_vm2, %v4370_v28  ;;  %v4361_v53 = vmul.f32 %v4727_v56, %v4350_v62 }
0x176e   : > { %v5511_v2 = vpop.eup %5510  ;;  %v4360_v27 = vmul.f32 %v4727_v56, %v4349_v0 }
0x176f   : > { %v5513_v3 = vpop.eup %5512  ;;  %v4372_v41 = vadd.f32 %v4728_v42, %v4361_v53  ;;  %v4352_v55 = vmul.f32 %v5511_v2, %v4312_v33 }
0x1770   : > { %v4371_v15 = vadd.f32 %v4728_v42, %v4360_v27  ;;  %v4351_v4 = vmul.f32 %v5513_v3, %v4311_v20 }
0x1771   : > { %4377 = vst.msk [vmem:[%s6737_s22 + $0x10] sm:$0x7] %vm2554_vm10, %v4372_v41  ;;  %v4363_v61 = vmul.f32 %v4727_v56, %v4352_v55 }
0x1772   : > { %4729 = vst.msk [vmem:[%s6737_s22 + $0x15] sm:$0xf8] %vm3900_vm11, %v4372_v41  ;;  %v4362_v16 = vmul.f32 %v4727_v56, %v4351_v4 }
0x1773   : > { %4376 = vst.msk [vmem:[%s6737_s22 + $0x8] sm:$0xff] %vm1010_vm2, %v4371_v15  ;;  %v4374_v5 = vadd.f32 %v4728_v42, %v4363_v61 }
0x1774   : > { %v4373_v21 = vadd.f32 %v4728_v42, %v4362_v16 }
0x1775   : > { %4731 = vst.msk [vmem:[%s6737_s22 + $0x25] sm:$0x3f] %vm1023_vm3, %v4374_v5 }
0x1776   : > { %4730 = vst.msk [vmem:[%s6737_s22 + $0x1d] sm:$0xff] %vm1010_vm2, %v4373_v21 }
0x1777 PF: > { %s6738_s24 = sld [smem:[#allocation4_spill]] }
0x1778   : > { %s6739_s2 = sld [smem:[#allocation3_spill]] }
0x1779   : > { %s6740_s25 = sld [smem:[#allocation5_spill]] }
0x177d   : > { %s31_s26 = sadd.s32 1, %s6738_s24  }
0x177e   : > { %p28_p7 = scmp.ge.s32.totalorder %s31_s26, 4  }
0x1780   :  { %30 = sbr.rel (!%p28_p7) target bundleno = 12 (0xc), region = 182 }

</bundles_post_ra>
